<compile_context>
chip_gen: v7x
topology: tpu7x:2x2x1
jax: 0.10.0
libtpu: 0.0.40
codegen_flags: <defaults>
</compile_context>

<pallas_src>
import math

import jax
import jax.numpy as jnp
from jax.experimental import pallas as pl
from jax.experimental.pallas import tpu as pltpu  # noqa: F401  (kept for TPU-specific tuning hooks)

# ---------------- config (small, deterministic) ----------------
D_MODEL = 32
N_HEADS = 4
D_K = D_MODEL // N_HEADS
D_FF = 64
N_LAYERS = 2
BATCH = 2
SEQ = 8        # target length
SRC_SEQ = 8    # source / memory length
EPS = 1e-6
NEG_INF = -1e9


# ---------------- in-kernel helpers ----------------
def _layer_norm(x2d, g, b):
    # Annotated-Transformer LayerNorm: a2*(x-mean)/(std+eps)+b2, unbiased std (ddof=1).
    mean = jnp.mean(x2d, axis=-1, keepdims=True)
    diff = x2d - mean
    var = jnp.sum(diff * diff, axis=-1, keepdims=True) / (x2d.shape[-1] - 1)
    inv = pl.reciprocal(jnp.sqrt(var) + EPS, approx=True)
    return g * diff * inv + b


def _mm(a_f32, w_bf16):
    # bf16 operands on the MXU, fp32 accumulation.
    return jnp.dot(a_f32.astype(jnp.bfloat16), w_bf16, preferred_element_type=jnp.float32)


def _split_heads(x3_bf, col0):
    """x3_bf: [B, S, C] bf16. Take D_MODEL lanes starting at col0, split into heads and
    stack head-major along the leading axis -> [H*B, S, D_K] (index order (h, b))."""
    return jnp.concatenate(
        [x3_bf[:, :, col0 + h * D_K: col0 + (h + 1) * D_K] for h in range(N_HEADS)],
        axis=0)


def _attention(q_hb, k_hb, v_hb, bias_hb, b, s_q):
    """q/k/v: [H*B, S, D_K] bf16 (scale already folded into W_q);
    bias_hb: additive mask bias [H*B, Sq, Sk] or [H*B, 1, Sk]. Returns [B*Sq, D]."""
    scores = jnp.einsum("bqd,bkd->bqk", q_hb, k_hb,
                        preferred_element_type=jnp.float32) + bias_hb
    scores = scores - jnp.max(scores, axis=-1, keepdims=True)
    p = jnp.exp(scores)
    p = p * pl.reciprocal(jnp.sum(p, axis=-1, keepdims=True), approx=True)
    ctx = jnp.einsum("bqk,bkd->bqd", p.astype(jnp.bfloat16), v_hb,
                     preferred_element_type=jnp.float32)          # [H*B, Sq, D_K]
    # merge heads back onto the lane axis -> lane-dense [B*Sq, D]
    merged = jnp.concatenate([ctx[h * b:(h + 1) * b] for h in range(N_HEADS)], axis=-1)
    return merged.reshape(b * s_q, D_MODEL)


def _mha_self(qkv2d, bias_hb, b, s):
    # qkv2d: [B*S, 3D] f32 (fused QKV projection, biases already added)
    qkv3 = qkv2d.astype(jnp.bfloat16).reshape(b, s, 3 * D_MODEL)
    q_hb = _split_heads(qkv3, 0)
    k_hb = _split_heads(qkv3, D_MODEL)
    v_hb = _split_heads(qkv3, 2 * D_MODEL)
    return _attention(q_hb, k_hb, v_hb, bias_hb, b, s)


def _mha_cross(q2d, kv2d, bias_hb, b, s_q, s_k):
    # q2d: [B*Sq, D] f32, kv2d: [B*Sk, 2D] f32 (fused KV projection of memory)
    q3 = q2d.astype(jnp.bfloat16).reshape(b, s_q, D_MODEL)
    kv3 = kv2d.astype(jnp.bfloat16).reshape(b, s_k, 2 * D_MODEL)
    q_hb = _split_heads(q3, 0)
    k_hb = _split_heads(kv3, 0)
    v_hb = _split_heads(kv3, D_MODEL)
    return _attention(q_hb, k_hb, v_hb, bias_hb, b, s_q)


# ---------------- the fused decoder kernel ----------------
def _decoder_kernel(
    x_ref, mem_ref, tbias_ref, sbias_ref,
    w_qkv_ref,   # [L, D, 3D]   bf16 : self-attn fused QKV (scale folded into Q cols)
    w_dd_ref,    # [L, 3, D, D] bf16 : 0=self-attn W_o, 1=cross-attn W_q (scaled), 2=cross-attn W_o
    w_d2d_ref,   # [L, 2, D, 2D]bf16 : 0=cross-attn fused W_kv, 1=FFN W_1
    w_ff2_ref,   # [L, 2D, D]   bf16 : FFN W_2
    b_qkv_ref,   # [L, 1, 3D]   f32  : self-attn fused QKV bias
    b_2d_ref,    # [L, 2, 1, 2D]f32  : 0=cross-attn KV bias, 1=FFN b_1
    b_d_ref,     # [L, 4, 1, D] f32  : 0=self W_o bias, 1=cross W_q bias, 2=cross W_o bias, 3=FFN b_2
    ln_ref,      # [L, 6, 1, D] f32  : (ln1_g, ln1_b, ln2_g, ln2_b, ln3_g, ln3_b)
    fln_ref,     # [2, 1, D]    f32  : final stack LayerNorm (gamma, beta)
    o_ref,
):
    x = x_ref[...]                                   # [B*S, D]   target embeddings (f32)
    mem_bf = mem_ref[...].astype(jnp.bfloat16)       # [B*Ss, D]  encoder memory, cast ONCE

    # head-batched additive mask biases, built once (layer-invariant, reused by all layers)
    tbias = jnp.concatenate([tbias_ref[...]] * N_HEADS, axis=0)   # [H*B, S, S]
    sbias = jnp.concatenate([sbias_ref[...]] * N_HEADS, axis=0)   # [H*B, 1, Ss]

    # TODO(synk): dropout inside each SublayerConnection is identity here (eval / p=0).
    for l in range(N_LAYERS):                        # static unroll; all weights resident in VMEM
        # ---- sublayer 1: masked self-attention ----
        y = _layer_norm(x, ln_ref[l, 0], ln_ref[l, 1])
        qkv = _mm(y, w_qkv_ref[l]) + b_qkv_ref[l]                    # fused QKV: [M, 3D]
        ctx = _mha_self(qkv, tbias, BATCH, SEQ)
        x = x + _mm(ctx, w_dd_ref[l, 0]) + b_d_ref[l, 0]

        # ---- sublayer 2: encoder-decoder (source) attention ----
        y = _layer_norm(x, ln_ref[l, 2], ln_ref[l, 3])
        q2d = _mm(y, w_dd_ref[l, 1]) + b_d_ref[l, 1]                 # [M, D]
        kv = jnp.dot(mem_bf, w_d2d_ref[l, 0],
                     preferred_element_type=jnp.float32) + b_2d_ref[l, 0]   # fused KV: [Ms, 2D]
        ctx = _mha_cross(q2d, kv, sbias, BATCH, SEQ, SRC_SEQ)
        x = x + _mm(ctx, w_dd_ref[l, 2]) + b_d_ref[l, 2]

        # ---- sublayer 3: position-wise feed-forward ----
        y = _layer_norm(x, ln_ref[l, 4], ln_ref[l, 5])
        h1 = jnp.maximum(_mm(y, w_d2d_ref[l, 1]) + b_2d_ref[l, 1], 0.0)
        x = x + _mm(h1, w_ff2_ref[l]) + b_d_ref[l, 3]

    # final stack LayerNorm
    o_ref[...] = _layer_norm(x, fln_ref[0], fln_ref[1]).astype(o_ref.dtype)


def decoder_forward(params, x, memory, source_mask, target_mask):
    """Decoder.forward(x, memory, source_mask, target_mask) — single fused pallas_call."""
    B, S, D = x.shape
    S_src = memory.shape[1]
    x2d = x.reshape(B * S, D).astype(jnp.float32)
    mem2d = memory.reshape(B * S_src, D).astype(jnp.float32)

    # additive mask biases: 0 where kept, -1e9 where masked (masked_fill(mask==0, -1e9))
    tmask = jnp.broadcast_to(jnp.asarray(target_mask, jnp.float32), (B, S, S))
    tbias = jnp.where(tmask == 0.0, jnp.float32(NEG_INF), jnp.float32(0.0))
    smask = jnp.asarray(source_mask, jnp.float32).reshape(B, 1, S_src)   # un-broadcast
    sbias = jnp.where(smask == 0.0, jnp.float32(NEG_INF), jnp.float32(0.0))

    out = pl.pallas_call(
        _decoder_kernel,
        out_shape=jax.ShapeDtypeStruct((B * S, D), jnp.float32),
    )(
        x2d, mem2d, tbias, sbias,
        params["w_qkv"], params["w_dd"], params["w_d2d"], params["w_ff2"],
        params["b_qkv"], params["b_2d"], params["b_d"],
        params["ln"], params["fln"],
    )
    return out.reshape(B, S, D)


# ---------------- deterministic parameter init (kernel-ready packed layout) ----------------
class _Init:
    def __init__(self, key):
        self.key = key
        self.i = 0

    def normal(self, shape, scale=0.02):
        self.i += 1
        return scale * jax.random.normal(jax.random.fold_in(self.key, self.i), shape, jnp.float32)

    def zeros(self, shape):
        return jnp.zeros(shape, jnp.float32)


def init_params(key):
    init = _Init(key)
    scale = 1.0 / math.sqrt(D_K)

    w_qkv, w_dd, w_d2d, w_ff2 = [], [], [], []
    b_qkv, b_2d, b_d, ln = [], [], [], []

    for _ in range(N_LAYERS):
        # self-attention: fused QKV, 1/sqrt(dk) folded into W_q / b_q
        wq, bq = init.normal((D_MODEL, D_MODEL)), init.zeros((D_MODEL,))
        wk, bk = init.normal((D_MODEL, D_MODEL)), init.zeros((D_MODEL,))
        wv, bv = init.normal((D_MODEL, D_MODEL)), init.zeros((D_MODEL,))
        sa_wo, sa_bo = init.normal((D_MODEL, D_MODEL)), init.zeros((D_MODEL,))
        w_qkv.append(jnp.concatenate([wq * scale, wk, wv], axis=1))
        b_qkv.append(jnp.concatenate([bq * scale, bk, bv]))

        # source (cross) attention: fused KV over memory, scale folded into W_q / b_q
        wq2, bq2 = init.normal((D_MODEL, D_MODEL)), init.zeros((D_MODEL,))
        wk2, bk2 = init.normal((D_MODEL, D_MODEL)), init.zeros((D_MODEL,))
        wv2, bv2 = init.normal((D_MODEL, D_MODEL)), init.zeros((D_MODEL,))
        ca_wo, ca_bo = init.normal((D_MODEL, D_MODEL)), init.zeros((D_MODEL,))
        ca_wq, ca_bq = wq2 * scale, bq2 * scale
        ca_wkv = jnp.concatenate([wk2, wv2], axis=1)
        ca_bkv = jnp.concatenate([bk2, bv2])

        # feed-forward
        ff_w1, ff_b1 = init.normal((D_MODEL, D_FF)), init.zeros((D_FF,))
        ff_w2, ff_b2 = init.normal((D_FF, D_MODEL)), init.zeros((D_MODEL,))

        # pack by shape (fewer pallas_call inputs -> shorter DMA prologue)
        w_dd.append(jnp.stack([sa_wo, ca_wq, ca_wo]))                  # [3, D, D]
        w_d2d.append(jnp.stack([ca_wkv, ff_w1]))                       # [2, D, 2D]
        w_ff2.append(ff_w2)                                            # [2D, D]
        b_d.append(jnp.stack([sa_bo, ca_bq, ca_bo, ff_b2])[:, None, :])  # [4, 1, D]
        b_2d.append(jnp.stack([ca_bkv, ff_b1])[:, None, :])            # [2, 1, 2D]
        ln.append(jnp.stack([jnp.ones((D_MODEL,), jnp.float32),
                             jnp.zeros((D_MODEL,), jnp.float32)] * 3)[:, None, :])  # [6, 1, D]

    params = {
        "w_qkv": jnp.stack(w_qkv).astype(jnp.bfloat16),   # [L, D, 3D]
        "w_dd": jnp.stack(w_dd).astype(jnp.bfloat16),     # [L, 3, D, D]
        "w_d2d": jnp.stack(w_d2d).astype(jnp.bfloat16),   # [L, 2, D, 2D]
        "w_ff2": jnp.stack(w_ff2).astype(jnp.bfloat16),   # [L, 2D, D]
        "b_qkv": jnp.stack(b_qkv)[:, None, :],            # [L, 1, 3D]  f32
        "b_2d": jnp.stack(b_2d),                          # [L, 2, 1, 2D] f32
        "b_d": jnp.stack(b_d),                            # [L, 4, 1, D]  f32
        "ln": jnp.stack(ln),                              # [L, 6, 1, D]  f32
        "fln": jnp.stack([jnp.ones((1, D_MODEL), jnp.float32),
                          jnp.zeros((1, D_MODEL), jnp.float32)]),   # [2, 1, D]
    }
    return params


if __name__ == "__main__":
    key = jax.random.PRNGKey(0)
    params = init_params(key)

    # x: target-side embedded representation, memory: encoder stack output
    x = 0.1 * jax.random.normal(jax.random.fold_in(key, 100), (BATCH, SEQ, D_MODEL), jnp.float32)
    memory = 0.1 * jax.random.normal(jax.random.fold_in(key, 101), (BATCH, SRC_SEQ, D_MODEL), jnp.float32)

    # source_mask: [B, 1, S_src] padding mask (batch 1: last 2 source tokens padded)
    src_pad = jnp.ones((BATCH, SRC_SEQ), jnp.float32).at[1, SRC_SEQ - 2:].set(0.0)
    source_mask = src_pad[:, None, :]
    # target_mask: [B, S, S] = causal (subsequent) mask & target padding mask
    tgt_pad = jnp.ones((BATCH, SEQ), jnp.float32).at[1, SEQ - 1:].set(0.0)
    causal = jnp.tril(jnp.ones((SEQ, SEQ), jnp.float32))
    target_mask = causal[None, :, :] * tgt_pad[:, None, :]

    out = jax.jit(decoder_forward)(params, x, memory, source_mask, target_mask)
    out = jax.block_until_ready(out)
    assert out.shape == (BATCH, SEQ, D_MODEL) and out.dtype == jnp.float32
    assert bool(jnp.all(jnp.isfinite(out)))
    print("KERNEL_OK")
</pallas_src>

<mosaic_0001>
module attributes {stable_mosaic.version = 11 : i64} {
  func.func @_decoder_kernel(%arg0: memref<16x32xf32, #tpu.memory_space<vmem>>, %arg1: memref<16x32xf32, #tpu.memory_space<vmem>>, %arg2: memref<2x8x8xf32, #tpu.memory_space<vmem>>, %arg3: memref<2x1x8xf32, #tpu.memory_space<vmem>>, %arg4: memref<2x32x96xbf16, #tpu.memory_space<vmem>>, %arg5: memref<2x3x32x32xbf16, #tpu.memory_space<vmem>>, %arg6: memref<2x2x32x64xbf16, #tpu.memory_space<vmem>>, %arg7: memref<2x64x32xbf16, #tpu.memory_space<vmem>>, %arg8: memref<2x1x96xf32, #tpu.memory_space<vmem>>, %arg9: memref<2x2x1x64xf32, #tpu.memory_space<vmem>>, %arg10: memref<2x4x1x32xf32, #tpu.memory_space<vmem>>, %arg11: memref<2x6x1x32xf32, #tpu.memory_space<vmem>>, %arg12: memref<2x1x32xf32, #tpu.memory_space<vmem>>, %arg13: memref<16x32xf32, #tpu.memory_space<vmem>>) attributes {dimension_semantics = [], scalar_prefetch = 0 : i64, scratch_operands = 0 : i64, tpu.core_type = #tpu.core_type<tc>} {
    %c0 = arith.constant 0 : index
    %c0_0 = arith.constant 0 : index
    %0 = vector.load %arg0[%c0, %c0_0] : memref<16x32xf32, #tpu.memory_space<vmem>>, vector<16x32xf32>
    %c0_1 = arith.constant 0 : index
    %c0_2 = arith.constant 0 : index
    %1 = vector.load %arg1[%c0_1, %c0_2] : memref<16x32xf32, #tpu.memory_space<vmem>>, vector<16x32xf32>
    %2 = arith.truncf %1 : vector<16x32xf32> to vector<16x32xbf16>
    %c0_3 = arith.constant 0 : index
    %c0_4 = arith.constant 0 : index
    %c0_5 = arith.constant 0 : index
    %3 = vector.load %arg2[%c0_3, %c0_4, %c0_5] : memref<2x8x8xf32, #tpu.memory_space<vmem>>, vector<2x8x8xf32>
    %4 = tpu.concatenate %3, %3, %3, %3 in 0 : vector<2x8x8xf32>, vector<2x8x8xf32>, vector<2x8x8xf32>, vector<2x8x8xf32> -> vector<8x8x8xf32>
    %c0_6 = arith.constant 0 : index
    %c0_7 = arith.constant 0 : index
    %c0_8 = arith.constant 0 : index
    %5 = vector.load %arg3[%c0_6, %c0_7, %c0_8] : memref<2x1x8xf32, #tpu.memory_space<vmem>>, vector<2x1x8xf32>
    %6 = tpu.concatenate %5, %5, %5, %5 in 0 : vector<2x1x8xf32>, vector<2x1x8xf32>, vector<2x1x8xf32>, vector<2x1x8xf32> -> vector<8x1x8xf32>
    %c0_9 = arith.constant 0 : index
    %c0_10 = arith.constant 0 : index
    %c0_11 = arith.constant 0 : index
    %c0_12 = arith.constant 0 : index
    %7 = vector.load %arg11[%c0_9, %c0_10, %c0_11, %c0_12] : memref<2x6x1x32xf32, #tpu.memory_space<vmem>>, vector<1x1x1x32xf32>
    %8 = vector.shape_cast %7 : vector<1x1x1x32xf32> to vector<1x32xf32>
    %c0_13 = arith.constant 0 : index
    %c1 = arith.constant 1 : index
    %c0_14 = arith.constant 0 : index
    %c0_15 = arith.constant 0 : index
    %9 = vector.load %arg11[%c0_13, %c1, %c0_14, %c0_15] : memref<2x6x1x32xf32, #tpu.memory_space<vmem>>, vector<1x1x1x32xf32>
    %10 = vector.shape_cast %9 : vector<1x1x1x32xf32> to vector<1x32xf32>
    %cst = arith.constant dense<0.000000e+00> : vector<16xf32>
    %11 = vector.multi_reduction <add>, %0, %cst [1] : vector<16x32xf32> to vector<16xf32>
    %12 = vector.shape_cast %11 : vector<16xf32> to vector<16x1xf32>
    %cst_16 = arith.constant 3.200000e+01 : f32
    %13 = vector.broadcast %cst_16 : f32 to vector<16x1xf32>
    %14 = arith.divf %12, %13 : vector<16x1xf32>
    %15 = vector.broadcast %14 : vector<16x1xf32> to vector<16x32xf32>
    %16 = arith.subf %0, %15 : vector<16x32xf32>
    %17 = arith.mulf %16, %16 : vector<16x32xf32>
    %cst_17 = arith.constant dense<0.000000e+00> : vector<16xf32>
    %18 = vector.multi_reduction <add>, %17, %cst_17 [1] : vector<16x32xf32> to vector<16xf32>
    %19 = vector.shape_cast %18 : vector<16xf32> to vector<16x1xf32>
    %cst_18 = arith.constant 3.100000e+01 : f32
    %20 = vector.broadcast %cst_18 : f32 to vector<16x1xf32>
    %21 = arith.divf %19, %20 : vector<16x1xf32>
    %22 = math.sqrt %21 : vector<16x1xf32>
    %cst_19 = arith.constant 9.99999997E-7 : f32
    %23 = vector.broadcast %cst_19 : f32 to vector<16x1xf32>
    %24 = arith.addf %22, %23 : vector<16x1xf32>
    %25 = tpu.reciprocal %24 {approx = true} : vector<16x1xf32> -> vector<16x1xf32>
    %26 = vector.broadcast %8 : vector<1x32xf32> to vector<16x32xf32>
    %27 = arith.mulf %26, %16 : vector<16x32xf32>
    %28 = vector.broadcast %25 : vector<16x1xf32> to vector<16x32xf32>
    %29 = arith.mulf %27, %28 : vector<16x32xf32>
    %30 = vector.broadcast %10 : vector<1x32xf32> to vector<16x32xf32>
    %31 = arith.addf %29, %30 : vector<16x32xf32>
    %c0_20 = arith.constant 0 : index
    %c0_21 = arith.constant 0 : index
    %c0_22 = arith.constant 0 : index
    %32 = vector.load %arg4[%c0_20, %c0_21, %c0_22] : memref<2x32x96xbf16, #tpu.memory_space<vmem>>, vector<1x32x96xbf16>
    %33 = vector.shape_cast %32 : vector<1x32x96xbf16> to vector<32x96xbf16>
    %34 = arith.truncf %31 : vector<16x32xf32> to vector<16x32xbf16>
    %cst_23 = arith.constant dense<0.000000e+00> : vector<16x96xf32>
    %35 = tpu.matmul %34, %33, %cst_23 {dimension_numbers = #tpu.dot_dimension_numbers<[1], [0], [0], [1], [0, 0, 1, 1], [], []>} : vector<16x32xbf16>, vector<32x96xbf16>, vector<16x96xf32> -> vector<16x96xf32>
    %c0_24 = arith.constant 0 : index
    %c0_25 = arith.constant 0 : index
    %c0_26 = arith.constant 0 : index
    %36 = vector.load %arg8[%c0_24, %c0_25, %c0_26] : memref<2x1x96xf32, #tpu.memory_space<vmem>>, vector<1x1x96xf32>
    %37 = vector.shape_cast %36 : vector<1x1x96xf32> to vector<1x96xf32>
    %38 = vector.broadcast %37 : vector<1x96xf32> to vector<16x96xf32>
    %39 = arith.addf %35, %38 : vector<16x96xf32>
    %40 = arith.truncf %39 : vector<16x96xf32> to vector<16x96xbf16>
    %41 = vector.shape_cast %40 : vector<16x96xbf16> to vector<2x8x96xbf16>
    %42 = vector.extract_strided_slice %41 {offsets = [0, 0, 0], sizes = [2, 8, 8], strides = [1, 1, 1]} : vector<2x8x96xbf16> to vector<2x8x8xbf16>
    %43 = vector.extract_strided_slice %41 {offsets = [0, 0, 8], sizes = [2, 8, 8], strides = [1, 1, 1]} : vector<2x8x96xbf16> to vector<2x8x8xbf16>
    %44 = vector.extract_strided_slice %41 {offsets = [0, 0, 16], sizes = [2, 8, 8], strides = [1, 1, 1]} : vector<2x8x96xbf16> to vector<2x8x8xbf16>
    %45 = vector.extract_strided_slice %41 {offsets = [0, 0, 24], sizes = [2, 8, 8], strides = [1, 1, 1]} : vector<2x8x96xbf16> to vector<2x8x8xbf16>
    %46 = tpu.concatenate %42, %43, %44, %45 in 0 : vector<2x8x8xbf16>, vector<2x8x8xbf16>, vector<2x8x8xbf16>, vector<2x8x8xbf16> -> vector<8x8x8xbf16>
    %47 = vector.extract_strided_slice %41 {offsets = [0, 0, 32], sizes = [2, 8, 8], strides = [1, 1, 1]} : vector<2x8x96xbf16> to vector<2x8x8xbf16>
    %48 = vector.extract_strided_slice %41 {offsets = [0, 0, 40], sizes = [2, 8, 8], strides = [1, 1, 1]} : vector<2x8x96xbf16> to vector<2x8x8xbf16>
    %49 = vector.extract_strided_slice %41 {offsets = [0, 0, 48], sizes = [2, 8, 8], strides = [1, 1, 1]} : vector<2x8x96xbf16> to vector<2x8x8xbf16>
    %50 = vector.extract_strided_slice %41 {offsets = [0, 0, 56], sizes = [2, 8, 8], strides = [1, 1, 1]} : vector<2x8x96xbf16> to vector<2x8x8xbf16>
    %51 = tpu.concatenate %47, %48, %49, %50 in 0 : vector<2x8x8xbf16>, vector<2x8x8xbf16>, vector<2x8x8xbf16>, vector<2x8x8xbf16> -> vector<8x8x8xbf16>
    %52 = vector.extract_strided_slice %41 {offsets = [0, 0, 64], sizes = [2, 8, 8], strides = [1, 1, 1]} : vector<2x8x96xbf16> to vector<2x8x8xbf16>
    %53 = vector.extract_strided_slice %41 {offsets = [0, 0, 72], sizes = [2, 8, 8], strides = [1, 1, 1]} : vector<2x8x96xbf16> to vector<2x8x8xbf16>
    %54 = vector.extract_strided_slice %41 {offsets = [0, 0, 80], sizes = [2, 8, 8], strides = [1, 1, 1]} : vector<2x8x96xbf16> to vector<2x8x8xbf16>
    %55 = vector.extract_strided_slice %41 {offsets = [0, 0, 88], sizes = [2, 8, 8], strides = [1, 1, 1]} : vector<2x8x96xbf16> to vector<2x8x8xbf16>
    %56 = tpu.concatenate %52, %53, %54, %55 in 0 : vector<2x8x8xbf16>, vector<2x8x8xbf16>, vector<2x8x8xbf16>, vector<2x8x8xbf16> -> vector<8x8x8xbf16>
    "tpu.trace_start"() <{level = 10 : i32, message = "bqd,bkd->bqk"}> : () -> ()
    %cst_27 = arith.constant dense<0.000000e+00> : vector<8x8x8xf32>
    %57 = tpu.matmul %46, %51, %cst_27 {dimension_numbers = #tpu.dot_dimension_numbers<[2], [2], [1], [1], [0, 0, 0, 1, 1, 1], [0], [0]>} : vector<8x8x8xbf16>, vector<8x8x8xbf16>, vector<8x8x8xf32> -> vector<8x8x8xf32>
    "tpu.trace_stop"() : () -> ()
    %58 = arith.addf %57, %4 : vector<8x8x8xf32>
    %cst_28 = arith.constant dense<0xFF800000> : vector<8x8xf32>
    %59 = vector.multi_reduction <maximumf>, %58, %cst_28 [2] : vector<8x8x8xf32> to vector<8x8xf32>
    %60 = vector.shape_cast %59 : vector<8x8xf32> to vector<8x8x1xf32>
    %61 = vector.broadcast %60 : vector<8x8x1xf32> to vector<8x8x8xf32>
    %62 = arith.subf %58, %61 : vector<8x8x8xf32>
    %63 = math.exp %62 : vector<8x8x8xf32>
    %cst_29 = arith.constant dense<0.000000e+00> : vector<8x8xf32>
    %64 = vector.multi_reduction <add>, %63, %cst_29 [2] : vector<8x8x8xf32> to vector<8x8xf32>
    %65 = vector.shape_cast %64 : vector<8x8xf32> to vector<8x8x1xf32>
    %66 = tpu.reciprocal %65 {approx = true} : vector<8x8x1xf32> -> vector<8x8x1xf32>
    %67 = vector.broadcast %66 : vector<8x8x1xf32> to vector<8x8x8xf32>
    %68 = arith.mulf %63, %67 : vector<8x8x8xf32>
    %69 = arith.truncf %68 : vector<8x8x8xf32> to vector<8x8x8xbf16>
    "tpu.trace_start"() <{level = 10 : i32, message = "bqk,bkd->bqd"}> : () -> ()
    %cst_30 = arith.constant dense<0.000000e+00> : vector<8x8x8xf32>
    %70 = tpu.matmul %69, %56, %cst_30 {dimension_numbers = #tpu.dot_dimension_numbers<[2], [1], [1], [2], [0, 0, 0, 1, 1, 2], [0], [0]>} : vector<8x8x8xbf16>, vector<8x8x8xbf16>, vector<8x8x8xf32> -> vector<8x8x8xf32>
    "tpu.trace_stop"() : () -> ()
    %71 = vector.extract_strided_slice %70 {offsets = [0, 0, 0], sizes = [2, 8, 8], strides = [1, 1, 1]} : vector<8x8x8xf32> to vector<2x8x8xf32>
    %72 = vector.extract_strided_slice %70 {offsets = [2, 0, 0], sizes = [2, 8, 8], strides = [1, 1, 1]} : vector<8x8x8xf32> to vector<2x8x8xf32>
    %73 = vector.extract_strided_slice %70 {offsets = [4, 0, 0], sizes = [2, 8, 8], strides = [1, 1, 1]} : vector<8x8x8xf32> to vector<2x8x8xf32>
    %74 = vector.extract_strided_slice %70 {offsets = [6, 0, 0], sizes = [2, 8, 8], strides = [1, 1, 1]} : vector<8x8x8xf32> to vector<2x8x8xf32>
    %75 = tpu.concatenate %71, %72, %73, %74 in 2 : vector<2x8x8xf32>, vector<2x8x8xf32>, vector<2x8x8xf32>, vector<2x8x8xf32> -> vector<2x8x32xf32>
    %76 = vector.shape_cast %75 : vector<2x8x32xf32> to vector<16x32xf32>
    %c0_31 = arith.constant 0 : index
    %c0_32 = arith.constant 0 : index
    %c0_33 = arith.constant 0 : index
    %c0_34 = arith.constant 0 : index
    %77 = vector.load %arg5[%c0_31, %c0_32, %c0_33, %c0_34] : memref<2x3x32x32xbf16, #tpu.memory_space<vmem>>, vector<1x1x32x32xbf16>
    %78 = vector.shape_cast %77 : vector<1x1x32x32xbf16> to vector<32x32xbf16>
    %79 = arith.truncf %76 : vector<16x32xf32> to vector<16x32xbf16>
    %cst_35 = arith.constant dense<0.000000e+00> : vector<16x32xf32>
    %80 = tpu.matmul %79, %78, %cst_35 {dimension_numbers = #tpu.dot_dimension_numbers<[1], [0], [0], [1], [0, 0, 1, 1], [], []>} : vector<16x32xbf16>, vector<32x32xbf16>, vector<16x32xf32> -> vector<16x32xf32>
    %81 = arith.addf %0, %80 : vector<16x32xf32>
    %c0_36 = arith.constant 0 : index
    %c0_37 = arith.constant 0 : index
    %c0_38 = arith.constant 0 : index
    %c0_39 = arith.constant 0 : index
    %82 = vector.load %arg10[%c0_36, %c0_37, %c0_38, %c0_39] : memref<2x4x1x32xf32, #tpu.memory_space<vmem>>, vector<1x1x1x32xf32>
    %83 = vector.shape_cast %82 : vector<1x1x1x32xf32> to vector<1x32xf32>
    %84 = vector.broadcast %83 : vector<1x32xf32> to vector<16x32xf32>
    %85 = arith.addf %81, %84 : vector<16x32xf32>
    %c0_40 = arith.constant 0 : index
    %c2 = arith.constant 2 : index
    %c0_41 = arith.constant 0 : index
    %c0_42 = arith.constant 0 : index
    %86 = vector.load %arg11[%c0_40, %c2, %c0_41, %c0_42] : memref<2x6x1x32xf32, #tpu.memory_space<vmem>>, vector<1x1x1x32xf32>
    %87 = vector.shape_cast %86 : vector<1x1x1x32xf32> to vector<1x32xf32>
    %c0_43 = arith.constant 0 : index
    %c3 = arith.constant 3 : index
    %c0_44 = arith.constant 0 : index
    %c0_45 = arith.constant 0 : index
    %88 = vector.load %arg11[%c0_43, %c3, %c0_44, %c0_45] : memref<2x6x1x32xf32, #tpu.memory_space<vmem>>, vector<1x1x1x32xf32>
    %89 = vector.shape_cast %88 : vector<1x1x1x32xf32> to vector<1x32xf32>
    %cst_46 = arith.constant dense<0.000000e+00> : vector<16xf32>
    %90 = vector.multi_reduction <add>, %85, %cst_46 [1] : vector<16x32xf32> to vector<16xf32>
    %91 = vector.shape_cast %90 : vector<16xf32> to vector<16x1xf32>
    %cst_47 = arith.constant 3.200000e+01 : f32
    %92 = vector.broadcast %cst_47 : f32 to vector<16x1xf32>
    %93 = arith.divf %91, %92 : vector<16x1xf32>
    %94 = vector.broadcast %93 : vector<16x1xf32> to vector<16x32xf32>
    %95 = arith.subf %85, %94 : vector<16x32xf32>
    %96 = arith.mulf %95, %95 : vector<16x32xf32>
    %cst_48 = arith.constant dense<0.000000e+00> : vector<16xf32>
    %97 = vector.multi_reduction <add>, %96, %cst_48 [1] : vector<16x32xf32> to vector<16xf32>
    %98 = vector.shape_cast %97 : vector<16xf32> to vector<16x1xf32>
    %cst_49 = arith.constant 3.100000e+01 : f32
    %99 = vector.broadcast %cst_49 : f32 to vector<16x1xf32>
    %100 = arith.divf %98, %99 : vector<16x1xf32>
    %101 = math.sqrt %100 : vector<16x1xf32>
    %cst_50 = arith.constant 9.99999997E-7 : f32
    %102 = vector.broadcast %cst_50 : f32 to vector<16x1xf32>
    %103 = arith.addf %101, %102 : vector<16x1xf32>
    %104 = tpu.reciprocal %103 {approx = true} : vector<16x1xf32> -> vector<16x1xf32>
    %105 = vector.broadcast %87 : vector<1x32xf32> to vector<16x32xf32>
    %106 = arith.mulf %105, %95 : vector<16x32xf32>
    %107 = vector.broadcast %104 : vector<16x1xf32> to vector<16x32xf32>
    %108 = arith.mulf %106, %107 : vector<16x32xf32>
    %109 = vector.broadcast %89 : vector<1x32xf32> to vector<16x32xf32>
    %110 = arith.addf %108, %109 : vector<16x32xf32>
    %c0_51 = arith.constant 0 : index
    %c1_52 = arith.constant 1 : index
    %c0_53 = arith.constant 0 : index
    %c0_54 = arith.constant 0 : index
    %111 = vector.load %arg5[%c0_51, %c1_52, %c0_53, %c0_54] : memref<2x3x32x32xbf16, #tpu.memory_space<vmem>>, vector<1x1x32x32xbf16>
    %112 = vector.shape_cast %111 : vector<1x1x32x32xbf16> to vector<32x32xbf16>
    %113 = arith.truncf %110 : vector<16x32xf32> to vector<16x32xbf16>
    %cst_55 = arith.constant dense<0.000000e+00> : vector<16x32xf32>
    %114 = tpu.matmul %113, %112, %cst_55 {dimension_numbers = #tpu.dot_dimension_numbers<[1], [0], [0], [1], [0, 0, 1, 1], [], []>} : vector<16x32xbf16>, vector<32x32xbf16>, vector<16x32xf32> -> vector<16x32xf32>
    %c0_56 = arith.constant 0 : index
    %c1_57 = arith.constant 1 : index
    %c0_58 = arith.constant 0 : index
    %c0_59 = arith.constant 0 : index
    %115 = vector.load %arg10[%c0_56, %c1_57, %c0_58, %c0_59] : memref<2x4x1x32xf32, #tpu.memory_space<vmem>>, vector<1x1x1x32xf32>
    %116 = vector.shape_cast %115 : vector<1x1x1x32xf32> to vector<1x32xf32>
    %117 = vector.broadcast %116 : vector<1x32xf32> to vector<16x32xf32>
    %118 = arith.addf %114, %117 : vector<16x32xf32>
    %c0_60 = arith.constant 0 : index
    %c0_61 = arith.constant 0 : index
    %c0_62 = arith.constant 0 : index
    %c0_63 = arith.constant 0 : index
    %119 = vector.load %arg6[%c0_60, %c0_61, %c0_62, %c0_63] : memref<2x2x32x64xbf16, #tpu.memory_space<vmem>>, vector<1x1x32x64xbf16>
    %120 = vector.shape_cast %119 : vector<1x1x32x64xbf16> to vector<32x64xbf16>
    %cst_64 = arith.constant dense<0.000000e+00> : vector<16x64xf32>
    %121 = tpu.matmul %2, %120, %cst_64 {dimension_numbers = #tpu.dot_dimension_numbers<[1], [0], [0], [1], [0, 0, 1, 1], [], []>} : vector<16x32xbf16>, vector<32x64xbf16>, vector<16x64xf32> -> vector<16x64xf32>
    %c0_65 = arith.constant 0 : index
    %c0_66 = arith.constant 0 : index
    %c0_67 = arith.constant 0 : index
    %c0_68 = arith.constant 0 : index
    %122 = vector.load %arg9[%c0_65, %c0_66, %c0_67, %c0_68] : memref<2x2x1x64xf32, #tpu.memory_space<vmem>>, vector<1x1x1x64xf32>
    %123 = vector.shape_cast %122 : vector<1x1x1x64xf32> to vector<1x64xf32>
    %124 = vector.broadcast %123 : vector<1x64xf32> to vector<16x64xf32>
    %125 = arith.addf %121, %124 : vector<16x64xf32>
    %126 = arith.truncf %118 : vector<16x32xf32> to vector<16x32xbf16>
    %127 = vector.shape_cast %126 : vector<16x32xbf16> to vector<2x8x32xbf16>
    %128 = arith.truncf %125 : vector<16x64xf32> to vector<16x64xbf16>
    %129 = vector.shape_cast %128 : vector<16x64xbf16> to vector<2x8x64xbf16>
    %130 = vector.extract_strided_slice %127 {offsets = [0, 0, 0], sizes = [2, 8, 8], strides = [1, 1, 1]} : vector<2x8x32xbf16> to vector<2x8x8xbf16>
    %131 = vector.extract_strided_slice %127 {offsets = [0, 0, 8], sizes = [2, 8, 8], strides = [1, 1, 1]} : vector<2x8x32xbf16> to vector<2x8x8xbf16>
    %132 = vector.extract_strided_slice %127 {offsets = [0, 0, 16], sizes = [2, 8, 8], strides = [1, 1, 1]} : vector<2x8x32xbf16> to vector<2x8x8xbf16>
    %133 = vector.extract_strided_slice %127 {offsets = [0, 0, 24], sizes = [2, 8, 8], strides = [1, 1, 1]} : vector<2x8x32xbf16> to vector<2x8x8xbf16>
    %134 = tpu.concatenate %130, %131, %132, %133 in 0 : vector<2x8x8xbf16>, vector<2x8x8xbf16>, vector<2x8x8xbf16>, vector<2x8x8xbf16> -> vector<8x8x8xbf16>
    %135 = vector.extract_strided_slice %129 {offsets = [0, 0, 0], sizes = [2, 8, 8], strides = [1, 1, 1]} : vector<2x8x64xbf16> to vector<2x8x8xbf16>
    %136 = vector.extract_strided_slice %129 {offsets = [0, 0, 8], sizes = [2, 8, 8], strides = [1, 1, 1]} : vector<2x8x64xbf16> to vector<2x8x8xbf16>
    %137 = vector.extract_strided_slice %129 {offsets = [0, 0, 16], sizes = [2, 8, 8], strides = [1, 1, 1]} : vector<2x8x64xbf16> to vector<2x8x8xbf16>
    %138 = vector.extract_strided_slice %129 {offsets = [0, 0, 24], sizes = [2, 8, 8], strides = [1, 1, 1]} : vector<2x8x64xbf16> to vector<2x8x8xbf16>
    %139 = tpu.concatenate %135, %136, %137, %138 in 0 : vector<2x8x8xbf16>, vector<2x8x8xbf16>, vector<2x8x8xbf16>, vector<2x8x8xbf16> -> vector<8x8x8xbf16>
    %140 = vector.extract_strided_slice %129 {offsets = [0, 0, 32], sizes = [2, 8, 8], strides = [1, 1, 1]} : vector<2x8x64xbf16> to vector<2x8x8xbf16>
    %141 = vector.extract_strided_slice %129 {offsets = [0, 0, 40], sizes = [2, 8, 8], strides = [1, 1, 1]} : vector<2x8x64xbf16> to vector<2x8x8xbf16>
    %142 = vector.extract_strided_slice %129 {offsets = [0, 0, 48], sizes = [2, 8, 8], strides = [1, 1, 1]} : vector<2x8x64xbf16> to vector<2x8x8xbf16>
    %143 = vector.extract_strided_slice %129 {offsets = [0, 0, 56], sizes = [2, 8, 8], strides = [1, 1, 1]} : vector<2x8x64xbf16> to vector<2x8x8xbf16>
    %144 = tpu.concatenate %140, %141, %142, %143 in 0 : vector<2x8x8xbf16>, vector<2x8x8xbf16>, vector<2x8x8xbf16>, vector<2x8x8xbf16> -> vector<8x8x8xbf16>
    "tpu.trace_start"() <{level = 10 : i32, message = "bqd,bkd->bqk"}> : () -> ()
    %cst_69 = arith.constant dense<0.000000e+00> : vector<8x8x8xf32>
    %145 = tpu.matmul %134, %139, %cst_69 {dimension_numbers = #tpu.dot_dimension_numbers<[2], [2], [1], [1], [0, 0, 0, 1, 1, 1], [0], [0]>} : vector<8x8x8xbf16>, vector<8x8x8xbf16>, vector<8x8x8xf32> -> vector<8x8x8xf32>
    "tpu.trace_stop"() : () -> ()
    %146 = vector.broadcast %6 : vector<8x1x8xf32> to vector<8x8x8xf32>
    %147 = arith.addf %145, %146 : vector<8x8x8xf32>
    %cst_70 = arith.constant dense<0xFF800000> : vector<8x8xf32>
    %148 = vector.multi_reduction <maximumf>, %147, %cst_70 [2] : vector<8x8x8xf32> to vector<8x8xf32>
    %149 = vector.shape_cast %148 : vector<8x8xf32> to vector<8x8x1xf32>
    %150 = vector.broadcast %149 : vector<8x8x1xf32> to vector<8x8x8xf32>
    %151 = arith.subf %147, %150 : vector<8x8x8xf32>
    %152 = math.exp %151 : vector<8x8x8xf32>
    %cst_71 = arith.constant dense<0.000000e+00> : vector<8x8xf32>
    %153 = vector.multi_reduction <add>, %152, %cst_71 [2] : vector<8x8x8xf32> to vector<8x8xf32>
    %154 = vector.shape_cast %153 : vector<8x8xf32> to vector<8x8x1xf32>
    %155 = tpu.reciprocal %154 {approx = true} : vector<8x8x1xf32> -> vector<8x8x1xf32>
    %156 = vector.broadcast %155 : vector<8x8x1xf32> to vector<8x8x8xf32>
    %157 = arith.mulf %152, %156 : vector<8x8x8xf32>
    %158 = arith.truncf %157 : vector<8x8x8xf32> to vector<8x8x8xbf16>
    "tpu.trace_start"() <{level = 10 : i32, message = "bqk,bkd->bqd"}> : () -> ()
    %cst_72 = arith.constant dense<0.000000e+00> : vector<8x8x8xf32>
    %159 = tpu.matmul %158, %144, %cst_72 {dimension_numbers = #tpu.dot_dimension_numbers<[2], [1], [1], [2], [0, 0, 0, 1, 1, 2], [0], [0]>} : vector<8x8x8xbf16>, vector<8x8x8xbf16>, vector<8x8x8xf32> -> vector<8x8x8xf32>
    "tpu.trace_stop"() : () -> ()
    %160 = vector.extract_strided_slice %159 {offsets = [0, 0, 0], sizes = [2, 8, 8], strides = [1, 1, 1]} : vector<8x8x8xf32> to vector<2x8x8xf32>
    %161 = vector.extract_strided_slice %159 {offsets = [2, 0, 0], sizes = [2, 8, 8], strides = [1, 1, 1]} : vector<8x8x8xf32> to vector<2x8x8xf32>
    %162 = vector.extract_strided_slice %159 {offsets = [4, 0, 0], sizes = [2, 8, 8], strides = [1, 1, 1]} : vector<8x8x8xf32> to vector<2x8x8xf32>
    %163 = vector.extract_strided_slice %159 {offsets = [6, 0, 0], sizes = [2, 8, 8], strides = [1, 1, 1]} : vector<8x8x8xf32> to vector<2x8x8xf32>
    %164 = tpu.concatenate %160, %161, %162, %163 in 2 : vector<2x8x8xf32>, vector<2x8x8xf32>, vector<2x8x8xf32>, vector<2x8x8xf32> -> vector<2x8x32xf32>
    %165 = vector.shape_cast %164 : vector<2x8x32xf32> to vector<16x32xf32>
    %c0_73 = arith.constant 0 : index
    %c2_74 = arith.constant 2 : index
    %c0_75 = arith.constant 0 : index
    %c0_76 = arith.constant 0 : index
    %166 = vector.load %arg5[%c0_73, %c2_74, %c0_75, %c0_76] : memref<2x3x32x32xbf16, #tpu.memory_space<vmem>>, vector<1x1x32x32xbf16>
    %167 = vector.shape_cast %166 : vector<1x1x32x32xbf16> to vector<32x32xbf16>
    %168 = arith.truncf %165 : vector<16x32xf32> to vector<16x32xbf16>
    %cst_77 = arith.constant dense<0.000000e+00> : vector<16x32xf32>
    %169 = tpu.matmul %168, %167, %cst_77 {dimension_numbers = #tpu.dot_dimension_numbers<[1], [0], [0], [1], [0, 0, 1, 1], [], []>} : vector<16x32xbf16>, vector<32x32xbf16>, vector<16x32xf32> -> vector<16x32xf32>
    %170 = arith.addf %85, %169 : vector<16x32xf32>
    %c0_78 = arith.constant 0 : index
    %c2_79 = arith.constant 2 : index
    %c0_80 = arith.constant 0 : index
    %c0_81 = arith.constant 0 : index
    %171 = vector.load %arg10[%c0_78, %c2_79, %c0_80, %c0_81] : memref<2x4x1x32xf32, #tpu.memory_space<vmem>>, vector<1x1x1x32xf32>
    %172 = vector.shape_cast %171 : vector<1x1x1x32xf32> to vector<1x32xf32>
    %173 = vector.broadcast %172 : vector<1x32xf32> to vector<16x32xf32>
    %174 = arith.addf %170, %173 : vector<16x32xf32>
    %c0_82 = arith.constant 0 : index
    %c4 = arith.constant 4 : index
    %c0_83 = arith.constant 0 : index
    %c0_84 = arith.constant 0 : index
    %175 = vector.load %arg11[%c0_82, %c4, %c0_83, %c0_84] : memref<2x6x1x32xf32, #tpu.memory_space<vmem>>, vector<1x1x1x32xf32>
    %176 = vector.shape_cast %175 : vector<1x1x1x32xf32> to vector<1x32xf32>
    %c0_85 = arith.constant 0 : index
    %c5 = arith.constant 5 : index
    %c0_86 = arith.constant 0 : index
    %c0_87 = arith.constant 0 : index
    %177 = vector.load %arg11[%c0_85, %c5, %c0_86, %c0_87] : memref<2x6x1x32xf32, #tpu.memory_space<vmem>>, vector<1x1x1x32xf32>
    %178 = vector.shape_cast %177 : vector<1x1x1x32xf32> to vector<1x32xf32>
    %cst_88 = arith.constant dense<0.000000e+00> : vector<16xf32>
    %179 = vector.multi_reduction <add>, %174, %cst_88 [1] : vector<16x32xf32> to vector<16xf32>
    %180 = vector.shape_cast %179 : vector<16xf32> to vector<16x1xf32>
    %cst_89 = arith.constant 3.200000e+01 : f32
    %181 = vector.broadcast %cst_89 : f32 to vector<16x1xf32>
    %182 = arith.divf %180, %181 : vector<16x1xf32>
    %183 = vector.broadcast %182 : vector<16x1xf32> to vector<16x32xf32>
    %184 = arith.subf %174, %183 : vector<16x32xf32>
    %185 = arith.mulf %184, %184 : vector<16x32xf32>
    %cst_90 = arith.constant dense<0.000000e+00> : vector<16xf32>
    %186 = vector.multi_reduction <add>, %185, %cst_90 [1] : vector<16x32xf32> to vector<16xf32>
    %187 = vector.shape_cast %186 : vector<16xf32> to vector<16x1xf32>
    %cst_91 = arith.constant 3.100000e+01 : f32
    %188 = vector.broadcast %cst_91 : f32 to vector<16x1xf32>
    %189 = arith.divf %187, %188 : vector<16x1xf32>
    %190 = math.sqrt %189 : vector<16x1xf32>
    %cst_92 = arith.constant 9.99999997E-7 : f32
    %191 = vector.broadcast %cst_92 : f32 to vector<16x1xf32>
    %192 = arith.addf %190, %191 : vector<16x1xf32>
    %193 = tpu.reciprocal %192 {approx = true} : vector<16x1xf32> -> vector<16x1xf32>
    %194 = vector.broadcast %176 : vector<1x32xf32> to vector<16x32xf32>
    %195 = arith.mulf %194, %184 : vector<16x32xf32>
    %196 = vector.broadcast %193 : vector<16x1xf32> to vector<16x32xf32>
    %197 = arith.mulf %195, %196 : vector<16x32xf32>
    %198 = vector.broadcast %178 : vector<1x32xf32> to vector<16x32xf32>
    %199 = arith.addf %197, %198 : vector<16x32xf32>
    %c0_93 = arith.constant 0 : index
    %c1_94 = arith.constant 1 : index
    %c0_95 = arith.constant 0 : index
    %c0_96 = arith.constant 0 : index
    %200 = vector.load %arg6[%c0_93, %c1_94, %c0_95, %c0_96] : memref<2x2x32x64xbf16, #tpu.memory_space<vmem>>, vector<1x1x32x64xbf16>
    %201 = vector.shape_cast %200 : vector<1x1x32x64xbf16> to vector<32x64xbf16>
    %202 = arith.truncf %199 : vector<16x32xf32> to vector<16x32xbf16>
    %cst_97 = arith.constant dense<0.000000e+00> : vector<16x64xf32>
    %203 = tpu.matmul %202, %201, %cst_97 {dimension_numbers = #tpu.dot_dimension_numbers<[1], [0], [0], [1], [0, 0, 1, 1], [], []>} : vector<16x32xbf16>, vector<32x64xbf16>, vector<16x64xf32> -> vector<16x64xf32>
    %c0_98 = arith.constant 0 : index
    %c1_99 = arith.constant 1 : index
    %c0_100 = arith.constant 0 : index
    %c0_101 = arith.constant 0 : index
    %204 = vector.load %arg9[%c0_98, %c1_99, %c0_100, %c0_101] : memref<2x2x1x64xf32, #tpu.memory_space<vmem>>, vector<1x1x1x64xf32>
    %205 = vector.shape_cast %204 : vector<1x1x1x64xf32> to vector<1x64xf32>
    %206 = vector.broadcast %205 : vector<1x64xf32> to vector<16x64xf32>
    %207 = arith.addf %203, %206 : vector<16x64xf32>
    %cst_102 = arith.constant 0.000000e+00 : f32
    %208 = vector.broadcast %cst_102 : f32 to vector<16x64xf32>
    %209 = arith.maximumf %207, %208 : vector<16x64xf32>
    %c0_103 = arith.constant 0 : index
    %c0_104 = arith.constant 0 : index
    %c0_105 = arith.constant 0 : index
    %210 = vector.load %arg7[%c0_103, %c0_104, %c0_105] : memref<2x64x32xbf16, #tpu.memory_space<vmem>>, vector<1x64x32xbf16>
    %211 = vector.shape_cast %210 : vector<1x64x32xbf16> to vector<64x32xbf16>
    %212 = arith.truncf %209 : vector<16x64xf32> to vector<16x64xbf16>
    %cst_106 = arith.constant dense<0.000000e+00> : vector<16x32xf32>
    %213 = tpu.matmul %212, %211, %cst_106 {dimension_numbers = #tpu.dot_dimension_numbers<[1], [0], [0], [1], [0, 0, 1, 1], [], []>} : vector<16x64xbf16>, vector<64x32xbf16>, vector<16x32xf32> -> vector<16x32xf32>
    %214 = arith.addf %174, %213 : vector<16x32xf32>
    %c0_107 = arith.constant 0 : index
    %c3_108 = arith.constant 3 : index
    %c0_109 = arith.constant 0 : index
    %c0_110 = arith.constant 0 : index
    %215 = vector.load %arg10[%c0_107, %c3_108, %c0_109, %c0_110] : memref<2x4x1x32xf32, #tpu.memory_space<vmem>>, vector<1x1x1x32xf32>
    %216 = vector.shape_cast %215 : vector<1x1x1x32xf32> to vector<1x32xf32>
    %217 = vector.broadcast %216 : vector<1x32xf32> to vector<16x32xf32>
    %218 = arith.addf %214, %217 : vector<16x32xf32>
    %c1_111 = arith.constant 1 : index
    %c0_112 = arith.constant 0 : index
    %c0_113 = arith.constant 0 : index
    %c0_114 = arith.constant 0 : index
    %219 = vector.load %arg11[%c1_111, %c0_112, %c0_113, %c0_114] : memref<2x6x1x32xf32, #tpu.memory_space<vmem>>, vector<1x1x1x32xf32>
    %220 = vector.shape_cast %219 : vector<1x1x1x32xf32> to vector<1x32xf32>
    %c1_115 = arith.constant 1 : index
    %c1_116 = arith.constant 1 : index
    %c0_117 = arith.constant 0 : index
    %c0_118 = arith.constant 0 : index
    %221 = vector.load %arg11[%c1_115, %c1_116, %c0_117, %c0_118] : memref<2x6x1x32xf32, #tpu.memory_space<vmem>>, vector<1x1x1x32xf32>
    %222 = vector.shape_cast %221 : vector<1x1x1x32xf32> to vector<1x32xf32>
    %cst_119 = arith.constant dense<0.000000e+00> : vector<16xf32>
    %223 = vector.multi_reduction <add>, %218, %cst_119 [1] : vector<16x32xf32> to vector<16xf32>
    %224 = vector.shape_cast %223 : vector<16xf32> to vector<16x1xf32>
    %cst_120 = arith.constant 3.200000e+01 : f32
    %225 = vector.broadcast %cst_120 : f32 to vector<16x1xf32>
    %226 = arith.divf %224, %225 : vector<16x1xf32>
    %227 = vector.broadcast %226 : vector<16x1xf32> to vector<16x32xf32>
    %228 = arith.subf %218, %227 : vector<16x32xf32>
    %229 = arith.mulf %228, %228 : vector<16x32xf32>
    %cst_121 = arith.constant dense<0.000000e+00> : vector<16xf32>
    %230 = vector.multi_reduction <add>, %229, %cst_121 [1] : vector<16x32xf32> to vector<16xf32>
    %231 = vector.shape_cast %230 : vector<16xf32> to vector<16x1xf32>
    %cst_122 = arith.constant 3.100000e+01 : f32
    %232 = vector.broadcast %cst_122 : f32 to vector<16x1xf32>
    %233 = arith.divf %231, %232 : vector<16x1xf32>
    %234 = math.sqrt %233 : vector<16x1xf32>
    %cst_123 = arith.constant 9.99999997E-7 : f32
    %235 = vector.broadcast %cst_123 : f32 to vector<16x1xf32>
    %236 = arith.addf %234, %235 : vector<16x1xf32>
    %237 = tpu.reciprocal %236 {approx = true} : vector<16x1xf32> -> vector<16x1xf32>
    %238 = vector.broadcast %220 : vector<1x32xf32> to vector<16x32xf32>
    %239 = arith.mulf %238, %228 : vector<16x32xf32>
    %240 = vector.broadcast %237 : vector<16x1xf32> to vector<16x32xf32>
    %241 = arith.mulf %239, %240 : vector<16x32xf32>
    %242 = vector.broadcast %222 : vector<1x32xf32> to vector<16x32xf32>
    %243 = arith.addf %241, %242 : vector<16x32xf32>
    %c1_124 = arith.constant 1 : index
    %c0_125 = arith.constant 0 : index
    %c0_126 = arith.constant 0 : index
    %244 = vector.load %arg4[%c1_124, %c0_125, %c0_126] : memref<2x32x96xbf16, #tpu.memory_space<vmem>>, vector<1x32x96xbf16>
    %245 = vector.shape_cast %244 : vector<1x32x96xbf16> to vector<32x96xbf16>
    %246 = arith.truncf %243 : vector<16x32xf32> to vector<16x32xbf16>
    %cst_127 = arith.constant dense<0.000000e+00> : vector<16x96xf32>
    %247 = tpu.matmul %246, %245, %cst_127 {dimension_numbers = #tpu.dot_dimension_numbers<[1], [0], [0], [1], [0, 0, 1, 1], [], []>} : vector<16x32xbf16>, vector<32x96xbf16>, vector<16x96xf32> -> vector<16x96xf32>
    %c1_128 = arith.constant 1 : index
    %c0_129 = arith.constant 0 : index
    %c0_130 = arith.constant 0 : index
    %248 = vector.load %arg8[%c1_128, %c0_129, %c0_130] : memref<2x1x96xf32, #tpu.memory_space<vmem>>, vector<1x1x96xf32>
    %249 = vector.shape_cast %248 : vector<1x1x96xf32> to vector<1x96xf32>
    %250 = vector.broadcast %249 : vector<1x96xf32> to vector<16x96xf32>
    %251 = arith.addf %247, %250 : vector<16x96xf32>
    %252 = arith.truncf %251 : vector<16x96xf32> to vector<16x96xbf16>
    %253 = vector.shape_cast %252 : vector<16x96xbf16> to vector<2x8x96xbf16>
    %254 = vector.extract_strided_slice %253 {offsets = [0, 0, 0], sizes = [2, 8, 8], strides = [1, 1, 1]} : vector<2x8x96xbf16> to vector<2x8x8xbf16>
    %255 = vector.extract_strided_slice %253 {offsets = [0, 0, 8], sizes = [2, 8, 8], strides = [1, 1, 1]} : vector<2x8x96xbf16> to vector<2x8x8xbf16>
    %256 = vector.extract_strided_slice %253 {offsets = [0, 0, 16], sizes = [2, 8, 8], strides = [1, 1, 1]} : vector<2x8x96xbf16> to vector<2x8x8xbf16>
    %257 = vector.extract_strided_slice %253 {offsets = [0, 0, 24], sizes = [2, 8, 8], strides = [1, 1, 1]} : vector<2x8x96xbf16> to vector<2x8x8xbf16>
    %258 = tpu.concatenate %254, %255, %256, %257 in 0 : vector<2x8x8xbf16>, vector<2x8x8xbf16>, vector<2x8x8xbf16>, vector<2x8x8xbf16> -> vector<8x8x8xbf16>
    %259 = vector.extract_strided_slice %253 {offsets = [0, 0, 32], sizes = [2, 8, 8], strides = [1, 1, 1]} : vector<2x8x96xbf16> to vector<2x8x8xbf16>
    %260 = vector.extract_strided_slice %253 {offsets = [0, 0, 40], sizes = [2, 8, 8], strides = [1, 1, 1]} : vector<2x8x96xbf16> to vector<2x8x8xbf16>
    %261 = vector.extract_strided_slice %253 {offsets = [0, 0, 48], sizes = [2, 8, 8], strides = [1, 1, 1]} : vector<2x8x96xbf16> to vector<2x8x8xbf16>
    %262 = vector.extract_strided_slice %253 {offsets = [0, 0, 56], sizes = [2, 8, 8], strides = [1, 1, 1]} : vector<2x8x96xbf16> to vector<2x8x8xbf16>
    %263 = tpu.concatenate %259, %260, %261, %262 in 0 : vector<2x8x8xbf16>, vector<2x8x8xbf16>, vector<2x8x8xbf16>, vector<2x8x8xbf16> -> vector<8x8x8xbf16>
    %264 = vector.extract_strided_slice %253 {offsets = [0, 0, 64], sizes = [2, 8, 8], strides = [1, 1, 1]} : vector<2x8x96xbf16> to vector<2x8x8xbf16>
    %265 = vector.extract_strided_slice %253 {offsets = [0, 0, 72], sizes = [2, 8, 8], strides = [1, 1, 1]} : vector<2x8x96xbf16> to vector<2x8x8xbf16>
    %266 = vector.extract_strided_slice %253 {offsets = [0, 0, 80], sizes = [2, 8, 8], strides = [1, 1, 1]} : vector<2x8x96xbf16> to vector<2x8x8xbf16>
    %267 = vector.extract_strided_slice %253 {offsets = [0, 0, 88], sizes = [2, 8, 8], strides = [1, 1, 1]} : vector<2x8x96xbf16> to vector<2x8x8xbf16>
    %268 = tpu.concatenate %264, %265, %266, %267 in 0 : vector<2x8x8xbf16>, vector<2x8x8xbf16>, vector<2x8x8xbf16>, vector<2x8x8xbf16> -> vector<8x8x8xbf16>
    "tpu.trace_start"() <{level = 10 : i32, message = "bqd,bkd->bqk"}> : () -> ()
    %cst_131 = arith.constant dense<0.000000e+00> : vector<8x8x8xf32>
    %269 = tpu.matmul %258, %263, %cst_131 {dimension_numbers = #tpu.dot_dimension_numbers<[2], [2], [1], [1], [0, 0, 0, 1, 1, 1], [0], [0]>} : vector<8x8x8xbf16>, vector<8x8x8xbf16>, vector<8x8x8xf32> -> vector<8x8x8xf32>
    "tpu.trace_stop"() : () -> ()
    %270 = arith.addf %269, %4 : vector<8x8x8xf32>
    %cst_132 = arith.constant dense<0xFF800000> : vector<8x8xf32>
    %271 = vector.multi_reduction <maximumf>, %270, %cst_132 [2] : vector<8x8x8xf32> to vector<8x8xf32>
    %272 = vector.shape_cast %271 : vector<8x8xf32> to vector<8x8x1xf32>
    %273 = vector.broadcast %272 : vector<8x8x1xf32> to vector<8x8x8xf32>
    %274 = arith.subf %270, %273 : vector<8x8x8xf32>
    %275 = math.exp %274 : vector<8x8x8xf32>
    %cst_133 = arith.constant dense<0.000000e+00> : vector<8x8xf32>
    %276 = vector.multi_reduction <add>, %275, %cst_133 [2] : vector<8x8x8xf32> to vector<8x8xf32>
    %277 = vector.shape_cast %276 : vector<8x8xf32> to vector<8x8x1xf32>
    %278 = tpu.reciprocal %277 {approx = true} : vector<8x8x1xf32> -> vector<8x8x1xf32>
    %279 = vector.broadcast %278 : vector<8x8x1xf32> to vector<8x8x8xf32>
    %280 = arith.mulf %275, %279 : vector<8x8x8xf32>
    %281 = arith.truncf %280 : vector<8x8x8xf32> to vector<8x8x8xbf16>
    "tpu.trace_start"() <{level = 10 : i32, message = "bqk,bkd->bqd"}> : () -> ()
    %cst_134 = arith.constant dense<0.000000e+00> : vector<8x8x8xf32>
    %282 = tpu.matmul %281, %268, %cst_134 {dimension_numbers = #tpu.dot_dimension_numbers<[2], [1], [1], [2], [0, 0, 0, 1, 1, 2], [0], [0]>} : vector<8x8x8xbf16>, vector<8x8x8xbf16>, vector<8x8x8xf32> -> vector<8x8x8xf32>
    "tpu.trace_stop"() : () -> ()
    %283 = vector.extract_strided_slice %282 {offsets = [0, 0, 0], sizes = [2, 8, 8], strides = [1, 1, 1]} : vector<8x8x8xf32> to vector<2x8x8xf32>
    %284 = vector.extract_strided_slice %282 {offsets = [2, 0, 0], sizes = [2, 8, 8], strides = [1, 1, 1]} : vector<8x8x8xf32> to vector<2x8x8xf32>
    %285 = vector.extract_strided_slice %282 {offsets = [4, 0, 0], sizes = [2, 8, 8], strides = [1, 1, 1]} : vector<8x8x8xf32> to vector<2x8x8xf32>
    %286 = vector.extract_strided_slice %282 {offsets = [6, 0, 0], sizes = [2, 8, 8], strides = [1, 1, 1]} : vector<8x8x8xf32> to vector<2x8x8xf32>
    %287 = tpu.concatenate %283, %284, %285, %286 in 2 : vector<2x8x8xf32>, vector<2x8x8xf32>, vector<2x8x8xf32>, vector<2x8x8xf32> -> vector<2x8x32xf32>
    %288 = vector.shape_cast %287 : vector<2x8x32xf32> to vector<16x32xf32>
    %c1_135 = arith.constant 1 : index
    %c0_136 = arith.constant 0 : index
    %c0_137 = arith.constant 0 : index
    %c0_138 = arith.constant 0 : index
    %289 = vector.load %arg5[%c1_135, %c0_136, %c0_137, %c0_138] : memref<2x3x32x32xbf16, #tpu.memory_space<vmem>>, vector<1x1x32x32xbf16>
    %290 = vector.shape_cast %289 : vector<1x1x32x32xbf16> to vector<32x32xbf16>
    %291 = arith.truncf %288 : vector<16x32xf32> to vector<16x32xbf16>
    %cst_139 = arith.constant dense<0.000000e+00> : vector<16x32xf32>
    %292 = tpu.matmul %291, %290, %cst_139 {dimension_numbers = #tpu.dot_dimension_numbers<[1], [0], [0], [1], [0, 0, 1, 1], [], []>} : vector<16x32xbf16>, vector<32x32xbf16>, vector<16x32xf32> -> vector<16x32xf32>
    %293 = arith.addf %218, %292 : vector<16x32xf32>
    %c1_140 = arith.constant 1 : index
    %c0_141 = arith.constant 0 : index
    %c0_142 = arith.constant 0 : index
    %c0_143 = arith.constant 0 : index
    %294 = vector.load %arg10[%c1_140, %c0_141, %c0_142, %c0_143] : memref<2x4x1x32xf32, #tpu.memory_space<vmem>>, vector<1x1x1x32xf32>
    %295 = vector.shape_cast %294 : vector<1x1x1x32xf32> to vector<1x32xf32>
    %296 = vector.broadcast %295 : vector<1x32xf32> to vector<16x32xf32>
    %297 = arith.addf %293, %296 : vector<16x32xf32>
    %c1_144 = arith.constant 1 : index
    %c2_145 = arith.constant 2 : index
    %c0_146 = arith.constant 0 : index
    %c0_147 = arith.constant 0 : index
    %298 = vector.load %arg11[%c1_144, %c2_145, %c0_146, %c0_147] : memref<2x6x1x32xf32, #tpu.memory_space<vmem>>, vector<1x1x1x32xf32>
    %299 = vector.shape_cast %298 : vector<1x1x1x32xf32> to vector<1x32xf32>
    %c1_148 = arith.constant 1 : index
    %c3_149 = arith.constant 3 : index
    %c0_150 = arith.constant 0 : index
    %c0_151 = arith.constant 0 : index
    %300 = vector.load %arg11[%c1_148, %c3_149, %c0_150, %c0_151] : memref<2x6x1x32xf32, #tpu.memory_space<vmem>>, vector<1x1x1x32xf32>
    %301 = vector.shape_cast %300 : vector<1x1x1x32xf32> to vector<1x32xf32>
    %cst_152 = arith.constant dense<0.000000e+00> : vector<16xf32>
    %302 = vector.multi_reduction <add>, %297, %cst_152 [1] : vector<16x32xf32> to vector<16xf32>
    %303 = vector.shape_cast %302 : vector<16xf32> to vector<16x1xf32>
    %cst_153 = arith.constant 3.200000e+01 : f32
    %304 = vector.broadcast %cst_153 : f32 to vector<16x1xf32>
    %305 = arith.divf %303, %304 : vector<16x1xf32>
    %306 = vector.broadcast %305 : vector<16x1xf32> to vector<16x32xf32>
    %307 = arith.subf %297, %306 : vector<16x32xf32>
    %308 = arith.mulf %307, %307 : vector<16x32xf32>
    %cst_154 = arith.constant dense<0.000000e+00> : vector<16xf32>
    %309 = vector.multi_reduction <add>, %308, %cst_154 [1] : vector<16x32xf32> to vector<16xf32>
    %310 = vector.shape_cast %309 : vector<16xf32> to vector<16x1xf32>
    %cst_155 = arith.constant 3.100000e+01 : f32
    %311 = vector.broadcast %cst_155 : f32 to vector<16x1xf32>
    %312 = arith.divf %310, %311 : vector<16x1xf32>
    %313 = math.sqrt %312 : vector<16x1xf32>
    %cst_156 = arith.constant 9.99999997E-7 : f32
    %314 = vector.broadcast %cst_156 : f32 to vector<16x1xf32>
    %315 = arith.addf %313, %314 : vector<16x1xf32>
    %316 = tpu.reciprocal %315 {approx = true} : vector<16x1xf32> -> vector<16x1xf32>
    %317 = vector.broadcast %299 : vector<1x32xf32> to vector<16x32xf32>
    %318 = arith.mulf %317, %307 : vector<16x32xf32>
    %319 = vector.broadcast %316 : vector<16x1xf32> to vector<16x32xf32>
    %320 = arith.mulf %318, %319 : vector<16x32xf32>
    %321 = vector.broadcast %301 : vector<1x32xf32> to vector<16x32xf32>
    %322 = arith.addf %320, %321 : vector<16x32xf32>
    %c1_157 = arith.constant 1 : index
    %c1_158 = arith.constant 1 : index
    %c0_159 = arith.constant 0 : index
    %c0_160 = arith.constant 0 : index
    %323 = vector.load %arg5[%c1_157, %c1_158, %c0_159, %c0_160] : memref<2x3x32x32xbf16, #tpu.memory_space<vmem>>, vector<1x1x32x32xbf16>
    %324 = vector.shape_cast %323 : vector<1x1x32x32xbf16> to vector<32x32xbf16>
    %325 = arith.truncf %322 : vector<16x32xf32> to vector<16x32xbf16>
    %cst_161 = arith.constant dense<0.000000e+00> : vector<16x32xf32>
    %326 = tpu.matmul %325, %324, %cst_161 {dimension_numbers = #tpu.dot_dimension_numbers<[1], [0], [0], [1], [0, 0, 1, 1], [], []>} : vector<16x32xbf16>, vector<32x32xbf16>, vector<16x32xf32> -> vector<16x32xf32>
    %c1_162 = arith.constant 1 : index
    %c1_163 = arith.constant 1 : index
    %c0_164 = arith.constant 0 : index
    %c0_165 = arith.constant 0 : index
    %327 = vector.load %arg10[%c1_162, %c1_163, %c0_164, %c0_165] : memref<2x4x1x32xf32, #tpu.memory_space<vmem>>, vector<1x1x1x32xf32>
    %328 = vector.shape_cast %327 : vector<1x1x1x32xf32> to vector<1x32xf32>
    %329 = vector.broadcast %328 : vector<1x32xf32> to vector<16x32xf32>
    %330 = arith.addf %326, %329 : vector<16x32xf32>
    %c1_166 = arith.constant 1 : index
    %c0_167 = arith.constant 0 : index
    %c0_168 = arith.constant 0 : index
    %c0_169 = arith.constant 0 : index
    %331 = vector.load %arg6[%c1_166, %c0_167, %c0_168, %c0_169] : memref<2x2x32x64xbf16, #tpu.memory_space<vmem>>, vector<1x1x32x64xbf16>
    %332 = vector.shape_cast %331 : vector<1x1x32x64xbf16> to vector<32x64xbf16>
    %cst_170 = arith.constant dense<0.000000e+00> : vector<16x64xf32>
    %333 = tpu.matmul %2, %332, %cst_170 {dimension_numbers = #tpu.dot_dimension_numbers<[1], [0], [0], [1], [0, 0, 1, 1], [], []>} : vector<16x32xbf16>, vector<32x64xbf16>, vector<16x64xf32> -> vector<16x64xf32>
    %c1_171 = arith.constant 1 : index
    %c0_172 = arith.constant 0 : index
    %c0_173 = arith.constant 0 : index
    %c0_174 = arith.constant 0 : index
    %334 = vector.load %arg9[%c1_171, %c0_172, %c0_173, %c0_174] : memref<2x2x1x64xf32, #tpu.memory_space<vmem>>, vector<1x1x1x64xf32>
    %335 = vector.shape_cast %334 : vector<1x1x1x64xf32> to vector<1x64xf32>
    %336 = vector.broadcast %335 : vector<1x64xf32> to vector<16x64xf32>
    %337 = arith.addf %333, %336 : vector<16x64xf32>
    %338 = arith.truncf %330 : vector<16x32xf32> to vector<16x32xbf16>
    %339 = vector.shape_cast %338 : vector<16x32xbf16> to vector<2x8x32xbf16>
    %340 = arith.truncf %337 : vector<16x64xf32> to vector<16x64xbf16>
    %341 = vector.shape_cast %340 : vector<16x64xbf16> to vector<2x8x64xbf16>
    %342 = vector.extract_strided_slice %339 {offsets = [0, 0, 0], sizes = [2, 8, 8], strides = [1, 1, 1]} : vector<2x8x32xbf16> to vector<2x8x8xbf16>
    %343 = vector.extract_strided_slice %339 {offsets = [0, 0, 8], sizes = [2, 8, 8], strides = [1, 1, 1]} : vector<2x8x32xbf16> to vector<2x8x8xbf16>
    %344 = vector.extract_strided_slice %339 {offsets = [0, 0, 16], sizes = [2, 8, 8], strides = [1, 1, 1]} : vector<2x8x32xbf16> to vector<2x8x8xbf16>
    %345 = vector.extract_strided_slice %339 {offsets = [0, 0, 24], sizes = [2, 8, 8], strides = [1, 1, 1]} : vector<2x8x32xbf16> to vector<2x8x8xbf16>
    %346 = tpu.concatenate %342, %343, %344, %345 in 0 : vector<2x8x8xbf16>, vector<2x8x8xbf16>, vector<2x8x8xbf16>, vector<2x8x8xbf16> -> vector<8x8x8xbf16>
    %347 = vector.extract_strided_slice %341 {offsets = [0, 0, 0], sizes = [2, 8, 8], strides = [1, 1, 1]} : vector<2x8x64xbf16> to vector<2x8x8xbf16>
    %348 = vector.extract_strided_slice %341 {offsets = [0, 0, 8], sizes = [2, 8, 8], strides = [1, 1, 1]} : vector<2x8x64xbf16> to vector<2x8x8xbf16>
    %349 = vector.extract_strided_slice %341 {offsets = [0, 0, 16], sizes = [2, 8, 8], strides = [1, 1, 1]} : vector<2x8x64xbf16> to vector<2x8x8xbf16>
    %350 = vector.extract_strided_slice %341 {offsets = [0, 0, 24], sizes = [2, 8, 8], strides = [1, 1, 1]} : vector<2x8x64xbf16> to vector<2x8x8xbf16>
    %351 = tpu.concatenate %347, %348, %349, %350 in 0 : vector<2x8x8xbf16>, vector<2x8x8xbf16>, vector<2x8x8xbf16>, vector<2x8x8xbf16> -> vector<8x8x8xbf16>
    %352 = vector.extract_strided_slice %341 {offsets = [0, 0, 32], sizes = [2, 8, 8], strides = [1, 1, 1]} : vector<2x8x64xbf16> to vector<2x8x8xbf16>
    %353 = vector.extract_strided_slice %341 {offsets = [0, 0, 40], sizes = [2, 8, 8], strides = [1, 1, 1]} : vector<2x8x64xbf16> to vector<2x8x8xbf16>
    %354 = vector.extract_strided_slice %341 {offsets = [0, 0, 48], sizes = [2, 8, 8], strides = [1, 1, 1]} : vector<2x8x64xbf16> to vector<2x8x8xbf16>
    %355 = vector.extract_strided_slice %341 {offsets = [0, 0, 56], sizes = [2, 8, 8], strides = [1, 1, 1]} : vector<2x8x64xbf16> to vector<2x8x8xbf16>
    %356 = tpu.concatenate %352, %353, %354, %355 in 0 : vector<2x8x8xbf16>, vector<2x8x8xbf16>, vector<2x8x8xbf16>, vector<2x8x8xbf16> -> vector<8x8x8xbf16>
    "tpu.trace_start"() <{level = 10 : i32, message = "bqd,bkd->bqk"}> : () -> ()
    %cst_175 = arith.constant dense<0.000000e+00> : vector<8x8x8xf32>
    %357 = tpu.matmul %346, %351, %cst_175 {dimension_numbers = #tpu.dot_dimension_numbers<[2], [2], [1], [1], [0, 0, 0, 1, 1, 1], [0], [0]>} : vector<8x8x8xbf16>, vector<8x8x8xbf16>, vector<8x8x8xf32> -> vector<8x8x8xf32>
    "tpu.trace_stop"() : () -> ()
    %358 = vector.broadcast %6 : vector<8x1x8xf32> to vector<8x8x8xf32>
    %359 = arith.addf %357, %358 : vector<8x8x8xf32>
    %cst_176 = arith.constant dense<0xFF800000> : vector<8x8xf32>
    %360 = vector.multi_reduction <maximumf>, %359, %cst_176 [2] : vector<8x8x8xf32> to vector<8x8xf32>
    %361 = vector.shape_cast %360 : vector<8x8xf32> to vector<8x8x1xf32>
    %362 = vector.broadcast %361 : vector<8x8x1xf32> to vector<8x8x8xf32>
    %363 = arith.subf %359, %362 : vector<8x8x8xf32>
    %364 = math.exp %363 : vector<8x8x8xf32>
    %cst_177 = arith.constant dense<0.000000e+00> : vector<8x8xf32>
    %365 = vector.multi_reduction <add>, %364, %cst_177 [2] : vector<8x8x8xf32> to vector<8x8xf32>
    %366 = vector.shape_cast %365 : vector<8x8xf32> to vector<8x8x1xf32>
    %367 = tpu.reciprocal %366 {approx = true} : vector<8x8x1xf32> -> vector<8x8x1xf32>
    %368 = vector.broadcast %367 : vector<8x8x1xf32> to vector<8x8x8xf32>
    %369 = arith.mulf %364, %368 : vector<8x8x8xf32>
    %370 = arith.truncf %369 : vector<8x8x8xf32> to vector<8x8x8xbf16>
    "tpu.trace_start"() <{level = 10 : i32, message = "bqk,bkd->bqd"}> : () -> ()
    %cst_178 = arith.constant dense<0.000000e+00> : vector<8x8x8xf32>
    %371 = tpu.matmul %370, %356, %cst_178 {dimension_numbers = #tpu.dot_dimension_numbers<[2], [1], [1], [2], [0, 0, 0, 1, 1, 2], [0], [0]>} : vector<8x8x8xbf16>, vector<8x8x8xbf16>, vector<8x8x8xf32> -> vector<8x8x8xf32>
    "tpu.trace_stop"() : () -> ()
    %372 = vector.extract_strided_slice %371 {offsets = [0, 0, 0], sizes = [2, 8, 8], strides = [1, 1, 1]} : vector<8x8x8xf32> to vector<2x8x8xf32>
    %373 = vector.extract_strided_slice %371 {offsets = [2, 0, 0], sizes = [2, 8, 8], strides = [1, 1, 1]} : vector<8x8x8xf32> to vector<2x8x8xf32>
    %374 = vector.extract_strided_slice %371 {offsets = [4, 0, 0], sizes = [2, 8, 8], strides = [1, 1, 1]} : vector<8x8x8xf32> to vector<2x8x8xf32>
    %375 = vector.extract_strided_slice %371 {offsets = [6, 0, 0], sizes = [2, 8, 8], strides = [1, 1, 1]} : vector<8x8x8xf32> to vector<2x8x8xf32>
    %376 = tpu.concatenate %372, %373, %374, %375 in 2 : vector<2x8x8xf32>, vector<2x8x8xf32>, vector<2x8x8xf32>, vector<2x8x8xf32> -> vector<2x8x32xf32>
    %377 = vector.shape_cast %376 : vector<2x8x32xf32> to vector<16x32xf32>
    %c1_179 = arith.constant 1 : index
    %c2_180 = arith.constant 2 : index
    %c0_181 = arith.constant 0 : index
    %c0_182 = arith.constant 0 : index
    %378 = vector.load %arg5[%c1_179, %c2_180, %c0_181, %c0_182] : memref<2x3x32x32xbf16, #tpu.memory_space<vmem>>, vector<1x1x32x32xbf16>
    %379 = vector.shape_cast %378 : vector<1x1x32x32xbf16> to vector<32x32xbf16>
    %380 = arith.truncf %377 : vector<16x32xf32> to vector<16x32xbf16>
    %cst_183 = arith.constant dense<0.000000e+00> : vector<16x32xf32>
    %381 = tpu.matmul %380, %379, %cst_183 {dimension_numbers = #tpu.dot_dimension_numbers<[1], [0], [0], [1], [0, 0, 1, 1], [], []>} : vector<16x32xbf16>, vector<32x32xbf16>, vector<16x32xf32> -> vector<16x32xf32>
    %382 = arith.addf %297, %381 : vector<16x32xf32>
    %c1_184 = arith.constant 1 : index
    %c2_185 = arith.constant 2 : index
    %c0_186 = arith.constant 0 : index
    %c0_187 = arith.constant 0 : index
    %383 = vector.load %arg10[%c1_184, %c2_185, %c0_186, %c0_187] : memref<2x4x1x32xf32, #tpu.memory_space<vmem>>, vector<1x1x1x32xf32>
    %384 = vector.shape_cast %383 : vector<1x1x1x32xf32> to vector<1x32xf32>
    %385 = vector.broadcast %384 : vector<1x32xf32> to vector<16x32xf32>
    %386 = arith.addf %382, %385 : vector<16x32xf32>
    %c1_188 = arith.constant 1 : index
    %c4_189 = arith.constant 4 : index
    %c0_190 = arith.constant 0 : index
    %c0_191 = arith.constant 0 : index
    %387 = vector.load %arg11[%c1_188, %c4_189, %c0_190, %c0_191] : memref<2x6x1x32xf32, #tpu.memory_space<vmem>>, vector<1x1x1x32xf32>
    %388 = vector.shape_cast %387 : vector<1x1x1x32xf32> to vector<1x32xf32>
    %c1_192 = arith.constant 1 : index
    %c5_193 = arith.constant 5 : index
    %c0_194 = arith.constant 0 : index
    %c0_195 = arith.constant 0 : index
    %389 = vector.load %arg11[%c1_192, %c5_193, %c0_194, %c0_195] : memref<2x6x1x32xf32, #tpu.memory_space<vmem>>, vector<1x1x1x32xf32>
    %390 = vector.shape_cast %389 : vector<1x1x1x32xf32> to vector<1x32xf32>
    %cst_196 = arith.constant dense<0.000000e+00> : vector<16xf32>
    %391 = vector.multi_reduction <add>, %386, %cst_196 [1] : vector<16x32xf32> to vector<16xf32>
    %392 = vector.shape_cast %391 : vector<16xf32> to vector<16x1xf32>
    %cst_197 = arith.constant 3.200000e+01 : f32
    %393 = vector.broadcast %cst_197 : f32 to vector<16x1xf32>
    %394 = arith.divf %392, %393 : vector<16x1xf32>
    %395 = vector.broadcast %394 : vector<16x1xf32> to vector<16x32xf32>
    %396 = arith.subf %386, %395 : vector<16x32xf32>
    %397 = arith.mulf %396, %396 : vector<16x32xf32>
    %cst_198 = arith.constant dense<0.000000e+00> : vector<16xf32>
    %398 = vector.multi_reduction <add>, %397, %cst_198 [1] : vector<16x32xf32> to vector<16xf32>
    %399 = vector.shape_cast %398 : vector<16xf32> to vector<16x1xf32>
    %cst_199 = arith.constant 3.100000e+01 : f32
    %400 = vector.broadcast %cst_199 : f32 to vector<16x1xf32>
    %401 = arith.divf %399, %400 : vector<16x1xf32>
    %402 = math.sqrt %401 : vector<16x1xf32>
    %cst_200 = arith.constant 9.99999997E-7 : f32
    %403 = vector.broadcast %cst_200 : f32 to vector<16x1xf32>
    %404 = arith.addf %402, %403 : vector<16x1xf32>
    %405 = tpu.reciprocal %404 {approx = true} : vector<16x1xf32> -> vector<16x1xf32>
    %406 = vector.broadcast %388 : vector<1x32xf32> to vector<16x32xf32>
    %407 = arith.mulf %406, %396 : vector<16x32xf32>
    %408 = vector.broadcast %405 : vector<16x1xf32> to vector<16x32xf32>
    %409 = arith.mulf %407, %408 : vector<16x32xf32>
    %410 = vector.broadcast %390 : vector<1x32xf32> to vector<16x32xf32>
    %411 = arith.addf %409, %410 : vector<16x32xf32>
    %c1_201 = arith.constant 1 : index
    %c1_202 = arith.constant 1 : index
    %c0_203 = arith.constant 0 : index
    %c0_204 = arith.constant 0 : index
    %412 = vector.load %arg6[%c1_201, %c1_202, %c0_203, %c0_204] : memref<2x2x32x64xbf16, #tpu.memory_space<vmem>>, vector<1x1x32x64xbf16>
    %413 = vector.shape_cast %412 : vector<1x1x32x64xbf16> to vector<32x64xbf16>
    %414 = arith.truncf %411 : vector<16x32xf32> to vector<16x32xbf16>
    %cst_205 = arith.constant dense<0.000000e+00> : vector<16x64xf32>
    %415 = tpu.matmul %414, %413, %cst_205 {dimension_numbers = #tpu.dot_dimension_numbers<[1], [0], [0], [1], [0, 0, 1, 1], [], []>} : vector<16x32xbf16>, vector<32x64xbf16>, vector<16x64xf32> -> vector<16x64xf32>
    %c1_206 = arith.constant 1 : index
    %c1_207 = arith.constant 1 : index
    %c0_208 = arith.constant 0 : index
    %c0_209 = arith.constant 0 : index
    %416 = vector.load %arg9[%c1_206, %c1_207, %c0_208, %c0_209] : memref<2x2x1x64xf32, #tpu.memory_space<vmem>>, vector<1x1x1x64xf32>
    %417 = vector.shape_cast %416 : vector<1x1x1x64xf32> to vector<1x64xf32>
    %418 = vector.broadcast %417 : vector<1x64xf32> to vector<16x64xf32>
    %419 = arith.addf %415, %418 : vector<16x64xf32>
    %cst_210 = arith.constant 0.000000e+00 : f32
    %420 = vector.broadcast %cst_210 : f32 to vector<16x64xf32>
    %421 = arith.maximumf %419, %420 : vector<16x64xf32>
    %c1_211 = arith.constant 1 : index
    %c0_212 = arith.constant 0 : index
    %c0_213 = arith.constant 0 : index
    %422 = vector.load %arg7[%c1_211, %c0_212, %c0_213] : memref<2x64x32xbf16, #tpu.memory_space<vmem>>, vector<1x64x32xbf16>
    %423 = vector.shape_cast %422 : vector<1x64x32xbf16> to vector<64x32xbf16>
    %424 = arith.truncf %421 : vector<16x64xf32> to vector<16x64xbf16>
    %cst_214 = arith.constant dense<0.000000e+00> : vector<16x32xf32>
    %425 = tpu.matmul %424, %423, %cst_214 {dimension_numbers = #tpu.dot_dimension_numbers<[1], [0], [0], [1], [0, 0, 1, 1], [], []>} : vector<16x64xbf16>, vector<64x32xbf16>, vector<16x32xf32> -> vector<16x32xf32>
    %426 = arith.addf %386, %425 : vector<16x32xf32>
    %c1_215 = arith.constant 1 : index
    %c3_216 = arith.constant 3 : index
    %c0_217 = arith.constant 0 : index
    %c0_218 = arith.constant 0 : index
    %427 = vector.load %arg10[%c1_215, %c3_216, %c0_217, %c0_218] : memref<2x4x1x32xf32, #tpu.memory_space<vmem>>, vector<1x1x1x32xf32>
    %428 = vector.shape_cast %427 : vector<1x1x1x32xf32> to vector<1x32xf32>
    %429 = vector.broadcast %428 : vector<1x32xf32> to vector<16x32xf32>
    %430 = arith.addf %426, %429 : vector<16x32xf32>
    %c0_219 = arith.constant 0 : index
    %c0_220 = arith.constant 0 : index
    %c0_221 = arith.constant 0 : index
    %431 = vector.load %arg12[%c0_219, %c0_220, %c0_221] : memref<2x1x32xf32, #tpu.memory_space<vmem>>, vector<1x1x32xf32>
    %432 = vector.shape_cast %431 : vector<1x1x32xf32> to vector<1x32xf32>
    %c1_222 = arith.constant 1 : index
    %c0_223 = arith.constant 0 : index
    %c0_224 = arith.constant 0 : index
    %433 = vector.load %arg12[%c1_222, %c0_223, %c0_224] : memref<2x1x32xf32, #tpu.memory_space<vmem>>, vector<1x1x32xf32>
    %434 = vector.shape_cast %433 : vector<1x1x32xf32> to vector<1x32xf32>
    %cst_225 = arith.constant dense<0.000000e+00> : vector<16xf32>
    %435 = vector.multi_reduction <add>, %430, %cst_225 [1] : vector<16x32xf32> to vector<16xf32>
    %436 = vector.shape_cast %435 : vector<16xf32> to vector<16x1xf32>
    %cst_226 = arith.constant 3.200000e+01 : f32
    %437 = vector.broadcast %cst_226 : f32 to vector<16x1xf32>
    %438 = arith.divf %436, %437 : vector<16x1xf32>
    %439 = vector.broadcast %438 : vector<16x1xf32> to vector<16x32xf32>
    %440 = arith.subf %430, %439 : vector<16x32xf32>
    %441 = arith.mulf %440, %440 : vector<16x32xf32>
    %cst_227 = arith.constant dense<0.000000e+00> : vector<16xf32>
    %442 = vector.multi_reduction <add>, %441, %cst_227 [1] : vector<16x32xf32> to vector<16xf32>
    %443 = vector.shape_cast %442 : vector<16xf32> to vector<16x1xf32>
    %cst_228 = arith.constant 3.100000e+01 : f32
    %444 = vector.broadcast %cst_228 : f32 to vector<16x1xf32>
    %445 = arith.divf %443, %444 : vector<16x1xf32>
    %446 = math.sqrt %445 : vector<16x1xf32>
    %cst_229 = arith.constant 9.99999997E-7 : f32
    %447 = vector.broadcast %cst_229 : f32 to vector<16x1xf32>
    %448 = arith.addf %446, %447 : vector<16x1xf32>
    %449 = tpu.reciprocal %448 {approx = true} : vector<16x1xf32> -> vector<16x1xf32>
    %450 = vector.broadcast %432 : vector<1x32xf32> to vector<16x32xf32>
    %451 = arith.mulf %450, %440 : vector<16x32xf32>
    %452 = vector.broadcast %449 : vector<16x1xf32> to vector<16x32xf32>
    %453 = arith.mulf %451, %452 : vector<16x32xf32>
    %454 = vector.broadcast %434 : vector<1x32xf32> to vector<16x32xf32>
    %455 = arith.addf %453, %454 : vector<16x32xf32>
    %c0_230 = arith.constant 0 : index
    %c0_231 = arith.constant 0 : index
    %456 = vector.load %arg13[%c0_230, %c0_231] : memref<16x32xf32, #tpu.memory_space<vmem>>, vector<16x32xf32>
    tpu.vector_store %arg13[%c0_230, %c0_231], %455 {strides = array<i32>} : memref<16x32xf32, #tpu.memory_space<vmem>>, vector<16x32xf32>,
    return
  }
}

</mosaic_0001>

<bundles_post_ra>
// kernel: decoder_forward.1
= control target key start
LH: loop header
LB: loop body
LE: loop exit
PB: predicated region body
PF: predicated region fallthrough
CT: control target
= control target key end

     0   :  { %18 = vsyncpa [#allocation3], 0  ;;  %s8072_s0 = inlined_call_operand.hbm [shape: f32[16,32], index: 0, kind: input, shape index: {}]   ;;  %s8073_s1 = inlined_call_operand.vmem [shape: f32[16,32], index: 1, kind: input, shape index: {}]   ;;  %s8074_s2 = inlined_call_operand.vmem [shape: f32[2,8,8], index: 2, kind: input, shape index: {}]   ;;  %s8075_s3 = inlined_call_operand.vmem [shape: f32[2,1,8], index: 3, kind: input, shape index: {}]   ;;  %s8076_s4 = inlined_call_operand.hbm [shape: bf16[2,32,96], index: 4, kind: input, shape index: {}]   ;;  %s8077_s5 = inlined_call_operand.vmem [shape: bf16[2,3,32,32], index: 5, kind: input, shape index: {}]   ;;  %s8078_s6 = inlined_call_operand.vmem [shape: bf16[2,2,32,64], index: 6, kind: input, shape index: {}]   ;;  %s8079_s7 = inlined_call_operand.vmem [shape: bf16[2,64,32], index: 7, kind: input, shape index: {}]   ;;  %s8080_s8 = inlined_call_operand.hbm [shape: f32[2,1,96], index: 8, kind: input, shape index: {}]   ;;  %s8081_s9 = inlined_call_operand.hbm [shape: f32[2,2,1,64], index: 9, kind: input, shape index: {}]   ;;  %s8082_s10 = inlined_call_operand.hbm [shape: f32[2,4,1,32], index: 10, kind: input, shape index: {}]   ;;  %s8083_s11 = inlined_call_operand.hbm [shape: f32[2,6,1,32], index: 11, kind: input, shape index: {}]   ;;  %s8084_s12 = inlined_call_operand.hbm [shape: f32[2,1,32], index: 12, kind: input, shape index: {}]   ;;  %s8085_s13 = inlined_call_operand.hbm [shape: f32[16,32], index: 13, kind: output, shape index: {}]  }
   0x1   :  { %19 = vsyncpa [#allocation6], 0 }
   0x2   :  { %20 = vsyncpa [#allocation9], 0 }
   0x3   :  { %21 = vsyncpa [#allocation12], 0 }
   0x4   :  { %22 = vsyncpa [#allocation4], 0  ;;  %s6731_s25 = smov [#allocation5]   ;;  %s6545_s29 = scalar_lea.hbm %s8076_s4, 512 }
   0x5   :  { %s46_s26 = sshll.u32 %s6731_s25, 4  ;;  %p6546_p0 = scmp.ne.s32.totalorder %s8076_s4, %s6545_s29  ;;  %s47_s26 = int_to_ptr.vmem [resolvable:$true] %s46_s26 }
   0x6   :  { %p6549_p1 = scmp.lt.u32.totalorder %s6545_s29, %s8076_s4 }
   0x8   :  { %p6551_p2 = pnand %p6549_p1, %p6546_p0 }
   0xa   :  { %6554 = shalt.err (!%p6551_p2)
}
   0xb   :  { %s6555_s17 = scalar_lea.vmem %s47_s26, 512  ;;  %p6560_p4 = scmp.lt.s32.totalorder %s47_s26, %s47_s26 }
   0xc   :  { %p6556_p3 = scmp.ne.s32.totalorder %s47_s26, %s6555_s17  ;;  %p6561_p5 = scmp.lt.s32.totalorder %s6555_s17, %s6555_s17 }
   0xe   :  { %p6562_p6 = por %p6561_p5, %p6560_p4 }
  0x10   :  { %p6563_p7 = pnand %p6562_p6, %p6556_p3 }
  0x12   :  { %6566 = shalt.err (!%p6563_p7)
}
  0x13   :  { %s6732_s18 = smov 64   ;;  %s6733_s19 = smov 4  }
  0x14   :  { %52 = dma.hbm_to_vmem [thread:$0]  %s8076_s4, 512, %s47_s26, [#allocation6], %s6732_s18, %s6732_s18, %s6733_s19  }
  0x15   :  { %s6734_s22 = smov [#allocation8]   ;;  %s6735_s24 = smov [#allocation11]  }
  0x16   :  { %s76_s23 = sshll.u32 %s6734_s22, 4  ;;  %s100_s25 = sshll.u32 %s6735_s24, 4  ;;  %s77_s23 = int_to_ptr.vmem [resolvable:$true] %s76_s23  ;;  %s101_s25 = int_to_ptr.vmem [resolvable:$true] %s100_s25 }
  0x17   :  { %s6567_s29 = scalar_lea.hbm %s8081_s9, 64 }
  0x18   :  { %p6568_p8 = scmp.ne.s32.totalorder %s8081_s9, %s6567_s29  ;;  %p6571_p9 = scmp.lt.u32.totalorder %s6567_s29, %s8081_s9 }
  0x1a   :  { %p6573_p10 = pnand %p6571_p9, %p6568_p8 }
  0x1c   :  { %6576 = shalt.err (!%p6573_p10)
}
  0x1d   :  { %s6577_s4 = scalar_lea.vmem %s77_s23, 64  ;;  %p6582_p12 = scmp.lt.s32.totalorder %s77_s23, %s77_s23 }
  0x1e   :  { %p6578_p11 = scmp.ne.s32.totalorder %s77_s23, %s6577_s4  ;;  %p6583_p13 = scmp.lt.s32.totalorder %s6577_s4, %s6577_s4 }
  0x20   :  { %p6584_p0 = por %p6583_p13, %p6582_p12 }
  0x22   :  { %p6585_p1 = pnand %p6584_p0, %p6578_p11 }
  0x24   :  { %6588 = shalt.err (!%p6585_p1)
}
  0x25   :  { %s6736_s26 = smov 16   ;;  %s6737_s17 = smov 1  }
  0x26   :  { %82 = dma.hbm_to_vmem [thread:$0]  %s8081_s9, 64, %s77_s23, [#allocation9], %s6736_s26, %s6736_s26, %s6737_s17  }
  0x27   :  { %s6589_s24 = scalar_lea.hbm %s8083_s11, 192 }
  0x28   :  { %p6590_p2 = scmp.ne.s32.totalorder %s8083_s11, %s6589_s24  ;;  %p6593_p3 = scmp.lt.u32.totalorder %s6589_s24, %s8083_s11 }
  0x2a   :  { %p6595_p4 = pnand %p6593_p3, %p6590_p2 }
  0x2c   :  { %6598 = shalt.err (!%p6595_p4)
}
  0x2d   :  { %s6599_s14 = scalar_lea.vmem %s101_s25, 192  ;;  %p6604_p6 = scmp.lt.s32.totalorder %s101_s25, %s101_s25 }
  0x2e   :  { %p6600_p5 = scmp.ne.s32.totalorder %s101_s25, %s6599_s14  ;;  %p6605_p7 = scmp.lt.s32.totalorder %s6599_s14, %s6599_s14 }
  0x30   :  { %p6606_p8 = por %p6605_p7, %p6604_p6 }
  0x32   :  { %p6607_p9 = pnand %p6606_p8, %p6600_p5 }
  0x34   :  { %6610 = shalt.err (!%p6607_p9)
}
  0x35   :  { %106 = dma.hbm_to_vmem [thread:$0]  %s8083_s11, 192, %s101_s25, [#allocation12], %s6736_s26, %s6736_s26, %s6737_s17  }
  0x36   :  { %s6738_s15 = smov [#allocation2]   ;;  %s6611_s20 = scalar_lea.hbm %s8072_s0, 256 }
  0x37   :  { %s28_s16 = sshll.u32 %s6738_s15, 4  ;;  %p6612_p10 = scmp.ne.s32.totalorder %s8072_s0, %s6611_s20  ;;  %s29_s16 = int_to_ptr.vmem [resolvable:$true] %s28_s16 }
  0x38   :  { %p6615_p11 = scmp.lt.u32.totalorder %s6611_s20, %s8072_s0 }
  0x3a   :  { %p6617_p12 = pnand %p6615_p11, %p6612_p10 }
  0x3c   :  { %6620 = shalt.err (!%p6617_p12)
}
  0x3d   :  { %s6621_s28 = scalar_lea.vmem %s29_s16, 256  ;;  %p6626_p0 = scmp.lt.s32.totalorder %s29_s16, %s29_s16 }
  0x3e   :  { %p6622_p13 = scmp.ne.s32.totalorder %s29_s16, %s6621_s28  ;;  %p6627_p1 = scmp.lt.s32.totalorder %s6621_s28, %s6621_s28 }
  0x40   :  { %p6628_p2 = por %p6627_p1, %p6626_p0 }
  0x42   :  { %p6629_p3 = pnand %p6628_p2, %p6622_p13 }
  0x44   :  { %6632 = shalt.err (!%p6629_p3)
}
  0x45   :  { %s6739_s11 = smov 128   ;;  %s6740_s25 = smov 8  }
  0x46   :  { %34 = dma.hbm_to_vmem [thread:$0]  %s8072_s0, 256, %s29_s16, [#allocation3], %s6739_s11, %s6739_s11, %s6740_s25  }
  0x47   :  { %s6741_s14 = smov [#allocation7]   ;;  %s6742_s23 = smov [#allocation10]  }
  0x48   :  { %s64_s9 = sshll.u32 %s6741_s14, 4  ;;  %s88_s15 = sshll.u32 %s6742_s23, 4  ;;  %s65_s9 = int_to_ptr.vmem [resolvable:$true] %s64_s9  ;;  %s6881_s15 = int_to_ptr.vmem [resolvable:$true] %s88_s15 }
  0x49   :  { %s6633_s20 = scalar_lea.hbm %s8080_s8, 32 }
  0x4a   :  { %p6634_p4 = scmp.ne.s32.totalorder %s8080_s8, %s6633_s20  ;;  %p6637_p5 = scmp.lt.u32.totalorder %s6633_s20, %s8080_s8 }
  0x4c   :  { %p6639_p6 = pnand %p6637_p5, %p6634_p4 }
  0x4e   :  { %6642 = shalt.err (!%p6639_p6)
}
  0x4f   :  { %s6643_s0 = scalar_lea.vmem %s65_s9, 32  ;;  %p6648_p8 = scmp.lt.s32.totalorder %s65_s9, %s65_s9 }
  0x50   :  { %p6644_p7 = scmp.ne.s32.totalorder %s65_s9, %s6643_s0  ;;  %p6649_p9 = scmp.lt.s32.totalorder %s6643_s0, %s6643_s0 }
  0x52   :  { %p6650_p10 = por %p6649_p9, %p6648_p8 }
  0x54   :  { %p6651_p11 = pnand %p6650_p10, %p6644_p7 }
  0x56   :  { %6654 = shalt.err (!%p6651_p11)
}
  0x57   :  { %70 = dma.hbm_to_vmem [thread:$0]  %s8080_s8, 32, %s65_s9, [#allocation6], %s6736_s26, %s6736_s26, %s6737_s17  }
  0x58   :  { %s6655_s14 = scalar_lea.hbm %s8082_s10, 128 }
  0x59   :  { %p6656_p12 = scmp.ne.s32.totalorder %s8082_s10, %s6655_s14  ;;  %p6659_p13 = scmp.lt.u32.totalorder %s6655_s14, %s8082_s10 }
  0x5b   :  { %p6661_p0 = pnand %p6659_p13, %p6656_p12 }
  0x5d   :  { %6664 = shalt.err (!%p6661_p0)
}
  0x5e   :  { %s6665_s21 = scalar_lea.vmem %s6881_s15, 128  ;;  %p6670_p2 = scmp.lt.s32.totalorder %s6881_s15, %s6881_s15 }
  0x5f   :  { %p6666_p1 = scmp.ne.s32.totalorder %s6881_s15, %s6665_s21  ;;  %p6671_p3 = scmp.lt.s32.totalorder %s6665_s21, %s6665_s21 }
  0x61   :  { %p6672_p4 = por %p6671_p3, %p6670_p2 }
  0x63   :  { %p6673_p5 = pnand %p6672_p4, %p6666_p1 }
  0x65   :  { %6676 = shalt.err (!%p6673_p5)
}
  0x66   :  { %94 = dma.hbm_to_vmem [thread:$0]  %s8082_s10, 128, %s6881_s15, [#allocation9], %s6736_s26, %s6736_s26, %s6737_s17  }
  0x67   :  { %s6743_s22 = smov [#allocation13]   ;;  %s6677_s16 = scalar_lea.hbm %s8084_s12, 32 }
  0x68   :  { %s112_s24 = sshll.u32 %s6743_s22, 4  ;;  %p6678_p6 = scmp.ne.s32.totalorder %s8084_s12, %s6677_s16  ;;  %s113_s24 = int_to_ptr.vmem [resolvable:$true] %s112_s24 }
  0x69   :  { %p6681_p7 = scmp.lt.u32.totalorder %s6677_s16, %s8084_s12 }
  0x6b   :  { %p6683_p8 = pnand %p6681_p7, %p6678_p6 }
  0x6d   :  { %6686 = shalt.err (!%p6683_p8)
}
  0x6e   :  { %s6687_s23 = scalar_lea.vmem %s113_s24, 32  ;;  %p6692_p10 = scmp.lt.s32.totalorder %s113_s24, %s113_s24 }
  0x6f   :  { %p6688_p9 = scmp.ne.s32.totalorder %s113_s24, %s6687_s23  ;;  %p6693_p11 = scmp.lt.s32.totalorder %s6687_s23, %s6687_s23 }
  0x71   :  { %p6694_p12 = por %p6693_p11, %p6692_p10 }
  0x73   :  { %p6695_p13 = pnand %p6694_p12, %p6688_p9 }
  0x75   :  { %6698 = shalt.err (!%p6695_p13)
}
  0x76   :  { %118 = dma.hbm_to_vmem [thread:$0]  %s8084_s12, 32, %s113_s24, [#allocation12], %s6736_s26, %s6736_s26, %s6737_s17  }
  0x77   :  { %6721 = dma.done.wait [#allocation3], 256  }
  0x78   :  { %6722 = vsyncadd [#allocation3], 4294967040 }
  0x79   :  { %6723 = dma.done.wait [#allocation6], 544  }
  0x7a   :  { %6724 = vsyncadd [#allocation6], 4294966752 }
  0x7b   :  { %6725 = dma.done.wait [#allocation9], 192  }
  0x7c   :  { %6726 = vsyncadd [#allocation9], 4294967104 }
  0x7d   :  { %6727 = dma.done.wait [#allocation12], 224  }
  0x7e   :  { %6728 = vsyncadd [#allocation12], 4294967072  ;;  %vm153_vm0 = vcmask 261120   ;;  %v6933_v0 = vld [vmem:[#allocation2] sm:$0xff]  ;;  %v6935_v1 = vld [vmem:[#allocation2 + $0x8] sm:$0xff]  ;;  %v6744_v15 = vmov 0.0  }
  0x7f   :  { %v154_v2 = vsel %vm153_vm0, %v6933_v0, 0.0  ;;  %v157_v3 = vsel %vm153_vm0, %v6935_v1, 0.0  ;;  %v6325_v14 = vld [vmem:[#allocation5] sm:$0xff]   ;;  %5740 = vmatprep.subr.bf16.mxu1 %v6744_v15  ;;  %vm6745_vm1 = vmmov 0   ;;  %v6326_v16 = vld [vmem:[#allocation5 + $0x8] sm:$0xff]   ;;  %5754 = vmatprep.subr.bf16.mxu0 %v6744_v15  ;;  %s6746_s12 = smov 120  }
  0x80   :  { %155 = vadd.xlane.f32.xlu0 %v154_v2  ;;  %5744 = vmatprep.mubr.msk.bf16.mxu1 %vm6745_vm1, %v6744_v15  ;;  %v5338_v33 = vld [vmem:[#allocation11] ss:$0 sm:$0xff]  ;;  %v5339_v39 = vld [vmem:[#allocation11 + $0x1] ss:$0 sm:$0xff]  ;;  %v5340_v44 = vld [vmem:[#allocation7] ss:$0 sm:$0xff] }
  0x81   :  { %5741 = vmatpush3.bf16.msra.mxu1 %v6325_v14  ;;  %5756 = vmatprep.mubr.msk.bf16.mxu0 %vm6745_vm1, %v6744_v15  ;;  %s6747_s17 = smov 104   ;;  %s6748_s4 = smov 112   ;;  %vm300_vm6 = vcmask 64512   ;;  %vm796_vm7 = vcmask 1043456   ;;  %vm1202_vm8 = vcmask 130048   ;;  %vm1205_vm9 = vcmask 195584  }
  0x82   :  { %5742 = vmatprep.subr.bf16.mxu1 %v6744_v15  ;;  %s6749_s19 = smov 96   ;;  %s6750_s16 = smov 24  }
  0x84   :  { %158 = vadd.xlane.f32.xlu0 %v157_v3 }
  0x85   :  { %5743 = vmatpush3.bf16.msra.mxu1 %v6326_v16 }
  0x86   :  { %5748 = vmatprep.subr.bf16.mxu1 %v6744_v15 }
 0x10d   :  { %v156_v4 = vpop.xlane.xlu0 %155 }
 0x10e   :  { %v161_v5 = vmul.f32 0.03125, %v156_v4 }
 0x110   :  { %v163_v6 = vsub.f32 %v6933_v0, %v161_v5 }
 0x111   :  { %v159_v7 = vpop.xlane.xlu0 %158 }
 0x112   :  { %v162_v8 = vmul.f32 0.03125, %v159_v7  ;;  %v165_v9 = vmul.f32 %v163_v6, %v163_v6  ;;  %v200_v35 = vmul.f32 %v5338_v33, %v163_v6 }
 0x114   :  { %v164_v10 = vsub.f32 %v6935_v1, %v162_v8  ;;  %v167_v11 = vsel %vm153_vm0, %v165_v9, 0.0 }
 0x115   :  { %168 = vadd.xlane.f32.xlu1 %v167_v11 }
 0x116   :  { %v166_v12 = vmul.f32 %v164_v10, %v164_v10  ;;  %v201_v36 = vmul.f32 %v5338_v33, %v164_v10 }
 0x118   :  { %v170_v13 = vsel %vm153_vm0, %v166_v12, 0.0 }
 0x119   :  { %171 = vadd.xlane.f32.xlu1 %v170_v13 }
 0x1a2   :  { %v169_v17 = vpop.xlane.xlu1 %168 }
 0x1a3   :  { %v174_v18 = vmul.f32 0.032258064, %v169_v17 }
 0x1a5   :  { %6357 = vrsqrt.f32 %v174_v18  ;;  %vm178_vm2 = vcmp.eq.f32.partialorder %v174_v18, inf  ;;  %v181_v23 = vand.u32 2147483648, %v174_v18  ;;  %vm180_vm3 = vcmp.eq.f32.partialorder %v174_v18, 0.0 }
 0x1a6   :  { %v172_v19 = vpop.xlane.xlu1 %171 }
 0x1a7   :  { %v175_v20 = vmul.f32 0.032258064, %v172_v19 }
 0x1a9   :  { %6359 = vrsqrt.f32 %v175_v20  ;;  %vm185_vm4 = vcmp.eq.f32.partialorder %v175_v20, inf  ;;  %v188_v29 = vand.u32 2147483648, %v175_v20  ;;  %vm187_vm5 = vcmp.eq.f32.partialorder %v175_v20, 0.0 }
 0x1af   :  { %v6358_v21 = vpop.eup %6357 }
 0x1b0   :  { %v177_v22 = vmul.f32 %v6358_v21, %v174_v18 }
 0x1b2   :  { %v179_v24 = vsel %vm178_vm2, %v174_v18, %v177_v22 }
 0x1b3   :  { %v6360_v25 = vpop.eup %6359  ;;  %v182_v26 = vsel %vm180_vm3, %v181_v23, %v179_v24 }
 0x1b4   :  { %v190_v27 = vadd.f32 1e-06, %v182_v26  ;;  %v184_v28 = vmul.f32 %v6360_v25, %v175_v20 }
 0x1b6   :  { %v186_v30 = vsel %vm185_vm4, %v175_v20, %v184_v28  ;;  %6361 = vrcp.f32 %v190_v27  ;;  %v146_v20 = vld [vmem:[%s8074_s2] sm:$0xff]  ;;  %v147_v27 = vld [vmem:[%s8074_s2 + $0x8] sm:$0xff]  ;;  %vm2654_vm4 = vcmask 523264  }
 0x1b7   :  { %v189_v31 = vsel %vm187_vm5, %v188_v29, %v186_v30 }
 0x1b8   :  { %v191_v32 = vadd.f32 1e-06, %v189_v31 }
 0x1ba   :  { %6363 = vrcp.f32 %v191_v32 }
 0x1c0   :  { %v6362_v34 = vpop.eup %6361 }
 0x1c1   :  { %v202_v37 = vmul.f32 %v6362_v34, %v200_v35 }
 0x1c3   :  { %v210_v41 = vadd.f32 %v5339_v39, %v202_v37 }
 0x1c4   :  { %v6364_v38 = vpop.eup %6363 }
 0x1c5   :  { %v203_v40 = vmul.f32 %v6364_v38, %v201_v36 }
 0x1c7   :  { %v211_v42 = vadd.f32 %v5339_v39, %v203_v40 }
 0x1c9   :  { %v216_v43 = vpack.c.bf16 %v211_v42, %v210_v41 }
 0x1cb   :  { %5745 = vmatmul.mubr.msk.bf16.vlgmr.msra.gmra.mrb[0].mxu1 %vm153_vm0, %v216_v43 }
 0x1cc   :  { %5750 = vmatprep.mubr.msk.bf16.mxu1 %vm6745_vm1, %v6744_v15 }
 0x29e   :  { %v273_v45 = vpop.f32.mrb[0].mxu1 }
 0x29f   :  { %v274_v46 = vadd.f32 %v5340_v44, %v273_v45  ;;  %v5746_v47 = vpop.f32.mrb[1].mxu1 }
 0x2a0   :  { %v276_v48 = vpop.f32.mrb[2].mxu1 }
 0x2a1   :  { %v6956_v49 = vpack.c.bf16 %v274_v46, %v274_v46  ;;  %v277_v50 = vadd.f32 %v5340_v44, %v276_v48  ;;  %v5747_v51 = vpop.f32.mrb[3].mxu1 }
 0x2a3   :  { %v6958_v52 = vpack.c.bf16 %v277_v50, %v277_v50  ;;  %286 = vrot.lane.b32.xlu0 %v6956_v49, %s6746_s12 }
 0x2a5   :  { %288 = vrot.lane.b32.xlu1 %v6958_v52, %s6746_s12 }
 0x2a7   :  { %294 = vrot.lane.b32.xlu0 %v6956_v49, %s6747_s17 }
 0x2a9   :  { %290 = vrot.lane.b32.xlu1 %v6956_v49, %s6748_s4 }
 0x2ab   :  { %298 = vrot.lane.b32.xlu0 %v6956_v49, %s6749_s19 }
 0x2ad   :  { %292 = vrot.lane.b32.xlu1 %v6958_v52, %s6748_s4 }
 0x2b1   :  { %296 = vrot.lane.b32.xlu1 %v6958_v52, %s6747_s17 }
 0x2b5   :  { %347 = vrot.lane.b32.xlu1 %v6958_v52, %s6749_s19 }
 0x315   :  { %v287_v53 = vpop.permute.xlu0 %286 }
 0x316   :  { %v6976_v54 = vcombine.low %v287_v53, %v287_v53 }
 0x317   :  { %v289_v55 = vpop.permute.xlu1 %288 }
 0x318   :  { %v6978_v56 = vcombine.low %v289_v55, %v289_v55  ;;  %397 = vrot.lane.b32.xlu0 %v6976_v54, %s6749_s19 }
 0x319   :  { %v295_v57 = vpop.permute.xlu0 %294 }
 0x31a   :  { %447 = vrot.lane.b32.xlu1 %v6978_v56, %s6749_s19  ;;  %v6989_v63 = vcombine.low %v295_v57, %v295_v57 }
 0x31b   :  { %v291_v58 = vpop.permute.xlu1 %290 }
 0x31c   :  { %v6984_v59 = vcombine.low %v291_v58, %v291_v58 }
 0x31d   :  { %v299_v60 = vpop.permute.xlu0 %298 }
 0x31e   :  { %v305_v61 = vsel %vm300_vm6, %v299_v60, 0  ;;  %497 = vrot.lane.b32.xlu0 %v6984_v59, %s6749_s19 }
 0x31f   :  { %5749 = vmatpush3.bf16.xpose.msra.mxu1 %v305_v61  ;;  %v293_v62 = vpop.permute.xlu1 %292 }
 0x320   :  { %v6991_v2 = vcombine.low %v293_v62, %v293_v62  ;;  %5760 = vmatprep.subr.bf16.mxu1 %v6744_v15 }
 0x322   :  { %597 = vrot.lane.b32.xlu0 %v6989_v63, %s6749_s19  ;;  %547 = vrot.lane.b32.xlu1 %v6991_v2, %s6749_s19 }
 0x323   :  { %v297_v3 = vpop.permute.xlu1 %296 }
 0x324   :  { %v6998_v4 = vcombine.low %v297_v3, %v297_v3 }
 0x326   :  { %5751 = vmatmul.mubr.msk.bf16.vlgmr.msra.gmra.mrb[4].mxu1 %vm300_vm6, %v6956_v49  ;;  %647 = vrot.lane.b32.xlu1 %v6998_v4, %s6749_s19 }
 0x327   :  { %v348_v5 = vpop.permute.xlu1 %347  ;;  %5762 = vmatprep.mubr.msk.bf16.mxu1 %vm6745_vm1, %v6744_v15 }
 0x328   :  { %v353_v6 = vsel %vm300_vm6, %v348_v5, 0 }
 0x329   :  { %5755 = vmatpush3.bf16.xpose.msra.mxu0 %v353_v6 }
 0x32a   :  { %5766 = vmatprep.subr.bf16.mxu0 %v6744_v15 }
 0x330   :  { %5757 = vmatmul.mubr.msk.bf16.vlgmr.msra.gmra.mrb[0].mxu0 %vm300_vm6, %v6958_v52 }
 0x331   :  { %5768 = vmatprep.mubr.msk.bf16.mxu0 %vm6745_vm1, %v6744_v15 }
 0x38a   :  { %v398_v7 = vpop.permute.xlu0 %397 }
 0x38b   :  { %v403_v8 = vsel %vm300_vm6, %v398_v7, 0 }
 0x38c   :  { %5761 = vmatpush3.bf16.xpose.msra.mxu1 %v403_v8  ;;  %v448_v9 = vpop.permute.xlu1 %447 }
 0x38d   :  { %v453_v10 = vsel %vm300_vm6, %v448_v9, 0  ;;  %5772 = vmatprep.subr.bf16.mxu1 %v6744_v15 }
 0x38e   :  { %5767 = vmatpush3.bf16.xpose.msra.mxu0 %v453_v10 }
 0x38f   :  { %5778 = vmatprep.subr.bf16.mxu0 %v6744_v15 }
 0x390   :  { %v498_v11 = vpop.permute.xlu0 %497 }
 0x391   :  { %v503_v12 = vsel %vm300_vm6, %v498_v11, 0 }
 0x393   :  { %5763 = vmatmul.mubr.msk.bf16.vlgmr.msra.gmra.mrb[8].mxu1 %vm300_vm6, %v287_v53 }
 0x394   :  { %5773 = vmatpush3.bf16.xpose.msra.mxu1 %v503_v12  ;;  %v548_v13 = vpop.permute.xlu1 %547  ;;  %5774 = vmatprep.mubr.msk.bf16.mxu1 %vm6745_vm1, %v6744_v15  ;;  %v598_v16 = vpop.permute.xlu0 %597 }
 0x395   :  { %v553_v14 = vsel %vm300_vm6, %v548_v13, 0  ;;  %5769 = vmatmul.mubr.msk.bf16.vlgmr.msra.gmra.mrb[4].mxu0 %vm300_vm6, %v289_v55  ;;  %5784 = vmatprep.subr.bf16.mxu1 %v6744_v15  ;;  %v603_v18 = vsel %vm300_vm6, %v598_v16, 0 }
 0x396   :  { %5779 = vmatpush3.bf16.xpose.msra.mxu0 %v553_v14  ;;  %5780 = vmatprep.mubr.msk.bf16.mxu0 %vm6745_vm1, %v6744_v15 }
 0x397   :  { %5790 = vmatprep.subr.bf16.mxu0 %v6744_v15 }
 0x398   :  { %v648_v17 = vpop.permute.xlu1 %647 }
 0x399   :  { %v653_v19 = vsel %vm300_vm6, %v648_v17, 0 }
 0x39b   :  { %5775 = vmatmul.mubr.msk.bf16.vlgmr.msra.gmra.mrb[12].mxu1 %vm300_vm6, %v291_v58 }
 0x39c   :  { %5785 = vmatpush3.bf16.xpose.msra.mxu1 %v603_v18  ;;  %5786 = vmatprep.mubr.msk.bf16.mxu1 %vm6745_vm1, %v6744_v15 }
 0x39d   :  { %5781 = vmatmul.mubr.msk.bf16.vlgmr.msra.gmra.mrb[8].mxu0 %vm300_vm6, %v293_v62  ;;  %5796 = vmatprep.subr.bf16.mxu1 %v6744_v15 }
 0x39e   :  { %5791 = vmatpush3.bf16.xpose.msra.mxu0 %v653_v19  ;;  %5792 = vmatprep.mubr.msk.bf16.mxu0 %vm6745_vm1, %v6744_v15 }
 0x39f   :  { %5802 = vmatprep.subr.bf16.mxu0 %v6744_v15 }
 0x3a3   :  { %5787 = vmatmul.mubr.msk.bf16.vlgmr.msra.gmra.mrb[16].mxu1 %vm300_vm6, %v295_v57 }
 0x3a4   :  { %5798 = vmatprep.mubr.msk.bf16.mxu1 %vm6745_vm1, %v6744_v15 }
 0x3a5   :  { %5793 = vmatmul.mubr.msk.bf16.vlgmr.msra.gmra.mrb[12].mxu0 %vm300_vm6, %v297_v3 }
 0x3a6   :  { %5804 = vmatprep.mubr.msk.bf16.mxu0 %vm6745_vm1, %v6744_v15 }
 0x3f9   :  { %v341_v21 = vpop.f32.mrb[4].mxu1 }
 0x3fa   :  { %v342_v22 = vadd.f32 %v341_v21, %v146_v20  ;;  %v5752_v23 = vpop.f32.mrb[5].mxu1 }
 0x3fb   :  { %v344_v24 = vpop.f32.mrb[6].mxu1 }
 0x3fc   :  { %v5753_v25 = vpop.f32.mrb[7].mxu1  ;;  %v695_v26 = vsel %vm300_vm6, %v342_v22, -inf }
 0x3fd   :  { %696 = vmax.xlane.f32.xlu0 %v695_v26 }
 0x403   :  { %v389_v28 = vpop.f32.mrb[0].mxu0 }
 0x404   :  { %v390_v29 = vadd.f32 %v389_v28, %v147_v27  ;;  %v5758_v30 = vpop.f32.mrb[1].mxu0 }
 0x405   :  { %v392_v31 = vpop.f32.mrb[2].mxu0 }
 0x406   :  { %v5759_v32 = vpop.f32.mrb[3].mxu0  ;;  %v698_v33 = vsel %vm300_vm6, %v390_v29, -inf }
 0x407   :  { %699 = vmax.xlane.f32.xlu1 %v698_v33 }
 0x466   :  { %v439_v34 = vpop.f32.mrb[8].mxu1 }
 0x467   :  { %v440_v35 = vadd.f32 %v439_v34, %v146_v20  ;;  %v5764_v36 = vpop.f32.mrb[9].mxu1 }
 0x468   :  { %v442_v37 = vpop.f32.mrb[10].mxu1  ;;  %v489_v38 = vpop.f32.mrb[4].mxu0 }
 0x469   :  { %v7050_v39 = vadd.f32 %v489_v38, %v147_v27  ;;  %v5765_v40 = vpop.f32.mrb[11].mxu1  ;;  %v5770_v41 = vpop.f32.mrb[5].mxu0  ;;  %v701_v42 = vsel %vm300_vm6, %v440_v35, -inf }
 0x46a   :  { %v492_v43 = vpop.f32.mrb[6].mxu0  ;;  %702 = vmax.xlane.f32.xlu0 %v701_v42 }
 0x46b   :  { %v5771_v44 = vpop.f32.mrb[7].mxu0  ;;  %v704_v45 = vsel %vm300_vm6, %v7050_v39, -inf }
 0x46e   :  { %705 = vmax.xlane.f32.xlu0 %v704_v45  ;;  %v539_v46 = vpop.f32.mrb[12].mxu1 }
 0x46f   :  { %v7055_v47 = vadd.f32 %v539_v46, %v146_v20  ;;  %v5776_v48 = vpop.f32.mrb[13].mxu1 }
 0x470   :  { %v542_v50 = vpop.f32.mrb[14].mxu1  ;;  %v589_v51 = vpop.f32.mrb[8].mxu0 }
 0x471   :  { %v590_v53 = vadd.f32 %v589_v51, %v147_v27  ;;  %v5777_v55 = vpop.f32.mrb[15].mxu1  ;;  %v5782_v57 = vpop.f32.mrb[9].mxu0  ;;  %v707_v58 = vsel %vm300_vm6, %v7055_v47, -inf }
 0x472   :  { %v592_v60 = vpop.f32.mrb[10].mxu0  ;;  %708 = vmax.xlane.f32.xlu0 %v707_v58 }
 0x473   :  { %v5783_v61 = vpop.f32.mrb[11].mxu0  ;;  %v710_v62 = vsel %vm300_vm6, %v590_v53, -inf }
 0x474   :  { %711 = vmax.xlane.f32.xlu1 %v710_v62 }
 0x476   :  { %v639_v3 = vpop.f32.mrb[16].mxu1 }
 0x477   :  { %v7060_v5 = vadd.f32 %v639_v3, %v146_v20  ;;  %v5788_v6 = vpop.f32.mrb[17].mxu1 }
 0x478   :  { %v642_v7 = vpop.f32.mrb[18].mxu1  ;;  %v689_v8 = vpop.f32.mrb[12].mxu0 }
 0x479   :  { %v5789_v9 = vpop.f32.mrb[19].mxu1  ;;  %v5794_v10 = vpop.f32.mrb[13].mxu0  ;;  %v713_v11 = vsel %vm300_vm6, %v7060_v5, -inf  ;;  %v690_v18 = vadd.f32 %v689_v8, %v147_v27 }
 0x47a   :  { %v692_v12 = vpop.f32.mrb[14].mxu0  ;;  %714 = vmax.xlane.f32.xlu0 %v713_v11 }
 0x47b   :  { %v5795_v13 = vpop.f32.mrb[15].mxu0  ;;  %v716_v20 = vsel %vm300_vm6, %v690_v18, -inf }
 0x485   :  { %840 = vrot.lane.b32.xlu1 %v6958_v52, %s6732_s18 }
 0x489   :  { %888 = vrot.lane.b32.xlu1 %v6976_v54, %s6732_s18 }
 0x48a   :  { %v697_v14 = vpop.xlane.xlu0 %696 }
 0x48b   :  { %v719_v16 = vsub.f32 %v342_v22, %v697_v14 }
 0x48d   :  { %v727_v17 = vmul.f32 1.442695, %v719_v16 }
 0x48f   :  { %6365 = vpow2.f32 %v727_v17 }
 0x490   :  { %791 = vrot.lane.b32.xlu0 %v6956_v49, %s6732_s18 }
 0x494   :  { %v700_v52 = vpop.xlane.xlu1 %699 }
 0x495   :  { %v720_v54 = vsub.f32 %v390_v29, %v700_v52 }
 0x497   :  { %v729_v49 = vmul.f32 1.442695, %v720_v54 }
 0x499   :  { %v7070_v19 = vpop.eup %6365  ;;  %6367 = vpow2.f32 %v729_v49 }
 0x49a   :  { %v743_v21 = vsel %vm300_vm6, %v7070_v19, 0.0 }
 0x4a3   :  { %v7077_v22 = vpop.eup %6367 }
 0x4a4   :  { %v746_v23 = vsel %vm300_vm6, %v7077_v22, 0.0 }
 0x4ad   :  { %717 = vmax.xlane.f32.xlu1 %v716_v20 }
 0x4af   :  { %744 = vadd.xlane.f32.xlu0 %v743_v21 }
 0x4be   :  { %936 = vrot.lane.b32.xlu1 %v6978_v56, %s6732_s18 }
 0x4e2   :  { %747 = vadd.xlane.f32.xlu1 %v746_v23 }
 0x4f3   :  { %1032 = vrot.lane.b32.xlu1 %v6991_v2, %s6732_s18 }
 0x4f7   :  { %v703_v24 = vpop.xlane.xlu0 %702 }
 0x4f8   :  { %v721_v25 = vsub.f32 %v440_v35, %v703_v24 }
 0x4fa   :  { %v731_v26 = vmul.f32 1.442695, %v721_v25 }
 0x4fb   :  { %v706_v27 = vpop.xlane.xlu0 %705 }
 0x4fc   :  { %6369 = vpow2.f32 %v731_v26  ;;  %v722_v56 = vsub.f32 %v7050_v39, %v706_v27 }
 0x4fe   :  { %v733_v30 = vmul.f32 1.442695, %v722_v56 }
 0x4ff   :  { %v709_v29 = vpop.xlane.xlu0 %708 }
 0x500   :  { %6371 = vpow2.f32 %v733_v30  ;;  %v723_v43 = vsub.f32 %v7055_v47, %v709_v29 }
 0x501   :  { %v712_v28 = vpop.xlane.xlu1 %711 }
 0x502   :  { %v724_v31 = vsub.f32 %v590_v53, %v712_v28  ;;  %v735_v44 = vmul.f32 1.442695, %v723_v43 }
 0x504   :  { %v737_v35 = vmul.f32 1.442695, %v724_v31 }
 0x505   :  { %v841_v32 = vpop.permute.xlu1 %840 }
 0x506   :  { %v7084_v33 = vpop.eup %6369  ;;  %v846_v34 = vsel %vm796_vm7, %v841_v32, 0  ;;  %6373 = vpow2.f32 %v737_v35 }
 0x507   :  { %5803 = vmatpush3.bf16.msra.mxu0 %v846_v34  ;;  %v715_v36 = vpop.xlane.xlu0 %714  ;;  %v749_v2 = vsel %vm300_vm6, %v7084_v33, 0.0  ;;  %6375 = vpow2.f32 %v735_v44 }
 0x508   :  { %750 = vadd.xlane.f32.xlu0 %v749_v2  ;;  %5814 = vmatprep.subr.bf16.mxu0 %v6744_v15  ;;  %v725_v45 = vsub.f32 %v7060_v5, %v715_v36 }
 0x509   :  { %v889_v48 = vpop.permute.xlu1 %888 }
 0x50a   :  { %v7092_v39 = vpop.eup %6371  ;;  %v739_v46 = vmul.f32 1.442695, %v725_v45  ;;  %v894_v6 = vsel %vm796_vm7, %v889_v48, 0 }
 0x50b   :  { %v792_v37 = vpop.permute.xlu0 %791  ;;  %v752_v40 = vsel %vm300_vm6, %v7092_v39, 0.0 }
 0x50c   :  { %v798_v38 = vsel %vm796_vm7, %v792_v37, 0  ;;  %6377 = vpow2.f32 %v739_v46 }
 0x50d   :  { %5797 = vmatpush3.bf16.msra.mxu1 %v798_v38 }
 0x50e   :  { %5808 = vmatprep.subr.bf16.mxu1 %v6744_v15 }
 0x510   :  { %v7096_v41 = vpop.eup %6373 }
 0x511   :  { %v758_v42 = vsel %vm300_vm6, %v7096_v41, 0.0  ;;  %v7104_v50 = vpop.eup %6375 }
 0x512   :  { %v755_v57 = vsel %vm300_vm6, %v7104_v50, 0.0 }
 0x516   :  { %v7108_v58 = vpop.eup %6377 }
 0x517   :  { %753 = vadd.xlane.f32.xlu1 %v752_v40  ;;  %v761_v47 = vsel %vm300_vm6, %v7108_v58, 0.0 }
 0x51b   :  { %759 = vadd.xlane.f32.xlu1 %v758_v42 }
 0x51e   :  { %984 = vrot.lane.b32.xlu0 %v6984_v59, %s6732_s18 }
 0x53a   :  { %v718_v51 = vpop.xlane.xlu1 %717 }
 0x53b   :  { %v726_v53 = vsub.f32 %v690_v18, %v718_v51 }
 0x53c   :  { %v745_v55 = vpop.xlane.xlu0 %744 }
 0x53d   :  { %v741_v59 = vmul.f32 1.442695, %v726_v53  ;;  %6379 = vrcp.f32 %v745_v55  ;;  %756 = vadd.xlane.f32.xlu0 %v755_v57 }
 0x53e   :  { %v937_v7 = vpop.permute.xlu1 %936 }
 0x53f   :  { %6381 = vpow2.f32 %v741_v59  ;;  %v942_v12 = vsel %vm796_vm7, %v937_v7, 0 }
 0x541   :  { %762 = vadd.xlane.f32.xlu0 %v761_v47 }
 0x547   :  { %v6380_v60 = vpop.eup %6379 }
 0x548   :  { %v775_v61 = vmul.f32 %v6380_v60, %v7070_v19 }
 0x549   :  { %v7113_v62 = vpop.eup %6381 }
 0x54a   :  { %v764_v3 = vsel %vm300_vm6, %v7113_v62, 0.0  ;;  %v783_v5 = vpack.c.bf16 %v775_v61, %v775_v61 }
 0x54b   :  { %765 = vadd.xlane.f32.xlu1 %v764_v3 }
 0x54c   :  { %5799 = vmatmul.mubr.msk.bf16.vlgmr.msra.gmra.mrb[20].mxu1 %vm300_vm6, %v783_v5  ;;  %v6327_v5 = vld [vmem:[%s8077_s5] sm:$0xff]  }
 0x54d   :  { %5809 = vmatpush3.bf16.msra.mxu1 %v894_v6  ;;  %5810 = vmatprep.mubr.msk.bf16.mxu1 %vm6745_vm1, %v6744_v15 }
 0x54e   :  { %5820 = vmatprep.subr.bf16.mxu1 %v6744_v15 }
 0x557   :  { %1080 = vrot.lane.b32.xlu0 %v6989_v63, %s6732_s18 }
 0x55c   :  { %1128 = vrot.lane.b32.xlu1 %v6998_v4, %s6732_s18 }
 0x56f   :  { %v748_v8 = vpop.xlane.xlu1 %747 }
 0x570   :  { %6383 = vrcp.f32 %v748_v8 }
 0x573   :  { %v1033_v13 = vpop.permute.xlu1 %1032 }
 0x57a   :  { %v6384_v9 = vpop.eup %6383 }
 0x57b   :  { %v776_v10 = vmul.f32 %v6384_v9, %v7077_v22  ;;  %v1038_v22 = vsel %vm796_vm7, %v1033_v13, 0 }
 0x57d   :  { %v784_v11 = vpack.c.bf16 %v776_v10, %v776_v10 }
 0x57f   :  { %5805 = vmatmul.mubr.msk.bf16.vlgmr.msra.gmra.mrb[16].mxu0 %vm300_vm6, %v784_v11  ;;  %v6328_v11 = vld [vmem:[%s8077_s5 + $0x8] sm:$0xff]  }
 0x580   :  { %5815 = vmatpush3.bf16.msra.mxu0 %v942_v12  ;;  %5816 = vmatprep.mubr.msk.bf16.mxu0 %vm6745_vm1, %v6744_v15 }
 0x581   :  { %5826 = vmatprep.subr.bf16.mxu0 %v6744_v15 }
 0x595   :  { %v751_v63 = vpop.xlane.xlu0 %750 }
 0x596   :  { %6385 = vrcp.f32 %v751_v63 }
 0x599   :  { %v985_v16 = vpop.permute.xlu0 %984 }
 0x59a   :  { %v990_v19 = vsel %vm796_vm7, %v985_v16, 0 }
 0x5a0   :  { %v6386_v4 = vpop.eup %6385 }
 0x5a1   :  { %v777_v14 = vmul.f32 %v6386_v4, %v7084_v33 }
 0x5a3   :  { %v785_v17 = vpack.c.bf16 %v777_v14, %v777_v14 }
 0x5a4   :  { %v754_v18 = vpop.xlane.xlu1 %753 }
 0x5a5   :  { %6387 = vrcp.f32 %v754_v18  ;;  %5811 = vmatmul.mubr.msk.bf16.vlgmr.msra.gmra.mrb[24].mxu1 %vm300_vm6, %v785_v17 }
 0x5a6   :  { %5821 = vmatpush3.bf16.msra.mxu1 %v990_v19  ;;  %5822 = vmatprep.mubr.msk.bf16.mxu1 %vm6745_vm1, %v6744_v15 }
 0x5a7   :  { %5832 = vmatprep.subr.bf16.mxu1 %v6744_v15 }
 0x5a8   :  { %v760_v20 = vpop.xlane.xlu1 %759 }
 0x5a9   :  { %6389 = vrcp.f32 %v760_v20 }
 0x5af   :  { %v6388_v21 = vpop.eup %6387 }
 0x5b0   :  { %v778_v52 = vmul.f32 %v6388_v21, %v7092_v39 }
 0x5b2   :  { %v786_v54 = vpack.c.bf16 %v778_v52, %v778_v52 }
 0x5b3   :  { %v6390_v49 = vpop.eup %6389 }
 0x5b4   :  { %5817 = vmatmul.mubr.msk.bf16.vlgmr.msra.gmra.mrb[20].mxu0 %vm300_vm6, %v786_v54  ;;  %v780_v23 = vmul.f32 %v6390_v49, %v7096_v41 }
 0x5b5   :  { %5827 = vmatpush3.bf16.msra.mxu0 %v1038_v22  ;;  %5828 = vmatprep.mubr.msk.bf16.mxu0 %vm6745_vm1, %v6744_v15 }
 0x5b6   :  { %5838 = vmatprep.subr.bf16.mxu0 %v6744_v15  ;;  %v788_v24 = vpack.c.bf16 %v780_v23, %v780_v23 }
 0x5bc   :  { %5829 = vmatmul.mubr.msk.bf16.vlgmr.msra.gmra.mrb[24].mxu0 %vm300_vm6, %v788_v24 }
 0x5bd   :  { %5840 = vmatprep.mubr.msk.bf16.mxu0 %vm6745_vm1, %v6744_v15 }
 0x5ca   :  { %v757_v25 = vpop.xlane.xlu0 %756 }
 0x5cb   :  { %6391 = vrcp.f32 %v757_v25 }
 0x5ce   :  { %v763_v26 = vpop.xlane.xlu0 %762 }
 0x5cf   :  { %6393 = vrcp.f32 %v763_v26 }
 0x5d2   :  { %v1081_v28 = vpop.permute.xlu0 %1080 }
 0x5d3   :  { %v1086_v32 = vsel %vm796_vm7, %v1081_v28, 0 }
 0x5d5   :  { %v6392_v27 = vpop.eup %6391 }
 0x5d6   :  { %v779_v56 = vmul.f32 %v6392_v27, %v7104_v50 }
 0x5d8   :  { %v766_v29 = vpop.xlane.xlu1 %765  ;;  %v787_v30 = vpack.c.bf16 %v779_v56, %v779_v56 }
 0x5d9   :  { %v6394_v31 = vpop.eup %6393  ;;  %6395 = vrcp.f32 %v766_v29 }
 0x5da   :  { %5823 = vmatmul.mubr.msk.bf16.vlgmr.msra.gmra.mrb[28].mxu1 %vm300_vm6, %v787_v30  ;;  %v781_v34 = vmul.f32 %v6394_v31, %v7108_v58 }
 0x5db   :  { %5833 = vmatpush3.bf16.msra.mxu1 %v1086_v32  ;;  %5834 = vmatprep.mubr.msk.bf16.mxu1 %vm6745_vm1, %v6744_v15 }
 0x5dc   :  { %v1129_v33 = vpop.permute.xlu1 %1128  ;;  %5844 = vmatprep.subr.bf16.mxu1 %v6744_v15  ;;  %v789_v2 = vpack.c.bf16 %v781_v34, %v781_v34 }
 0x5dd   :  { %v1134_v36 = vsel %vm796_vm7, %v1129_v33, 0  ;;  %v5371_v33 = vld [vmem:[#allocation10] ss:$0 sm:$0xff] }
 0x5de   :  { %5839 = vmatpush3.bf16.msra.mxu0 %v1134_v36 }
 0x5df   :  { %5852 = vmatprep.subr.bf16.mxu0 %v6744_v15 }
 0x5e2   :  { %5835 = vmatmul.mubr.msk.bf16.vlgmr.msra.gmra.mrb[32].mxu1 %vm300_vm6, %v789_v2 }
 0x5e3   :  { %v6396_v35 = vpop.eup %6395  ;;  %5848 = vmatprep.mubr.msk.bf16.mxu1 %vm6745_vm1, %v6744_v15  ;;  %5845 = vmatpush3.bf16.msra.mxu1 %v6327_v5 }
 0x5e4   :  { %v782_v37 = vmul.f32 %v6396_v35, %v7113_v62  ;;  %5846 = vmatprep.subr.bf16.mxu1 %v6744_v15 }
 0x5e6   :  { %v790_v38 = vpack.c.bf16 %v782_v37, %v782_v37 }
 0x5e7   :  { %5847 = vmatpush3.bf16.msra.mxu1 %v6328_v11 }
 0x5e8   :  { %5841 = vmatmul.mubr.msk.bf16.vlgmr.msra.gmra.mrb[28].mxu0 %vm300_vm6, %v790_v38  ;;  %5860 = vmatprep.subr.bf16.mxu1 %v6744_v15 }
 0x5e9   :  { %5856 = vmatprep.mubr.msk.bf16.mxu0 %vm6745_vm1, %v6744_v15 }
 0x61f   :  { %v834_v39 = vpop.f32.mrb[20].mxu1 }
 0x620   :  { %v5800_v40 = vpop.f32.mrb[21].mxu1 }
 0x621   :  { %v837_v41 = vpop.f32.mrb[22].mxu1 }
 0x622   :  { %v5801_v42 = vpop.f32.mrb[23].mxu1 }
 0x652   :  { %v882_v43 = vpop.f32.mrb[16].mxu0 }
 0x653   :  { %v5806_v44 = vpop.f32.mrb[17].mxu0 }
 0x654   :  { %v885_v45 = vpop.f32.mrb[18].mxu0 }
 0x655   :  { %v5807_v46 = vpop.f32.mrb[19].mxu0 }
 0x678   :  { %v930_v48 = vpop.f32.mrb[24].mxu1 }
 0x679   :  { %v5812_v50 = vpop.f32.mrb[25].mxu1 }
 0x67a   :  { %v933_v51 = vpop.f32.mrb[26].mxu1 }
 0x67b   :  { %v5813_v53 = vpop.f32.mrb[27].mxu1 }
 0x67c   :  { %v6329_v53 = vld [vmem:[%s8078_s6] sm:$0xff]  }
 0x687   :  { %v978_v55 = vpop.f32.mrb[20].mxu0 }
 0x688   :  { %v6265_v57 = vpack.i.bf16 %v978_v55, %v930_v48  ;;  %v5818_v58 = vpop.f32.mrb[21].mxu0  ;;  %v6330_v55 = vld [vmem:[%s8078_s6 + $0x8] sm:$0xff]  }
 0x689   :  { %v981_v59 = vpop.f32.mrb[22].mxu0  ;;  %v144_v58 = vld [vmem:[%s8073_s1 + $0x8] sm:$0xff] }
 0x68a   :  { %v5819_v47 = vpop.f32.mrb[23].mxu0  ;;  %6266 = vrot.lane.b32.xlu0 %v6265_v57, %s6740_s25  ;;  %v143_v57 = vld [vmem:[%s8073_s1] sm:$0xff]  ;;  %v6331_v59 = vld [vmem:[%s8077_s5 + $0x10] sm:$0xff]  }
 0x68b   :  { %v7214_v47 = vpack.c.bf16 %v144_v58, %v143_v57  ;;  %5853 = vmatpush3.bf16.msra.mxu0 %v6331_v59 }
 0x68c   :  { %5854 = vmatprep.subr.bf16.mxu0 %v6744_v15 }
 0x68f   :  { %v1074_v60 = vpop.f32.mrb[24].mxu0 }
 0x690   :  { %v5830_v61 = vpop.f32.mrb[25].mxu0 }
 0x691   :  { %v1077_v62 = vpop.f32.mrb[26].mxu0 }
 0x692   :  { %v5831_v3 = vpop.f32.mrb[27].mxu0 }
 0x6ad   :  { %v1026_v6 = vpop.f32.mrb[28].mxu1 }
 0x6ae   :  { %v6270_v7 = vpack.i.bf16 %v1074_v60, %v1026_v6  ;;  %v5824_v8 = vpop.f32.mrb[29].mxu1  ;;  %v6332_v60 = vld [vmem:[%s8077_s5 + $0x18] sm:$0xff]  }
 0x6af   :  { %v1029_v9 = vpop.f32.mrb[30].mxu1  ;;  %5855 = vmatpush3.bf16.msra.mxu0 %v6332_v60 }
 0x6b0   :  { %6271 = vrot.lane.b32.xlu1 %v6270_v7, %s6736_s26  ;;  %v5825_v10 = vpop.f32.mrb[31].mxu1  ;;  %5868 = vmatprep.subr.bf16.mxu0 %v6744_v15 }
 0x6b5   :  { %v1122_v12 = vpop.f32.mrb[32].mxu1 }
 0x6b6   :  { %v5836_v63 = vpop.f32.mrb[33].mxu1 }
 0x6b7   :  { %v1125_v4 = vpop.f32.mrb[34].mxu1 }
 0x6b8   :  { %v5837_v13 = vpop.f32.mrb[35].mxu1 }
 0x6bb   :  { %v1170_v14 = vpop.f32.mrb[28].mxu0 }
 0x6bc   :  { %v6275_v16 = vpack.i.bf16 %v1170_v14, %v1122_v12  ;;  %v5842_v17 = vpop.f32.mrb[29].mxu0 }
 0x6bd   :  { %v1173_v18 = vpop.f32.mrb[30].mxu0  ;;  %v5372_v17 = vld [vmem:[#allocation11 + $0x2] ss:$0 sm:$0xff] }
 0x6be   :  { %v5843_v19 = vpop.f32.mrb[31].mxu0  ;;  %6276 = vrot.lane.b32.xlu0 %v6275_v16, %s6750_s16 }
 0x6fc   :  { %v6267_v20 = vpop.permute.xlu0 %6266 }
 0x6fd   :  { %v6269_v52 = vunpack.i.h.bf16 %v6267_v20  ;;  %v6268_v54 = vunpack.i.l.bf16 %v6267_v20 }
 0x6ff   :  { %v1201_v24 = vsel %vm300_vm6, %v882_v43, %v6269_v52  ;;  %v1200_v25 = vsel %vm300_vm6, %v834_v39, %v6268_v54  ;;  %v5373_v54 = vld [vmem:[#allocation11 + $0x3] ss:$0 sm:$0xff] }
 0x722   :  { %v6272_v21 = vpop.permute.xlu1 %6271 }
 0x723   :  { %v6274_v49 = vunpack.i.h.bf16 %v6272_v21  ;;  %v6273_v22 = vunpack.i.l.bf16 %v6272_v21 }
 0x725   :  { %v1204_v56 = vsel %vm1202_vm8, %v1201_v24, %v6274_v49  ;;  %v1203_v28 = vsel %vm1202_vm8, %v1200_v25, %v6273_v22  ;;  %v5382_v25 = vld [vmem:[#allocation8] ss:$0 sm:$0xff] }
 0x730   :  { %v6277_v23 = vpop.permute.xlu0 %6276 }
 0x731   :  { %v6279_v26 = vunpack.i.h.bf16 %v6277_v23  ;;  %v6278_v27 = vunpack.i.l.bf16 %v6277_v23 }
 0x733   :  { %v1207_v29 = vsel %vm1205_vm9, %v1204_v56, %v6279_v26  ;;  %v1206_v30 = vsel %vm1205_vm9, %v1203_v28, %v6278_v27 }
 0x734   :  { %v1212_v31 = vpack.c.bf16 %v1207_v29, %v1206_v30 }
 0x736   :  { %5849 = vmatmul.mubr.msk.bf16.vlgmr.msra.gmra.mrb[36].mxu1 %vm153_vm0, %v1212_v31 }
 0x737   :  { %5864 = vmatprep.mubr.msk.bf16.mxu1 %vm6745_vm1, %v6744_v15  ;;  %5861 = vmatpush3.bf16.msra.mxu1 %v6329_v53 }
 0x738   :  { %5862 = vmatprep.subr.bf16.mxu1 %v6744_v15 }
 0x73b   :  { %5863 = vmatpush3.bf16.msra.mxu1 %v6330_v55 }
 0x73c   :  { %5874 = vmatprep.subr.bf16.mxu1 %v6744_v15 }
 0x73e   :  { %5865 = vmatmul.mubr.msk.bf16.vlgmr.msra.gmra.mrb[40].mxu1 %vm153_vm0, %v7214_v47 }
 0x73f   :  { %5876 = vmatprep.mubr.msk.bf16.mxu1 %vm6745_vm1, %v6744_v15 }
 0x809   :  { %v1262_v32 = vpop.f32.mrb[36].mxu1 }
 0x80a   :  { %v1269_v34 = vadd.f32 %v1262_v32, %v6933_v0  ;;  %v5850_v36 = vpop.f32.mrb[37].mxu1 }
 0x80b   :  { %v1265_v2 = vpop.f32.mrb[38].mxu1  ;;  %v5378_v36 = vld [vmem:[#allocation10 + $0x1] ss:$0 sm:$0xff] }
 0x80c   :  { %v7185_v35 = vadd.f32 %v5371_v33, %v1269_v34  ;;  %v1270_v37 = vadd.f32 %v1265_v2, %v6935_v1  ;;  %v5851_v38 = vpop.f32.mrb[39].mxu1 }
 0x80e   :  { %v7188_v39 = vadd.f32 %v5371_v33, %v1270_v37  ;;  %v1284_v40 = vsel %vm153_vm0, %v7185_v35, 0.0 }
 0x80f   :  { %1285 = vadd.xlane.f32.xlu1 %v1284_v40 }
 0x810   :  { %v1287_v41 = vsel %vm153_vm0, %v7188_v39, 0.0 }
 0x811   :  { %1288 = vadd.xlane.f32.xlu0 %v1287_v41  ;;  %v1470_v26 = vpop.f32.mrb[40].mxu1 }
 0x812   :  { %v1471_v27 = vadd.f32 %v5382_v25, %v1470_v26  ;;  %v5866_v56 = vpop.f32.mrb[41].mxu1 }
 0x813   :  { %v1473_v28 = vpop.f32.mrb[42].mxu1 }
 0x814   :  { %v5558_v29 = vpack.c.bf16 %v1471_v27, %v1471_v27  ;;  %v1474_v30 = vadd.f32 %v5382_v25, %v1473_v28  ;;  %v5867_v31 = vpop.f32.mrb[43].mxu1 }
 0x816   :  { %v7229_v32 = vpack.c.bf16 %v1474_v30, %v1474_v30  ;;  %v1529_v33 = vsel %vm300_vm6, %v5558_v29, 0 }
 0x818   :  { %v1575_v34 = vsel %vm300_vm6, %v7229_v32, 0 }
 0x819   :  { %5875 = vmatpush3.bf16.xpose.msra.mxu1 %v1575_v34 }
 0x81a   :  { %5886 = vmatprep.subr.bf16.mxu1 %v6744_v15 }
 0x820   :  { %1501 = vrot.lane.b32.xlu1 %v5558_v29, %s6746_s12 }
 0x824   :  { %1505 = vrot.lane.b32.xlu1 %v5558_v29, %s6748_s4 }
 0x89c   :  { %v1286_v42 = vpop.xlane.xlu1 %1285 }
 0x89d   :  { %v1290_v43 = vmul.f32 0.03125, %v1286_v42 }
 0x89e   :  { %v1289_v0 = vpop.xlane.xlu0 %1288 }
 0x89f   :  { %v1292_v44 = vsub.f32 %v7185_v35, %v1290_v43  ;;  %v1291_v45 = vmul.f32 0.03125, %v1289_v0 }
 0x8a0   :  { %v7242_v41 = vpop.permute.xlu1 %1501 }
 0x8a1   :  { %v1293_v46 = vsub.f32 %v7188_v39, %v1291_v45  ;;  %v1294_v1 = vmul.f32 %v1292_v44, %v1292_v44  ;;  %v1328_v19 = vmul.f32 %v5372_v17, %v1292_v44  ;;  %v1621_v44 = vsel %vm300_vm6, %v7242_v41, 0 }
 0x8a3   :  { %v1296_v48 = vsel %vm153_vm0, %v1294_v1, 0.0  ;;  %v1295_v50 = vmul.f32 %v1293_v46, %v1293_v46  ;;  %v1329_v20 = vmul.f32 %v5372_v17, %v1293_v46 }
 0x8a4   :  { %1297 = vadd.xlane.f32.xlu0 %v1296_v48  ;;  %v7268_v48 = vpop.permute.xlu1 %1505 }
 0x8a5   :  { %v1299_v51 = vsel %vm153_vm0, %v1295_v50, 0.0  ;;  %v1713_v53 = vsel %vm300_vm6, %v7268_v48, 0 }
 0x8a8   :  { %1300 = vadd.xlane.f32.xlu0 %v1299_v51 }
 0x8be   :  { %1503 = vrot.lane.b32.xlu0 %v7229_v32, %s6746_s12 }
 0x8c2   :  { %1507 = vrot.lane.b32.xlu0 %v7229_v32, %s6748_s4 }
 0x931   :  { %v1298_v61 = vpop.xlane.xlu0 %1297 }
 0x932   :  { %v1302_v62 = vmul.f32 0.032258064, %v1298_v61 }
 0x934   :  { %6397 = vrsqrt.f32 %v1302_v62  ;;  %vm1306_vm10 = vcmp.eq.f32.partialorder %v1302_v62, inf  ;;  %v1309_v8 = vand.u32 2147483648, %v1302_v62  ;;  %vm1308_vm11 = vcmp.eq.f32.partialorder %v1302_v62, 0.0 }
 0x935   :  { %v1301_v3 = vpop.xlane.xlu0 %1300 }
 0x936   :  { %v1303_v5 = vmul.f32 0.032258064, %v1301_v3 }
 0x938   :  { %6399 = vrsqrt.f32 %v1303_v5  ;;  %vm1313_vm12 = vcmp.eq.f32.partialorder %v1303_v5, inf  ;;  %v1316_v4 = vand.u32 2147483648, %v1303_v5  ;;  %vm1315_vm13 = vcmp.eq.f32.partialorder %v1303_v5, 0.0 }
 0x939   :  { %v7246_v45 = vpop.permute.xlu0 %1503 }
 0x93a   :  { %v1667_v1 = vsel %vm300_vm6, %v7246_v45, 0 }
 0x93d   :  { %v7270_v50 = vpop.permute.xlu0 %1507 }
 0x93e   :  { %v6398_v6 = vpop.eup %6397  ;;  %v1759_v58 = vsel %vm300_vm6, %v7270_v50, 0 }
 0x93f   :  { %v1305_v7 = vmul.f32 %v6398_v6, %v1302_v62 }
 0x941   :  { %v1307_v9 = vsel %vm1306_vm10, %v1302_v62, %v1305_v7 }
 0x942   :  { %v6400_v10 = vpop.eup %6399  ;;  %v1310_v11 = vsel %vm1308_vm11, %v1309_v8, %v1307_v9  ;;  %v5390_v9 = vld [vmem:[%s8075_s3] ss:$0 sm:$0xff] }
 0x943   :  { %v1318_v12 = vadd.f32 1e-06, %v1310_v11  ;;  %v1312_v63 = vmul.f32 %v6400_v10, %v1303_v5  ;;  %v5391_v11 = vld [vmem:[%s8075_s3 + $0x1] ss:$0 sm:$0xff] }
 0x945   :  { %6401 = vrcp.f32 %v1318_v12  ;;  %v1314_v13 = vsel %vm1313_vm12, %v1303_v5, %v1312_v63 }
 0x946   :  { %v1317_v14 = vsel %vm1315_vm13, %v1316_v4, %v1314_v13 }
 0x947   :  { %v1319_v16 = vadd.f32 1e-06, %v1317_v14 }
 0x949   :  { %6403 = vrcp.f32 %v1319_v16 }
 0x94f   :  { %v6402_v18 = vpop.eup %6401 }
 0x950   :  { %v1330_v21 = vmul.f32 %v6402_v18, %v1328_v19 }
 0x952   :  { %v1338_v22 = vadd.f32 %v5373_v54, %v1330_v21 }
 0x953   :  { %v6404_v52 = vpop.eup %6403 }
 0x954   :  { %v1331_v49 = vmul.f32 %v6404_v52, %v1329_v20 }
 0x956   :  { %v1339_v23 = vadd.f32 %v5373_v54, %v1331_v49 }
 0x958   :  { %v1345_v24 = vpack.c.bf16 %v1339_v23, %v1338_v22 }
 0x95a   :  { %5857 = vmatmul.mubr.msk.bf16.vlgmr.msra.gmra.mrb[32].mxu0 %vm153_vm0, %v1345_v24 }
 0x95b   :  { %5870 = vmatprep.mubr.msk.bf16.mxu0 %vm6745_vm1, %v6744_v15  ;;  %5869 = vmatpush3.bf16.xpose.msra.mxu0 %v1529_v33 }
 0x95c   :  { %5880 = vmatprep.subr.bf16.mxu0 %v6744_v15 }
 0xa2d   :  { %v1403_v2 = vpop.f32.mrb[32].mxu0 }
 0xa2e   :  { %v1404_v37 = vadd.f32 %v5378_v36, %v1403_v2  ;;  %v5858_v38 = vpop.f32.mrb[33].mxu0 }
 0xa2f   :  { %v1406_v40 = vpop.f32.mrb[34].mxu0 }
 0xa30   :  { %v5556_v42 = vpack.c.bf16 %v1404_v37, %v1404_v37  ;;  %v1407_v43 = vadd.f32 %v5378_v36, %v1406_v40  ;;  %v5859_v0 = vpop.f32.mrb[35].mxu0 }
 0xa32   :  { %v5557_v46 = vpack.c.bf16 %v1407_v43, %v1407_v43  ;;  %1489 = vrot.lane.b32.xlu1 %v5556_v42, %s6746_s12  ;;  %5871 = vmatmul.mubr.msk.bf16.vlgmr.msra.gmra.mrb[36].mxu0 %vm300_vm6, %v5556_v42 }
 0xa33   :  { %5881 = vmatpush3.bf16.xpose.msra.mxu0 %v1621_v44  ;;  %5882 = vmatprep.mubr.msk.bf16.mxu0 %vm6745_vm1, %v6744_v15 }
 0xa34   :  { %1495 = vrot.lane.b32.xlu0 %v5557_v46, %s6748_s4  ;;  %5877 = vmatmul.mubr.msk.bf16.vlgmr.msra.gmra.mrb[44].mxu1 %vm300_vm6, %v5557_v46 }
 0xa35   :  { %5887 = vmatpush3.bf16.xpose.msra.mxu1 %v1667_v1  ;;  %5892 = vmatprep.subr.bf16.mxu0 %v6744_v15 }
 0xa36   :  { %1491 = vrot.lane.b32.xlu1 %v5557_v46, %s6746_s12  ;;  %5888 = vmatprep.mubr.msk.bf16.mxu1 %vm6745_vm1, %v6744_v15 }
 0xa37   :  { %5898 = vmatprep.subr.bf16.mxu1 %v6744_v15 }
 0xa38   :  { %1511 = vrot.lane.b32.xlu0 %v7229_v32, %s6747_s17 }
 0xa3a   :  { %1493 = vrot.lane.b32.xlu1 %v5556_v42, %s6748_s4 }
 0xa3c   :  { %1499 = vrot.lane.b32.xlu0 %v5557_v46, %s6747_s17 }
 0xa3e   :  { %1509 = vrot.lane.b32.xlu1 %v5558_v29, %s6747_s17 }
 0xa42   :  { %1497 = vrot.lane.b32.xlu1 %v5556_v42, %s6747_s17 }
 0xa46   :  { %1989 = vrot.lane.b32.xlu1 %v5558_v29, %s6749_s19 }
 0xaa4   :  { %v1490_v51 = vpop.permute.xlu1 %1489 }
 0xaa5   :  { %5883 = vmatmul.mubr.msk.bf16.vlgmr.msra.gmra.mrb[40].mxu0 %vm300_vm6, %v1490_v51 }
 0xaa6   :  { %5893 = vmatpush3.bf16.xpose.msra.mxu0 %v1713_v53  ;;  %5894 = vmatprep.mubr.msk.bf16.mxu0 %vm6745_vm1, %v6744_v15  ;;  %v1496_v55 = vpop.permute.xlu0 %1495 }
 0xaa7   :  { %5904 = vmatprep.subr.bf16.mxu0 %v6744_v15 }
 0xaa8   :  { %v1492_v57 = vpop.permute.xlu1 %1491 }
 0xaa9   :  { %5889 = vmatmul.mubr.msk.bf16.vlgmr.msra.gmra.mrb[48].mxu1 %vm300_vm6, %v1492_v57 }
 0xaaa   :  { %5899 = vmatpush3.bf16.xpose.msra.mxu1 %v1759_v58  ;;  %5900 = vmatprep.mubr.msk.bf16.mxu1 %vm6745_vm1, %v6744_v15  ;;  %v7285_v60 = vpop.permute.xlu0 %1511 }
 0xaab   :  { %5910 = vmatprep.subr.bf16.mxu1 %v6744_v15  ;;  %v1851_v62 = vsel %vm300_vm6, %v7285_v60, 0 }
 0xaac   :  { %v1494_v59 = vpop.permute.xlu1 %1493 }
 0xaad   :  { %5895 = vmatmul.mubr.msk.bf16.vlgmr.msra.gmra.mrb[44].mxu0 %vm300_vm6, %v1494_v59 }
 0xaae   :  { %5906 = vmatprep.mubr.msk.bf16.mxu0 %vm6745_vm1, %v6744_v15  ;;  %v1500_v6 = vpop.permute.xlu0 %1499 }
 0xab0   :  { %v7289_v61 = vpop.permute.xlu1 %1509 }
 0xab1   :  { %5901 = vmatmul.mubr.msk.bf16.vlgmr.msra.gmra.mrb[52].mxu1 %vm300_vm6, %v1496_v55  ;;  %v1805_v3 = vsel %vm300_vm6, %v7289_v61, 0 }
 0xab2   :  { %5911 = vmatpush3.bf16.xpose.msra.mxu1 %v1851_v62  ;;  %5905 = vmatpush3.bf16.xpose.msra.mxu0 %v1805_v3 }
 0xab3   :  { %5912 = vmatprep.mubr.msk.bf16.mxu1 %vm6745_vm1, %v6744_v15  ;;  %5916 = vmatprep.subr.bf16.mxu0 %v6744_v15 }
 0xab4   :  { %v1498_v5 = vpop.permute.xlu1 %1497  ;;  %5922 = vmatprep.subr.bf16.mxu1 %v6744_v15 }
 0xab8   :  { %v1990_v7 = vpop.permute.xlu1 %1989 }
 0xab9   :  { %v1995_v8 = vsel %vm796_vm7, %v1990_v7, 0  ;;  %5907 = vmatmul.mubr.msk.bf16.vlgmr.msra.gmra.mrb[48].mxu0 %vm300_vm6, %v1498_v5  ;;  %5913 = vmatmul.mubr.msk.bf16.vlgmr.msra.gmra.mrb[56].mxu1 %vm300_vm6, %v1500_v6  ;;  %v5402_v6 = vcombine.low %v7242_v41, %v7242_v41  ;;  %v5404_v7 = vcombine.low %v7246_v45, %v7246_v45 }
 0xaba   :  { %5917 = vmatpush3.bf16.msra.mxu0 %v1995_v8  ;;  %5924 = vmatprep.mubr.msk.bf16.mxu1 %vm6745_vm1, %v6744_v15 }
 0xabb   :  { %5918 = vmatprep.mubr.msk.bf16.mxu0 %vm6745_vm1, %v6744_v15  ;;  %5928 = vmatprep.subr.bf16.mxu0 %v6744_v15 }
 0xb05   :  { %v1565_v10 = vpop.f32.mrb[36].mxu0 }
 0xb06   :  { %v7314_v12 = vadd.f32 %v5390_v9, %v1565_v10  ;;  %v5872_v63 = vpop.f32.mrb[37].mxu0 }
 0xb07   :  { %v1568_v4 = vpop.f32.mrb[38].mxu0  ;;  %v1611_v13 = vpop.f32.mrb[44].mxu1 }
 0xb08   :  { %v1612_v14 = vadd.f32 %v5391_v11, %v1611_v13  ;;  %v5873_v16 = vpop.f32.mrb[39].mxu0  ;;  %v5878_v17 = vpop.f32.mrb[45].mxu1  ;;  %v1893_v18 = vsel %vm300_vm6, %v7314_v12, -inf }
 0xb09   :  { %1894 = vmax.xlane.f32.xlu1 %v1893_v18  ;;  %v1614_v19 = vpop.f32.mrb[46].mxu1 }
 0xb0a   :  { %v5879_v20 = vpop.f32.mrb[47].mxu1  ;;  %v1896_v21 = vsel %vm300_vm6, %v1612_v14, -inf }
 0xb0b   :  { %1897 = vmax.xlane.f32.xlu0 %v1896_v21 }
 0xb78   :  { %v1657_v52 = vpop.f32.mrb[40].mxu0 }
 0xb79   :  { %v7319_v54 = vadd.f32 %v5390_v9, %v1657_v52  ;;  %v5884_v49 = vpop.f32.mrb[41].mxu0 }
 0xb7a   :  { %v1660_v22 = vpop.f32.mrb[42].mxu0 }
 0xb7b   :  { %v5885_v23 = vpop.f32.mrb[43].mxu0  ;;  %v1899_v24 = vsel %vm300_vm6, %v7319_v54, -inf }
 0xb7c   :  { %1900 = vmax.xlane.f32.xlu0 %v1899_v24  ;;  %v1703_v25 = vpop.f32.mrb[48].mxu1 }
 0xb7d   :  { %v1704_v26 = vadd.f32 %v5391_v11, %v1703_v25  ;;  %v5890_v27 = vpop.f32.mrb[49].mxu1 }
 0xb7e   :  { %v1706_v56 = vpop.f32.mrb[50].mxu1 }
 0xb7f   :  { %v5891_v28 = vpop.f32.mrb[51].mxu1  ;;  %v1902_v29 = vsel %vm300_vm6, %v1704_v26, -inf }
 0xb80   :  { %v1749_v30 = vpop.f32.mrb[44].mxu0  ;;  %1903 = vmax.xlane.f32.xlu0 %v1902_v29 }
 0xb81   :  { %v1750_v31 = vadd.f32 %v5390_v9, %v1749_v30  ;;  %v5896_v33 = vpop.f32.mrb[45].mxu0 }
 0xb82   :  { %v1752_v34 = vpop.f32.mrb[46].mxu0 }
 0xb83   :  { %v5897_v36 = vpop.f32.mrb[47].mxu0  ;;  %v1905_v2 = vsel %vm300_vm6, %v1750_v31, -inf }
 0xb84   :  { %1906 = vmax.xlane.f32.xlu1 %v1905_v2  ;;  %v1795_v37 = vpop.f32.mrb[52].mxu1  ;;  %v5408_v36 = vcombine.low %v7270_v50, %v7270_v50  ;;  %v5410_v2 = vcombine.low %v7289_v61, %v7289_v61 }
 0xb85   :  { %v7325_v38 = vadd.f32 %v5391_v11, %v1795_v37  ;;  %v5902_v40 = vpop.f32.mrb[53].mxu1 }
 0xb86   :  { %v1798_v42 = vpop.f32.mrb[54].mxu1 }
 0xb87   :  { %v5903_v43 = vpop.f32.mrb[55].mxu1  ;;  %v1908_v0 = vsel %vm300_vm6, %v7325_v38, -inf }
 0xb88   :  { %1909 = vmax.xlane.f32.xlu0 %v1908_v0 }
 0xb8c   :  { %v1841_v44 = vpop.f32.mrb[48].mxu0  ;;  %v1887_v46 = vpop.f32.mrb[56].mxu1 }
 0xb8d   :  { %v1842_v1 = vadd.f32 %v5390_v9, %v1841_v44  ;;  %v7329_v51 = vadd.f32 %v5391_v11, %v1887_v46  ;;  %v5908_v53 = vpop.f32.mrb[49].mxu0  ;;  %v5914_v55 = vpop.f32.mrb[57].mxu1 }
 0xb8e   :  { %v1844_v57 = vpop.f32.mrb[50].mxu0  ;;  %v1890_v58 = vpop.f32.mrb[58].mxu1 }
 0xb8f   :  { %v5909_v59 = vpop.f32.mrb[51].mxu0  ;;  %v5915_v62 = vpop.f32.mrb[59].mxu1  ;;  %v1911_v3 = vsel %vm300_vm6, %v1842_v1, -inf  ;;  %v1914_v5 = vsel %vm300_vm6, %v7329_v51, -inf }
 0xb90   :  { %1912 = vmax.xlane.f32.xlu1 %v1911_v3  ;;  %1915 = vmax.xlane.f32.xlu0 %v1914_v5 }
 0xb96   :  { %v1895_v10 = vpop.xlane.xlu1 %1894 }
 0xb97   :  { %v1917_v11 = vsub.f32 %v7314_v12, %v1895_v10 }
 0xb98   :  { %v1898_v8 = vpop.xlane.xlu0 %1897 }
 0xb99   :  { %v1918_v9 = vsub.f32 %v1612_v14, %v1898_v8  ;;  %v1925_v4 = vmul.f32 1.442695, %v1917_v11  ;;  %v5406_v14 = vcombine.low %v7268_v48, %v7268_v48 }
 0xb9b   :  { %v1927_v63 = vmul.f32 1.442695, %v1918_v9 }
 0xb9d   :  { %6405 = vpow2.f32 %v1927_v63 }
 0xb9e   :  { %6407 = vpow2.f32 %v1925_v4 }
 0xba1   :  { %2087 = vrot.lane.b32.xlu1 %v5402_v6, %s6749_s19  ;;  %v5412_v6 = vcombine.low %v7285_v60, %v7285_v60 }
 0xba5   :  { %2137 = vrot.lane.b32.xlu1 %v5404_v7, %s6749_s19 }
 0xba6   :  { %2037 = vrot.lane.b32.xlu0 %v7229_v32, %s6749_s19 }
 0xba7   :  { %v7343_v41 = vpop.eup %6405 }
 0xba8   :  { %v1944_v13 = vsel %vm300_vm6, %v7343_v41, 0.0  ;;  %v7347_v45 = vpop.eup %6407 }
 0xba9   :  { %v1941_v32 = vsel %vm300_vm6, %v7347_v45, 0.0 }
 0xbc5   :  { %1945 = vadd.xlane.f32.xlu0 %v1944_v13 }
 0xbc9   :  { %1942 = vadd.xlane.f32.xlu1 %v1941_v32 }
 0xbda   :  { %2187 = vrot.lane.b32.xlu1 %v5406_v14, %s6749_s19 }
 0xc09   :  { %v1901_v12 = vpop.xlane.xlu0 %1900 }
 0xc0a   :  { %v1919_v16 = vsub.f32 %v7319_v54, %v1901_v12 }
 0xc0c   :  { %v1929_v17 = vmul.f32 1.442695, %v1919_v16 }
 0xc0d   :  { %v1904_v18 = vpop.xlane.xlu0 %1903 }
 0xc0e   :  { %6409 = vpow2.f32 %v1929_v17  ;;  %v1920_v19 = vsub.f32 %v1704_v26, %v1904_v18 }
 0xc10   :  { %v1931_v20 = vmul.f32 1.442695, %v1920_v19 }
 0xc11   :  { %v1907_v21 = vpop.xlane.xlu1 %1906 }
 0xc12   :  { %6411 = vpow2.f32 %v1931_v20  ;;  %v1921_v52 = vsub.f32 %v1750_v31, %v1907_v21 }
 0xc14   :  { %v1933_v49 = vmul.f32 1.442695, %v1921_v52 }
 0xc15   :  { %v1910_v23 = vpop.xlane.xlu0 %1909 }
 0xc16   :  { %6413 = vpow2.f32 %v1933_v49  ;;  %v1922_v37 = vsub.f32 %v7325_v38, %v1910_v23 }
 0xc18   :  { %v7355_v22 = vpop.eup %6409  ;;  %v1935_v40 = vmul.f32 1.442695, %v1922_v37 }
 0xc19   :  { %v1947_v48 = vsel %vm300_vm6, %v7355_v22, 0.0 }
 0xc1a   :  { %1948 = vadd.xlane.f32.xlu1 %v1947_v48 }
 0xc1c   :  { %v7359_v24 = vpop.eup %6411 }
 0xc1d   :  { %v1913_v54 = vpop.xlane.xlu1 %1912  ;;  %v1916_v25 = vpop.xlane.xlu0 %1915  ;;  %v1950_v26 = vsel %vm300_vm6, %v7359_v24, 0.0 }
 0xc1e   :  { %v1923_v27 = vsub.f32 %v1842_v1, %v1913_v54  ;;  %1951 = vadd.xlane.f32.xlu0 %v1950_v26  ;;  %v1924_v42 = vsub.f32 %v7329_v51, %v1916_v25 }
 0xc20   :  { %v7363_v56 = vpop.eup %6413  ;;  %v1937_v28 = vmul.f32 1.442695, %v1923_v27  ;;  %v1939_v43 = vmul.f32 1.442695, %v1924_v42 }
 0xc21   :  { %v2038_v29 = vpop.permute.xlu0 %2037  ;;  %v1953_v30 = vsel %vm300_vm6, %v7363_v56, 0.0  ;;  %v2088_v0 = vpop.permute.xlu1 %2087 }
 0xc22   :  { %6415 = vpow2.f32 %v1937_v28  ;;  %v2043_v31 = vsel %vm796_vm7, %v2038_v29, 0  ;;  %1954 = vadd.xlane.f32.xlu1 %v1953_v30  ;;  %v2093_v5 = vsel %vm796_vm7, %v2088_v0, 0 }
 0xc23   :  { %5923 = vmatpush3.bf16.msra.mxu1 %v2043_v31  ;;  %6417 = vpow2.f32 %v1935_v40 }
 0xc24   :  { %5934 = vmatprep.subr.bf16.mxu1 %v6744_v15  ;;  %6419 = vpow2.f32 %v1939_v43 }
 0xc25   :  { %v2138_v46 = vpop.permute.xlu1 %2137 }
 0xc26   :  { %v2143_v59 = vsel %vm796_vm7, %v2138_v46, 0 }
 0xc2c   :  { %v7369_v33 = vpop.eup %6415 }
 0xc2d   :  { %v1959_v34 = vsel %vm300_vm6, %v7369_v33, 0.0  ;;  %v7381_v44 = vpop.eup %6417 }
 0xc2e   :  { %1960 = vadd.xlane.f32.xlu1 %v1959_v34  ;;  %v1956_v1 = vsel %vm300_vm6, %v7381_v44, 0.0  ;;  %v7385_v53 = vpop.eup %6419 }
 0xc2f   :  { %v1962_v38 = vsel %vm300_vm6, %v7385_v53, 0.0 }
 0xc34   :  { %2237 = vrot.lane.b32.xlu0 %v5408_v36, %s6749_s19 }
 0xc3f   :  { %2287 = vrot.lane.b32.xlu1 %v5410_v2, %s6749_s19 }
 0xc52   :  { %v1946_v50 = vpop.xlane.xlu0 %1945 }
 0xc53   :  { %6421 = vrcp.f32 %v1946_v50  ;;  %1957 = vadd.xlane.f32.xlu0 %v1956_v1 }
 0xc56   :  { %v1943_v61 = vpop.xlane.xlu1 %1942 }
 0xc57   :  { %6423 = vrcp.f32 %v1943_v61  ;;  %1963 = vadd.xlane.f32.xlu0 %v1962_v38 }
 0xc5a   :  { %v2188_v7 = vpop.permute.xlu1 %2187 }
 0xc5b   :  { %v2193_v13 = vsel %vm796_vm7, %v2188_v7, 0 }
 0xc5d   :  { %v6422_v51 = vpop.eup %6421 }
 0xc5e   :  { %v1974_v55 = vmul.f32 %v6422_v51, %v7343_v41 }
 0xc60   :  { %v1982_v57 = vpack.c.bf16 %v1974_v55, %v1974_v55 }
 0xc61   :  { %v6424_v58 = vpop.eup %6423 }
 0xc62   :  { %5925 = vmatmul.mubr.msk.bf16.vlgmr.msra.gmra.mrb[60].mxu1 %vm300_vm6, %v1982_v57  ;;  %v1973_v62 = vmul.f32 %v6424_v58, %v7347_v45 }
 0xc63   :  { %5935 = vmatpush3.bf16.msra.mxu1 %v2143_v59  ;;  %5936 = vmatprep.mubr.msk.bf16.mxu1 %vm6745_vm1, %v6744_v15 }
 0xc64   :  { %v1981_v3 = vpack.c.bf16 %v1973_v62, %v1973_v62  ;;  %5946 = vmatprep.subr.bf16.mxu1 %v6744_v15 }
 0xc66   :  { %5919 = vmatmul.mubr.msk.bf16.vlgmr.msra.gmra.mrb[52].mxu0 %vm300_vm6, %v1981_v3  ;;  %v6333_v3 = vld [vmem:[%s8077_s5 + $0x20] sm:$0xff]  }
 0xc67   :  { %5929 = vmatpush3.bf16.msra.mxu0 %v2093_v5  ;;  %5930 = vmatprep.mubr.msk.bf16.mxu0 %vm6745_vm1, %v6744_v15  ;;  %v6334_v5 = vld [vmem:[%s8077_s5 + $0x28] sm:$0xff]  }
 0xc68   :  { %5940 = vmatprep.subr.bf16.mxu0 %v6744_v15 }
 0xc6d   :  { %2337 = vrot.lane.b32.xlu0 %v5412_v6, %s6749_s19 }
 0xca7   :  { %v1949_v8 = vpop.xlane.xlu1 %1948 }
 0xca8   :  { %6425 = vrcp.f32 %v1949_v8 }
 0xcab   :  { %v1952_v9 = vpop.xlane.xlu0 %1951 }
 0xcac   :  { %6427 = vrcp.f32 %v1952_v9 }
 0xcaf   :  { %v1955_v10 = vpop.xlane.xlu1 %1954  ;;  %v2238_v45 = vpop.permute.xlu0 %2237 }
 0xcb0   :  { %6429 = vrcp.f32 %v1955_v10  ;;  %v2243_v12 = vsel %vm796_vm7, %v2238_v45, 0 }
 0xcb2   :  { %v6426_v11 = vpop.eup %6425 }
 0xcb3   :  { %v1975_v63 = vmul.f32 %v6426_v11, %v7355_v22 }
 0xcb5   :  { %v1983_v4 = vpack.c.bf16 %v1975_v63, %v1975_v63 }
 0xcb6   :  { %v6428_v41 = vpop.eup %6427 }
 0xcb7   :  { %5931 = vmatmul.mubr.msk.bf16.vlgmr.msra.gmra.mrb[56].mxu0 %vm300_vm6, %v1983_v4  ;;  %v1976_v60 = vmul.f32 %v6428_v41, %v7359_v24 }
 0xcb8   :  { %5941 = vmatpush3.bf16.msra.mxu0 %v2193_v13  ;;  %5942 = vmatprep.mubr.msk.bf16.mxu0 %vm6745_vm1, %v6744_v15 }
 0xcb9   :  { %v1984_v32 = vpack.c.bf16 %v1976_v60, %v1976_v60  ;;  %5952 = vmatprep.subr.bf16.mxu0 %v6744_v15 }
 0xcba   :  { %v6430_v14 = vpop.eup %6429 }
 0xcbb   :  { %v1961_v16 = vpop.xlane.xlu1 %1960  ;;  %5937 = vmatmul.mubr.msk.bf16.vlgmr.msra.gmra.mrb[64].mxu1 %vm300_vm6, %v1984_v32  ;;  %v1977_v17 = vmul.f32 %v6430_v14, %v7363_v56 }
 0xcbc   :  { %6431 = vrcp.f32 %v1961_v16  ;;  %5947 = vmatpush3.bf16.msra.mxu1 %v2243_v12  ;;  %5948 = vmatprep.mubr.msk.bf16.mxu1 %vm6745_vm1, %v6744_v15 }
 0xcbd   :  { %v1985_v18 = vpack.c.bf16 %v1977_v17, %v1977_v17  ;;  %5958 = vmatprep.subr.bf16.mxu1 %v6744_v15 }
 0xcbf   :  { %5943 = vmatmul.mubr.msk.bf16.vlgmr.msra.gmra.mrb[60].mxu0 %vm300_vm6, %v1985_v18  ;;  %v2288_v19 = vpop.permute.xlu1 %2287 }
 0xcc0   :  { %v2293_v20 = vsel %vm796_vm7, %v2288_v19, 0  ;;  %5954 = vmatprep.mubr.msk.bf16.mxu0 %vm6745_vm1, %v6744_v15 }
 0xcc1   :  { %5953 = vmatpush3.bf16.msra.mxu0 %v2293_v20 }
 0xcc2   :  { %5964 = vmatprep.subr.bf16.mxu0 %v6744_v15 }
 0xcc6   :  { %v6432_v21 = vpop.eup %6431 }
 0xcc7   :  { %v1979_v52 = vmul.f32 %v6432_v21, %v7369_v33 }
 0xcc9   :  { %v1987_v49 = vpack.c.bf16 %v1979_v52, %v1979_v52 }
 0xccb   :  { %5955 = vmatmul.mubr.msk.bf16.vlgmr.msra.gmra.mrb[64].mxu0 %vm300_vm6, %v1987_v49 }
 0xccc   :  { %5968 = vmatprep.mubr.msk.bf16.mxu0 %vm6745_vm1, %v6744_v15  ;;  %5965 = vmatpush3.bf16.msra.mxu0 %v6333_v3 }
 0xccd   :  { %5966 = vmatprep.subr.bf16.mxu0 %v6744_v15 }
 0xcd0   :  { %5967 = vmatpush3.bf16.msra.mxu0 %v6334_v5 }
 0xcd1   :  { %5980 = vmatprep.subr.bf16.mxu0 %v6744_v15 }
 0xce0   :  { %v1958_v22 = vpop.xlane.xlu0 %1957 }
 0xce1   :  { %6433 = vrcp.f32 %v1958_v22 }
 0xce4   :  { %v1964_v23 = vpop.xlane.xlu0 %1963 }
 0xce5   :  { %6435 = vrcp.f32 %v1964_v23 }
 0xce8   :  { %v2338_v54 = vpop.permute.xlu0 %2337 }
 0xce9   :  { %v2343_v27 = vsel %vm796_vm7, %v2338_v54, 0  ;;  %v5421_v54 = vld [vmem:[#allocation10 + $0x2] ss:$0 sm:$0xff] }
 0xceb   :  { %v6434_v48 = vpop.eup %6433 }
 0xcec   :  { %v1978_v24 = vmul.f32 %v6434_v48, %v7381_v44 }
 0xcee   :  { %v1986_v25 = vpack.c.bf16 %v1978_v24, %v1978_v24 }
 0xcef   :  { %v6436_v26 = vpop.eup %6435 }
 0xcf0   :  { %5949 = vmatmul.mubr.msk.bf16.vlgmr.msra.gmra.mrb[68].mxu1 %vm300_vm6, %v1986_v25  ;;  %v1980_v56 = vmul.f32 %v6436_v26, %v7385_v53 }
 0xcf1   :  { %5959 = vmatpush3.bf16.msra.mxu1 %v2343_v27  ;;  %5960 = vmatprep.mubr.msk.bf16.mxu1 %vm6745_vm1, %v6744_v15 }
 0xcf2   :  { %5972 = vmatprep.subr.bf16.mxu1 %v6744_v15  ;;  %v1988_v28 = vpack.c.bf16 %v1980_v56, %v1980_v56 }
 0xcf8   :  { %5961 = vmatmul.mubr.msk.bf16.vlgmr.msra.gmra.mrb[72].mxu1 %vm300_vm6, %v1988_v28 }
 0xcf9   :  { %5976 = vmatprep.mubr.msk.bf16.mxu1 %vm6745_vm1, %v6744_v15 }
 0xd35   :  { %v2079_v29 = vpop.f32.mrb[60].mxu1 }
 0xd36   :  { %v5926_v30 = vpop.f32.mrb[61].mxu1 }
 0xd37   :  { %v2082_v31 = vpop.f32.mrb[62].mxu1 }
 0xd38   :  { %v5927_v33 = vpop.f32.mrb[63].mxu1 }
 0xd39   :  { %v2031_v34 = vpop.f32.mrb[52].mxu0 }
 0xd3a   :  { %v5920_v36 = vpop.f32.mrb[53].mxu0 }
 0xd3b   :  { %v2034_v2 = vpop.f32.mrb[54].mxu0 }
 0xd3c   :  { %v5921_v37 = vpop.f32.mrb[55].mxu0 }
 0xd8a   :  { %v2129_v40 = vpop.f32.mrb[56].mxu0 }
 0xd8b   :  { %v5932_v42 = vpop.f32.mrb[57].mxu0 }
 0xd8c   :  { %v2132_v43 = vpop.f32.mrb[58].mxu0 }
 0xd8d   :  { %v5933_v0 = vpop.f32.mrb[59].mxu0 }
 0xd8e   :  { %v2179_v44 = vpop.f32.mrb[64].mxu1 }
 0xd8f   :  { %v6280_v46 = vpack.i.bf16 %v2179_v44, %v2129_v40  ;;  %v5938_v50 = vpop.f32.mrb[65].mxu1  ;;  %v6335_v44 = vld [vmem:[%s8078_s6 + $0x10] sm:$0xff]  }
 0xd90   :  { %v2182_v1 = vpop.f32.mrb[66].mxu1  ;;  %5973 = vmatpush3.bf16.msra.mxu1 %v6335_v44  ;;  %v6337_v50 = vld [vmem:[%s8079_s7] sm:$0xff]  }
 0xd91   :  { %6281 = vrot.lane.b32.xlu1 %v6280_v46, %s6740_s25  ;;  %v5939_v53 = vpop.f32.mrb[67].mxu1  ;;  %v6336_v46 = vld [vmem:[%s8078_s6 + $0x18] sm:$0xff]   ;;  %5974 = vmatprep.subr.bf16.mxu1 %v6744_v15  ;;  %v6338_v1 = vld [vmem:[%s8079_s7 + $0x8] sm:$0xff]  }
 0xd92   :  { %v2229_v61 = vpop.f32.mrb[60].mxu0 }
 0xd93   :  { %v5944_v38 = vpop.f32.mrb[61].mxu0 }
 0xd94   :  { %v2232_v51 = vpop.f32.mrb[62].mxu0  ;;  %5975 = vmatpush3.bf16.msra.mxu1 %v6336_v46 }
 0xd95   :  { %v5945_v55 = vpop.f32.mrb[63].mxu0  ;;  %5992 = vmatprep.subr.bf16.mxu1 %v6744_v15 }
 0xd9e   :  { %v2329_v57 = vpop.f32.mrb[64].mxu0 }
 0xd9f   :  { %v5956_v58 = vpop.f32.mrb[65].mxu0 }
 0xda0   :  { %v2332_v59 = vpop.f32.mrb[66].mxu0 }
 0xda1   :  { %v5957_v62 = vpop.f32.mrb[67].mxu0 }
 0xdc3   :  { %v2279_v6 = vpop.f32.mrb[68].mxu1 }
 0xdc4   :  { %v6285_v7 = vpack.i.bf16 %v2279_v6, %v2229_v61  ;;  %v5950_v8 = vpop.f32.mrb[69].mxu1 }
 0xdc5   :  { %v2282_v9 = vpop.f32.mrb[70].mxu1 }
 0xdc6   :  { %6286 = vrot.lane.b32.xlu0 %v6285_v7, %s6736_s26  ;;  %v5951_v10 = vpop.f32.mrb[71].mxu1 }
 0xdcb   :  { %v2379_v11 = vpop.f32.mrb[72].mxu1 }
 0xdcc   :  { %v6290_v63 = vpack.i.bf16 %v2379_v11, %v2329_v57  ;;  %v5962_v4 = vpop.f32.mrb[73].mxu1  ;;  %v5422_v11 = vld [vmem:[#allocation11 + $0x4] ss:$0 sm:$0xff] }
 0xdcd   :  { %v2382_v41 = vpop.f32.mrb[74].mxu1 }
 0xdce   :  { %6291 = vrot.lane.b32.xlu1 %v6290_v63, %s6750_s16  ;;  %v5963_v13 = vpop.f32.mrb[75].mxu1 }
 0xe03   :  { %v6282_v60 = vpop.permute.xlu1 %6281 }
 0xe04   :  { %v6284_v32 = vunpack.i.h.bf16 %v6282_v60  ;;  %v6283_v14 = vunpack.i.l.bf16 %v6282_v60 }
 0xe06   :  { %v2410_v18 = vsel %vm300_vm6, %v2079_v29, %v6284_v32  ;;  %v2409_v19 = vsel %vm300_vm6, %v2031_v34, %v6283_v14 }
 0xe38   :  { %v6287_v45 = vpop.permute.xlu0 %6286 }
 0xe39   :  { %v6289_v12 = vunpack.i.h.bf16 %v6287_v45  ;;  %v6288_v16 = vunpack.i.l.bf16 %v6287_v45  ;;  %v5423_v45 = vld [vmem:[#allocation11 + $0x5] ss:$0 sm:$0xff] }
 0xe3b   :  { %v2412_v52 = vsel %vm1202_vm8, %v2410_v18, %v6289_v12  ;;  %v2411_v49 = vsel %vm1202_vm8, %v2409_v19, %v6288_v16  ;;  %v6340_v18 = vld [vmem:[%s8079_s7 + $0x18] sm:$0xff]   ;;  %v5428_v19 = vld [vmem:[#allocation8 + $0x1] ss:$0 sm:$0xff] }
 0xe40   :  { %v6292_v17 = vpop.permute.xlu1 %6291 }
 0xe41   :  { %v6294_v20 = vunpack.i.h.bf16 %v6292_v17  ;;  %v6293_v21 = vunpack.i.l.bf16 %v6292_v17  ;;  %v6339_v17 = vld [vmem:[%s8079_s7 + $0x10] sm:$0xff]  }
 0xe43   :  { %v2414_v22 = vsel %vm1205_vm9, %v2412_v52, %v6294_v20  ;;  %v2413_v23 = vsel %vm1205_vm9, %v2411_v49, %v6293_v21 }
 0xe44   :  { %v2420_v48 = vpack.c.bf16 %v2414_v22, %v2413_v23 }
 0xe46   :  { %5969 = vmatmul.mubr.msk.bf16.vlgmr.msra.gmra.mrb[68].mxu0 %vm153_vm0, %v2420_v48 }
 0xe47   :  { %5988 = vmatprep.mubr.msk.bf16.mxu0 %vm6745_vm1, %v6744_v15  ;;  %5981 = vmatpush3.bf16.msra.mxu0 %v6337_v50  ;;  %v6341_v50 = vld [vmem:[#allocation5 + $0x10] sm:$0xff]  }
 0xe48   :  { %5982 = vmatprep.subr.bf16.mxu0 %v6744_v15 }
 0xe4b   :  { %5983 = vmatpush3.bf16.msra.mxu0 %v6338_v1  ;;  %v6342_v1 = vld [vmem:[#allocation5 + $0x18] sm:$0xff]  }
 0xe4c   :  { %5984 = vmatprep.subr.bf16.mxu0 %v6744_v15 }
 0xe4f   :  { %5985 = vmatpush3.bf16.msra.mxu0 %v6339_v17  ;;  %v5440_v17 = vld [vmem:[#allocation7 + $0x1] ss:$0 sm:$0xff] }
 0xe50   :  { %5986 = vmatprep.subr.bf16.mxu0 %v6744_v15 }
 0xe53   :  { %5987 = vmatpush3.bf16.msra.mxu0 %v6340_v18 }
 0xe54   :  { %6006 = vmatprep.subr.bf16.mxu0 %v6744_v15 }
 0xf19   :  { %v2470_v24 = vpop.f32.mrb[68].mxu0 }
 0xf1a   :  { %v2477_v25 = vadd.f32 %v2470_v24, %v7185_v35  ;;  %v5970_v26 = vpop.f32.mrb[69].mxu0 }
 0xf1b   :  { %v2473_v27 = vpop.f32.mrb[70].mxu0  ;;  %v5437_v26 = vld [vmem:[#allocation10 + $0x3] ss:$0 sm:$0xff] }
 0xf1c   :  { %v7457_v56 = vadd.f32 %v5421_v54, %v2477_v25  ;;  %v2478_v28 = vadd.f32 %v2473_v27, %v7188_v39  ;;  %v5971_v29 = vpop.f32.mrb[71].mxu0 }
 0xf1e   :  { %v7460_v30 = vadd.f32 %v5421_v54, %v2478_v28  ;;  %v2493_v31 = vsel %vm153_vm0, %v7457_v56, 0.0 }
 0xf1f   :  { %2494 = vadd.xlane.f32.xlu0 %v2493_v31 }
 0xf20   :  { %v2496_v33 = vsel %vm153_vm0, %v7460_v30, 0.0 }
 0xf21   :  { %2497 = vadd.xlane.f32.xlu1 %v2496_v33 }
 0xfac   :  { %v2495_v34 = vpop.xlane.xlu0 %2494 }
 0xfad   :  { %v2499_v36 = vmul.f32 0.03125, %v2495_v34 }
 0xfae   :  { %v2498_v35 = vpop.xlane.xlu1 %2497 }
 0xfaf   :  { %v2501_v2 = vsub.f32 %v7457_v56, %v2499_v36  ;;  %v2500_v37 = vmul.f32 0.03125, %v2498_v35 }
 0xfb1   :  { %v2502_v40 = vsub.f32 %v7460_v30, %v2500_v37  ;;  %v2503_v39 = vmul.f32 %v2501_v2, %v2501_v2  ;;  %v2537_v4 = vmul.f32 %v5422_v11, %v2501_v2 }
 0xfb3   :  { %v2505_v42 = vsel %vm153_vm0, %v2503_v39, 0.0  ;;  %v2504_v43 = vmul.f32 %v2502_v40, %v2502_v40  ;;  %v2538_v41 = vmul.f32 %v5422_v11, %v2502_v40  ;;  %v5438_v11 = vld [vmem:[#allocation11 + $0x6] ss:$0 sm:$0xff] }
 0xfb4   :  { %2506 = vadd.xlane.f32.xlu0 %v2505_v42 }
 0xfb5   :  { %v2508_v0 = vsel %vm153_vm0, %v2504_v43, 0.0 }
 0xfb8   :  { %2509 = vadd.xlane.f32.xlu0 %v2508_v0 }
0x1041   :  { %v2507_v53 = vpop.xlane.xlu0 %2506 }
0x1042   :  { %v2511_v61 = vmul.f32 0.032258064, %v2507_v53 }
0x1044   :  { %6437 = vrsqrt.f32 %v2511_v61  ;;  %vm2515_vm14 = vcmp.eq.f32.partialorder %v2511_v61, inf  ;;  %v2518_v58 = vand.u32 2147483648, %v2511_v61  ;;  %vm2517_vm15 = vcmp.eq.f32.partialorder %v2511_v61, 0.0 }
0x1045   :  { %v2510_v38 = vpop.xlane.xlu0 %2509 }
0x1046   :  { %v2512_v51 = vmul.f32 0.032258064, %v2510_v38 }
0x1048   :  { %6439 = vrsqrt.f32 %v2512_v51  ;;  %vm2522_vm2 = vcmp.eq.f32.partialorder %v2512_v51, inf  ;;  %v2525_v7 = vand.u32 2147483648, %v2512_v51  ;;  %vm2524_vm3 = vcmp.eq.f32.partialorder %v2512_v51, 0.0 }
0x104e   :  { %v6438_v55 = vpop.eup %6437 }
0x104f   :  { %v2514_v57 = vmul.f32 %v6438_v55, %v2511_v61 }
0x1051   :  { %v2516_v59 = vsel %vm2515_vm14, %v2511_v61, %v2514_v57 }
0x1052   :  { %v6440_v62 = vpop.eup %6439  ;;  %v2519_v3 = vsel %vm2517_vm15, %v2518_v58, %v2516_v59 }
0x1053   :  { %v2527_v5 = vadd.f32 1e-06, %v2519_v3  ;;  %v2521_v6 = vmul.f32 %v6440_v62, %v2512_v51 }
0x1055   :  { %6441 = vrcp.f32 %v2527_v5  ;;  %v2523_v8 = vsel %vm2522_vm2, %v2512_v51, %v2521_v6 }
0x1056   :  { %v2526_v9 = vsel %vm2524_vm3, %v2525_v7, %v2523_v8 }
0x1057   :  { %v2528_v10 = vadd.f32 1e-06, %v2526_v9 }
0x1059   :  { %6443 = vrcp.f32 %v2528_v10 }
0x105f   :  { %v6442_v63 = vpop.eup %6441 }
0x1060   :  { %v2539_v13 = vmul.f32 %v6442_v63, %v2537_v4 }
0x1062   :  { %v2547_v14 = vadd.f32 %v5423_v45, %v2539_v13 }
0x1063   :  { %v6444_v60 = vpop.eup %6443 }
0x1064   :  { %v2540_v32 = vmul.f32 %v6444_v60, %v2538_v41 }
0x1066   :  { %v2548_v12 = vadd.f32 %v5423_v45, %v2540_v32  ;;  %v5439_v45 = vld [vmem:[#allocation11 + $0x7] ss:$0 sm:$0xff] }
0x1068   :  { %v2554_v16 = vpack.c.bf16 %v2548_v12, %v2547_v14 }
0x106a   :  { %5977 = vmatmul.mubr.msk.bf16.vlgmr.msra.gmra.mrb[76].mxu1 %vm153_vm0, %v2554_v16 }
0x106b   :  { %5996 = vmatprep.mubr.msk.bf16.mxu1 %vm6745_vm1, %v6744_v15  ;;  %5993 = vmatpush3.bf16.msra.mxu1 %v6341_v50 }
0x106c   :  { %5994 = vmatprep.subr.bf16.mxu1 %v6744_v15 }
0x106f   :  { %5995 = vmatpush3.bf16.msra.mxu1 %v6342_v1 }
0x1070   :  { %6000 = vmatprep.subr.bf16.mxu1 %v6744_v15 }
0x113d   :  { %v2612_v20 = vpop.f32.mrb[76].mxu1 }
0x113e   :  { %v2613_v21 = vadd.f32 %v5428_v19, %v2612_v20  ;;  %v5978_v52 = vpop.f32.mrb[77].mxu1 }
0x113f   :  { %v2615_v49 = vpop.f32.mrb[78].mxu1 }
0x1140   :  { %v2616_v22 = vadd.f32 %v5428_v19, %v2615_v49  ;;  %v5979_v23 = vpop.f32.mrb[79].mxu1  ;;  %v2619_v48 = vmax.f32 %v2613_v21, 0.0 }
0x1142   :  { %v2620_v24 = vmax.f32 %v2616_v22, 0.0 }
0x1144   :  { %v2629_v54 = vpack.c.bf16 %v2620_v24, %v2619_v48 }
0x1146   :  { %5989 = vmatmul.mubr.msk.bf16.vlgmr.msra.gmra.mrb[72].mxu0 %vm2654_vm4, %v2629_v54 }
0x1147   :  { %6008 = vmatprep.mubr.msk.bf16.mxu0 %vm6745_vm1, %v6744_v15 }
0x1219   :  { %v2692_v25 = vpop.f32.mrb[72].mxu0 }
0x121a   :  { %v2699_v27 = vadd.f32 %v2692_v25, %v7457_v56  ;;  %v5990_v28 = vpop.f32.mrb[73].mxu0 }
0x121b   :  { %v2695_v29 = vpop.f32.mrb[74].mxu0 }
0x121c   :  { %v7501_v31 = vadd.f32 %v5437_v26, %v2699_v27  ;;  %v2700_v33 = vadd.f32 %v2695_v29, %v7460_v30  ;;  %v5991_v34 = vpop.f32.mrb[75].mxu0 }
0x121e   :  { %v7504_v36 = vadd.f32 %v5437_v26, %v2700_v33  ;;  %v2715_v35 = vsel %vm153_vm0, %v7501_v31, 0.0 }
0x121f   :  { %2716 = vadd.xlane.f32.xlu0 %v2715_v35 }
0x1220   :  { %v2718_v2 = vsel %vm153_vm0, %v7504_v36, 0.0 }
0x1221   :  { %2719 = vadd.xlane.f32.xlu1 %v2718_v2 }
0x12ac   :  { %v2717_v37 = vpop.xlane.xlu0 %2716 }
0x12ad   :  { %v2721_v40 = vmul.f32 0.03125, %v2717_v37 }
0x12ae   :  { %v2720_v56 = vpop.xlane.xlu1 %2719 }
0x12af   :  { %v2723_v39 = vsub.f32 %v7501_v31, %v2721_v40  ;;  %v2722_v42 = vmul.f32 0.03125, %v2720_v56 }
0x12b1   :  { %v2724_v43 = vsub.f32 %v7504_v36, %v2722_v42  ;;  %v2725_v30 = vmul.f32 %v2723_v39, %v2723_v39  ;;  %v2759_v4 = vmul.f32 %v5438_v11, %v2723_v39 }
0x12b3   :  { %v2727_v0 = vsel %vm153_vm0, %v2725_v30, 0.0  ;;  %v2726_v44 = vmul.f32 %v2724_v43, %v2724_v43  ;;  %v2760_v41 = vmul.f32 %v5438_v11, %v2724_v43 }
0x12b4   :  { %2728 = vadd.xlane.f32.xlu0 %v2727_v0 }
0x12b5   :  { %v2730_v46 = vsel %vm153_vm0, %v2726_v44, 0.0 }
0x12b6   :  { %2731 = vadd.xlane.f32.xlu1 %v2730_v46 }
0x1341   :  { %v2729_v53 = vpop.xlane.xlu0 %2728 }
0x1342   :  { %v2733_v61 = vmul.f32 0.032258064, %v2729_v53 }
0x1343   :  { %v2732_v38 = vpop.xlane.xlu1 %2731 }
0x1344   :  { %6445 = vrsqrt.f32 %v2733_v61  ;;  %v2734_v51 = vmul.f32 0.032258064, %v2732_v38  ;;  %vm2737_vm5 = vcmp.eq.f32.partialorder %v2733_v61, inf  ;;  %v2740_v58 = vand.u32 2147483648, %v2733_v61 }
0x1345   :  { %vm2739_vm10 = vcmp.eq.f32.partialorder %v2733_v61, 0.0 }
0x1346   :  { %6447 = vrsqrt.f32 %v2734_v51  ;;  %vm2744_vm11 = vcmp.eq.f32.partialorder %v2734_v51, inf  ;;  %v2747_v7 = vand.u32 2147483648, %v2734_v51  ;;  %vm2746_vm12 = vcmp.eq.f32.partialorder %v2734_v51, 0.0 }
0x134e   :  { %v6446_v55 = vpop.eup %6445 }
0x134f   :  { %v2736_v57 = vmul.f32 %v6446_v55, %v2733_v61 }
0x1350   :  { %v6448_v59 = vpop.eup %6447 }
0x1351   :  { %v2738_v62 = vsel %vm2737_vm5, %v2733_v61, %v2736_v57  ;;  %v2743_v5 = vmul.f32 %v6448_v59, %v2734_v51  ;;  %v6541_v57 = vld [vmem:[%s8074_s2] sm:$0xff] }
0x1352   :  { %v2741_v3 = vsel %vm2739_vm10, %v2740_v58, %v2738_v62 }
0x1353   :  { %v2749_v6 = vadd.f32 1e-06, %v2741_v3  ;;  %v2745_v8 = vsel %vm2744_vm11, %v2734_v51, %v2743_v5 }
0x1354   :  { %v2748_v9 = vsel %vm2746_vm12, %v2747_v7, %v2745_v8  ;;  %v6542_v7 = vld [vmem:[%s8074_s2 + $0x8] sm:$0xff] }
0x1355   :  { %6449 = vrcp.f32 %v2749_v6  ;;  %v2750_v10 = vadd.f32 1e-06, %v2748_v9 }
0x1357   :  { %6451 = vrcp.f32 %v2750_v10 }
0x135f   :  { %v6450_v63 = vpop.eup %6449 }
0x1360   :  { %v2761_v13 = vmul.f32 %v6450_v63, %v2759_v4 }
0x1361   :  { %v6452_v60 = vpop.eup %6451 }
0x1362   :  { %v2762_v32 = vmul.f32 %v6452_v60, %v2760_v41  ;;  %v2769_v14 = vadd.f32 %v5439_v45, %v2761_v13 }
0x1364   :  { %v2770_v12 = vadd.f32 %v5439_v45, %v2762_v32 }
0x1366   :  { %v2776_v16 = vpack.c.bf16 %v2770_v12, %v2769_v14 }
0x1368   :  { %5997 = vmatmul.mubr.msk.bf16.vlgmr.msra.gmra.mrb[80].mxu1 %vm153_vm0, %v2776_v16 }
0x1369   :  { %6002 = vmatprep.mubr.msk.bf16.mxu1 %vm6745_vm1, %v6744_v15 }
0x143b   :  { %v2834_v18 = vpop.f32.mrb[80].mxu1 }
0x143c   :  { %v2835_v19 = vadd.f32 %v5440_v17, %v2834_v18  ;;  %v5998_v20 = vpop.f32.mrb[81].mxu1 }
0x143d   :  { %v2837_v21 = vpop.f32.mrb[82].mxu1 }
0x143e   :  { %v7519_v52 = vpack.c.bf16 %v2835_v19, %v2835_v19  ;;  %v2838_v49 = vadd.f32 %v5440_v17, %v2837_v21  ;;  %v5999_v22 = vpop.f32.mrb[83].mxu1 }
0x1440   :  { %v7521_v23 = vpack.c.bf16 %v2838_v49, %v2838_v49  ;;  %2847 = vrot.lane.b32.xlu0 %v7519_v52, %s6746_s12 }
0x1442   :  { %2849 = vrot.lane.b32.xlu1 %v7521_v23, %s6746_s12 }
0x1444   :  { %2855 = vrot.lane.b32.xlu0 %v7519_v52, %s6747_s17 }
0x1446   :  { %2851 = vrot.lane.b32.xlu1 %v7519_v52, %s6748_s4 }
0x1448   :  { %2859 = vrot.lane.b32.xlu0 %v7519_v52, %s6749_s19 }
0x144a   :  { %2853 = vrot.lane.b32.xlu1 %v7521_v23, %s6748_s4 }
0x144e   :  { %2857 = vrot.lane.b32.xlu1 %v7521_v23, %s6747_s17 }
0x1452   :  { %2907 = vrot.lane.b32.xlu1 %v7521_v23, %s6749_s19 }
0x14b2   :  { %v2848_v48 = vpop.permute.xlu0 %2847 }
0x14b3   :  { %v7539_v24 = vcombine.low %v2848_v48, %v2848_v48 }
0x14b4   :  { %v2850_v54 = vpop.permute.xlu1 %2849 }
0x14b5   :  { %v7541_v25 = vcombine.low %v2850_v54, %v2850_v54  ;;  %2957 = vrot.lane.b32.xlu0 %v7539_v24, %s6749_s19 }
0x14b6   :  { %v2856_v26 = vpop.permute.xlu0 %2855 }
0x14b7   :  { %3007 = vrot.lane.b32.xlu1 %v7541_v25, %s6749_s19  ;;  %v7552_v35 = vcombine.low %v2856_v26, %v2856_v26 }
0x14b8   :  { %v2852_v27 = vpop.permute.xlu1 %2851 }
0x14b9   :  { %v7547_v28 = vcombine.low %v2852_v27, %v2852_v27 }
0x14ba   :  { %v2860_v29 = vpop.permute.xlu0 %2859 }
0x14bb   :  { %v2865_v33 = vsel %vm300_vm6, %v2860_v29, 0  ;;  %3057 = vrot.lane.b32.xlu0 %v7547_v28, %s6749_s19 }
0x14bc   :  { %6001 = vmatpush3.bf16.xpose.msra.mxu1 %v2865_v33  ;;  %v2854_v34 = vpop.permute.xlu1 %2853 }
0x14bd   :  { %v7554_v2 = vcombine.low %v2854_v34, %v2854_v34  ;;  %6012 = vmatprep.subr.bf16.mxu1 %v6744_v15 }
0x14bf   :  { %3157 = vrot.lane.b32.xlu0 %v7552_v35, %s6749_s19  ;;  %3107 = vrot.lane.b32.xlu1 %v7554_v2, %s6749_s19 }
0x14c0   :  { %v2858_v37 = vpop.permute.xlu1 %2857 }
0x14c1   :  { %v7561_v40 = vcombine.low %v2858_v37, %v2858_v37 }
0x14c3   :  { %6003 = vmatmul.mubr.msk.bf16.vlgmr.msra.gmra.mrb[84].mxu1 %vm300_vm6, %v7519_v52  ;;  %3207 = vrot.lane.b32.xlu1 %v7561_v40, %s6749_s19 }
0x14c4   :  { %v2908_v56 = vpop.permute.xlu1 %2907  ;;  %6014 = vmatprep.mubr.msk.bf16.mxu1 %vm6745_vm1, %v6744_v15 }
0x14c5   :  { %v2913_v39 = vsel %vm300_vm6, %v2908_v56, 0 }
0x14c6   :  { %6007 = vmatpush3.bf16.xpose.msra.mxu0 %v2913_v39 }
0x14c7   :  { %6018 = vmatprep.subr.bf16.mxu0 %v6744_v15 }
0x14cd   :  { %6009 = vmatmul.mubr.msk.bf16.vlgmr.msra.gmra.mrb[76].mxu0 %vm300_vm6, %v7521_v23 }
0x14ce   :  { %6020 = vmatprep.mubr.msk.bf16.mxu0 %vm6745_vm1, %v6744_v15 }
0x1527   :  { %v2958_v42 = vpop.permute.xlu0 %2957 }
0x1528   :  { %v2963_v43 = vsel %vm300_vm6, %v2958_v42, 0 }
0x1529   :  { %6013 = vmatpush3.bf16.xpose.msra.mxu1 %v2963_v43  ;;  %v3008_v30 = vpop.permute.xlu1 %3007 }
0x152a   :  { %v3013_v0 = vsel %vm300_vm6, %v3008_v30, 0  ;;  %6024 = vmatprep.subr.bf16.mxu1 %v6744_v15 }
0x152b   :  { %6019 = vmatpush3.bf16.xpose.msra.mxu0 %v3013_v0 }
0x152c   :  { %6030 = vmatprep.subr.bf16.mxu0 %v6744_v15 }
0x152d   :  { %v3058_v44 = vpop.permute.xlu0 %3057 }
0x152e   :  { %v3063_v46 = vsel %vm300_vm6, %v3058_v44, 0 }
0x1530   :  { %6015 = vmatmul.mubr.msk.bf16.vlgmr.msra.gmra.mrb[88].mxu1 %vm300_vm6, %v2848_v48 }
0x1531   :  { %6025 = vmatpush3.bf16.xpose.msra.mxu1 %v3063_v46  ;;  %v3108_v50 = vpop.permute.xlu1 %3107  ;;  %6026 = vmatprep.mubr.msk.bf16.mxu1 %vm6745_vm1, %v6744_v15  ;;  %v3158_v53 = vpop.permute.xlu0 %3157 }
0x1532   :  { %v3113_v1 = vsel %vm300_vm6, %v3108_v50, 0  ;;  %6021 = vmatmul.mubr.msk.bf16.vlgmr.msra.gmra.mrb[80].mxu0 %vm300_vm6, %v2850_v54  ;;  %6036 = vmatprep.subr.bf16.mxu1 %v6744_v15  ;;  %v3163_v38 = vsel %vm300_vm6, %v3158_v53, 0 }
0x1533   :  { %6031 = vmatpush3.bf16.xpose.msra.mxu0 %v3113_v1  ;;  %6032 = vmatprep.mubr.msk.bf16.mxu0 %vm6745_vm1, %v6744_v15 }
0x1534   :  { %6042 = vmatprep.subr.bf16.mxu0 %v6744_v15 }
0x1535   :  { %v3208_v61 = vpop.permute.xlu1 %3207 }
0x1536   :  { %v3213_v51 = vsel %vm300_vm6, %v3208_v61, 0 }
0x1538   :  { %6027 = vmatmul.mubr.msk.bf16.vlgmr.msra.gmra.mrb[92].mxu1 %vm300_vm6, %v2852_v27 }
0x1539   :  { %6037 = vmatpush3.bf16.xpose.msra.mxu1 %v3163_v38  ;;  %6038 = vmatprep.mubr.msk.bf16.mxu1 %vm6745_vm1, %v6744_v15 }
0x153a   :  { %6033 = vmatmul.mubr.msk.bf16.vlgmr.msra.gmra.mrb[84].mxu0 %vm300_vm6, %v2854_v34  ;;  %6048 = vmatprep.subr.bf16.mxu1 %v6744_v15 }
0x153b   :  { %6043 = vmatpush3.bf16.xpose.msra.mxu0 %v3213_v51  ;;  %6044 = vmatprep.mubr.msk.bf16.mxu0 %vm6745_vm1, %v6744_v15 }
0x153c   :  { %6054 = vmatprep.subr.bf16.mxu0 %v6744_v15 }
0x1540   :  { %6039 = vmatmul.mubr.msk.bf16.vlgmr.msra.gmra.mrb[96].mxu1 %vm300_vm6, %v2856_v26 }
0x1541   :  { %6050 = vmatprep.mubr.msk.bf16.mxu1 %vm6745_vm1, %v6744_v15 }
0x1542   :  { %6045 = vmatmul.mubr.msk.bf16.vlgmr.msra.gmra.mrb[88].mxu0 %vm300_vm6, %v2858_v37 }
0x1543   :  { %6056 = vmatprep.mubr.msk.bf16.mxu0 %vm6745_vm1, %v6744_v15 }
0x1596   :  { %v2901_v55 = vpop.f32.mrb[84].mxu1 }
0x1597   :  { %v2902_v58 = vadd.f32 %v6541_v57, %v2901_v55  ;;  %v6004_v59 = vpop.f32.mrb[85].mxu1 }
0x1598   :  { %v2904_v62 = vpop.f32.mrb[86].mxu1 }
0x1599   :  { %v6005_v3 = vpop.f32.mrb[87].mxu1  ;;  %v3255_v5 = vsel %vm300_vm6, %v2902_v58, -inf }
0x159a   :  { %3256 = vmax.xlane.f32.xlu0 %v3255_v5 }
0x15a0   :  { %v2949_v6 = vpop.f32.mrb[76].mxu0 }
0x15a1   :  { %v2950_v8 = vadd.f32 %v6542_v7, %v2949_v6  ;;  %v6010_v9 = vpop.f32.mrb[77].mxu0 }
0x15a2   :  { %v2952_v10 = vpop.f32.mrb[78].mxu0 }
0x15a3   :  { %v6011_v11 = vpop.f32.mrb[79].mxu0  ;;  %v3258_v63 = vsel %vm300_vm6, %v2950_v8, -inf }
0x15a4   :  { %3259 = vmax.xlane.f32.xlu1 %v3258_v63 }
0x1603   :  { %v2999_v4 = vpop.f32.mrb[88].mxu1 }
0x1604   :  { %v3000_v41 = vadd.f32 %v6541_v57, %v2999_v4  ;;  %v6016_v13 = vpop.f32.mrb[89].mxu1 }
0x1605   :  { %v3002_v60 = vpop.f32.mrb[90].mxu1  ;;  %v3049_v45 = vpop.f32.mrb[80].mxu0 }
0x1606   :  { %v7613_v32 = vadd.f32 %v6542_v7, %v3049_v45  ;;  %v6017_v14 = vpop.f32.mrb[91].mxu1  ;;  %v6022_v12 = vpop.f32.mrb[81].mxu0  ;;  %v3261_v16 = vsel %vm300_vm6, %v3000_v41, -inf }
0x1607   :  { %v3052_v17 = vpop.f32.mrb[82].mxu0  ;;  %3262 = vmax.xlane.f32.xlu0 %v3261_v16 }
0x1608   :  { %v6023_v18 = vpop.f32.mrb[83].mxu0  ;;  %v3264_v19 = vsel %vm300_vm6, %v7613_v32, -inf }
0x160b   :  { %3265 = vmax.xlane.f32.xlu0 %v3264_v19  ;;  %v3099_v20 = vpop.f32.mrb[92].mxu1 }
0x160c   :  { %v7618_v21 = vadd.f32 %v6541_v57, %v3099_v20  ;;  %v6028_v49 = vpop.f32.mrb[93].mxu1 }
0x160d   :  { %v3102_v22 = vpop.f32.mrb[94].mxu1  ;;  %v3149_v48 = vpop.f32.mrb[84].mxu0 }
0x160e   :  { %v3150_v54 = vadd.f32 %v6542_v7, %v3149_v48  ;;  %v6029_v26 = vpop.f32.mrb[95].mxu1  ;;  %v6034_v27 = vpop.f32.mrb[85].mxu0  ;;  %v3267_v29 = vsel %vm300_vm6, %v7618_v21, -inf }
0x160f   :  { %v3152_v33 = vpop.f32.mrb[86].mxu0  ;;  %3268 = vmax.xlane.f32.xlu0 %v3267_v29 }
0x1610   :  { %v6035_v34 = vpop.f32.mrb[87].mxu0  ;;  %v3270_v37 = vsel %vm300_vm6, %v3150_v54, -inf }
0x1611   :  { %3271 = vmax.xlane.f32.xlu1 %v3270_v37 }
0x1613   :  { %v3199_v56 = vpop.f32.mrb[96].mxu1 }
0x1614   :  { %v7623_v39 = vadd.f32 %v6541_v57, %v3199_v56  ;;  %v6040_v42 = vpop.f32.mrb[97].mxu1 }
0x1615   :  { %v3202_v43 = vpop.f32.mrb[98].mxu1  ;;  %v3249_v30 = vpop.f32.mrb[88].mxu0 }
0x1616   :  { %v6041_v0 = vpop.f32.mrb[99].mxu1  ;;  %v6046_v44 = vpop.f32.mrb[89].mxu0  ;;  %v3273_v46 = vsel %vm300_vm6, %v7623_v39, -inf  ;;  %v3250_v51 = vadd.f32 %v6542_v7, %v3249_v30 }
0x1617   :  { %v3252_v50 = vpop.f32.mrb[90].mxu0  ;;  %3274 = vmax.xlane.f32.xlu0 %v3273_v46 }
0x1618   :  { %v6047_v1 = vpop.f32.mrb[91].mxu0  ;;  %v3276_v57 = vsel %vm300_vm6, %v3250_v51, -inf }
0x1622   :  { %3399 = vrot.lane.b32.xlu1 %v7521_v23, %s6732_s18 }
0x1626   :  { %3447 = vrot.lane.b32.xlu1 %v7539_v24, %s6732_s18 }
0x1627   :  { %v3257_v53 = vpop.xlane.xlu0 %3256 }
0x1628   :  { %v3279_v61 = vsub.f32 %v2902_v58, %v3257_v53 }
0x162a   :  { %v3287_v38 = vmul.f32 1.442695, %v3279_v61 }
0x162c   :  { %6453 = vpow2.f32 %v3287_v38 }
0x162d   :  { %3351 = vrot.lane.b32.xlu0 %v7519_v52, %s6732_s18 }
0x1631   :  { %v3260_v23 = vpop.xlane.xlu1 %3259 }
0x1632   :  { %v3280_v24 = vsub.f32 %v2950_v8, %v3260_v23 }
0x1634   :  { %v3289_v52 = vmul.f32 1.442695, %v3280_v24 }
0x1636   :  { %v7633_v55 = vpop.eup %6453  ;;  %6455 = vpow2.f32 %v3289_v52 }
0x1637   :  { %v3303_v59 = vsel %vm300_vm6, %v7633_v55, 0.0 }
0x1640   :  { %v7640_v58 = vpop.eup %6455 }
0x1641   :  { %v3306_v62 = vsel %vm300_vm6, %v7640_v58, 0.0 }
0x164a   :  { %3277 = vmax.xlane.f32.xlu1 %v3276_v57 }
0x164c   :  { %3304 = vadd.xlane.f32.xlu0 %v3303_v59 }
0x165b   :  { %3495 = vrot.lane.b32.xlu1 %v7541_v25, %s6732_s18 }
0x167f   :  { %3307 = vadd.xlane.f32.xlu1 %v3306_v62 }
0x1690   :  { %3591 = vrot.lane.b32.xlu1 %v7554_v2, %s6732_s18 }
0x1694   :  { %v3263_v3 = vpop.xlane.xlu0 %3262 }
0x1695   :  { %v3281_v5 = vsub.f32 %v3000_v41, %v3263_v3 }
0x1697   :  { %v3291_v6 = vmul.f32 1.442695, %v3281_v5 }
0x1698   :  { %v3266_v7 = vpop.xlane.xlu0 %3265 }
0x1699   :  { %6457 = vpow2.f32 %v3291_v6  ;;  %v3282_v25 = vsub.f32 %v7613_v32, %v3266_v7 }
0x169b   :  { %v3293_v10 = vmul.f32 1.442695, %v3282_v25 }
0x169c   :  { %v3269_v8 = vpop.xlane.xlu0 %3268 }
0x169d   :  { %6459 = vpow2.f32 %v3293_v10  ;;  %v3283_v18 = vsub.f32 %v7618_v21, %v3269_v8 }
0x169e   :  { %v3272_v9 = vpop.xlane.xlu1 %3271 }
0x169f   :  { %v3284_v11 = vsub.f32 %v3150_v54, %v3272_v9  ;;  %v3295_v19 = vmul.f32 1.442695, %v3283_v18 }
0x16a1   :  { %v3297_v41 = vmul.f32 1.442695, %v3284_v11 }
0x16a2   :  { %v3400_v63 = vpop.permute.xlu1 %3399 }
0x16a3   :  { %v7647_v4 = vpop.eup %6457  ;;  %v3405_v13 = vsel %vm796_vm7, %v3400_v63, 0  ;;  %6461 = vpow2.f32 %v3297_v41 }
0x16a4   :  { %6055 = vmatpush3.bf16.msra.mxu0 %v3405_v13  ;;  %v3275_v60 = vpop.xlane.xlu0 %3274  ;;  %v3309_v2 = vsel %vm300_vm6, %v7647_v4, 0.0  ;;  %6463 = vpow2.f32 %v3295_v19 }
0x16a5   :  { %3310 = vadd.xlane.f32.xlu0 %v3309_v2  ;;  %6066 = vmatprep.subr.bf16.mxu0 %v6744_v15  ;;  %v3285_v20 = vsub.f32 %v7623_v39, %v3275_v60 }
0x16a6   :  { %v3448_v22 = vpop.permute.xlu1 %3447 }
0x16a7   :  { %v7655_v14 = vpop.eup %6459  ;;  %v3299_v49 = vmul.f32 1.442695, %v3285_v20  ;;  %v3453_v43 = vsel %vm796_vm7, %v3448_v22, 0 }
0x16a8   :  { %v3352_v45 = vpop.permute.xlu0 %3351  ;;  %v3312_v12 = vsel %vm300_vm6, %v7655_v14, 0.0 }
0x16a9   :  { %v3357_v32 = vsel %vm796_vm7, %v3352_v45, 0  ;;  %6465 = vpow2.f32 %v3299_v49 }
0x16aa   :  { %6049 = vmatpush3.bf16.msra.mxu1 %v3357_v32 }
0x16ab   :  { %6060 = vmatprep.subr.bf16.mxu1 %v6744_v15 }
0x16ad   :  { %v7659_v16 = vpop.eup %6461 }
0x16ae   :  { %v3318_v17 = vsel %vm300_vm6, %v7659_v16, 0.0  ;;  %v7667_v48 = vpop.eup %6463 }
0x16af   :  { %v3315_v29 = vsel %vm300_vm6, %v7667_v48, 0.0 }
0x16b3   :  { %v7671_v33 = vpop.eup %6465 }
0x16b4   :  { %3313 = vadd.xlane.f32.xlu1 %v3312_v12  ;;  %v3321_v21 = vsel %vm300_vm6, %v7671_v33, 0.0 }
0x16b8   :  { %3319 = vadd.xlane.f32.xlu1 %v3318_v17 }
0x16bb   :  { %3543 = vrot.lane.b32.xlu0 %v7547_v28, %s6732_s18 }
0x16d7   :  { %v3278_v54 = vpop.xlane.xlu1 %3277 }
0x16d8   :  { %v3286_v26 = vsub.f32 %v3250_v51, %v3278_v54 }
0x16d9   :  { %v3305_v27 = vpop.xlane.xlu0 %3304 }
0x16da   :  { %v3301_v28 = vmul.f32 1.442695, %v3286_v26  ;;  %6467 = vrcp.f32 %v3305_v27  ;;  %3316 = vadd.xlane.f32.xlu0 %v3315_v29 }
0x16db   :  { %v3496_v30 = vpop.permute.xlu1 %3495 }
0x16dc   :  { %6469 = vpow2.f32 %v3301_v28  ;;  %v3501_v1 = vsel %vm796_vm7, %v3496_v30, 0 }
0x16de   :  { %3322 = vadd.xlane.f32.xlu0 %v3321_v21 }
0x16e4   :  { %v6468_v34 = vpop.eup %6467 }
0x16e5   :  { %v3335_v37 = vmul.f32 %v6468_v34, %v7633_v55 }
0x16e6   :  { %v7676_v56 = vpop.eup %6469 }
0x16e7   :  { %v3324_v39 = vsel %vm300_vm6, %v7676_v56, 0.0  ;;  %v3343_v42 = vpack.c.bf16 %v3335_v37, %v3335_v37 }
0x16e8   :  { %3325 = vadd.xlane.f32.xlu1 %v3324_v39 }
0x16e9   :  { %6051 = vmatmul.mubr.msk.bf16.vlgmr.msra.gmra.mrb[100].mxu1 %vm300_vm6, %v3343_v42 }
0x16ea   :  { %6061 = vmatpush3.bf16.msra.mxu1 %v3453_v43  ;;  %6062 = vmatprep.mubr.msk.bf16.mxu1 %vm6745_vm1, %v6744_v15  ;;  %v6343_v43 = vld [vmem:[%s8077_s5 + $0x30] sm:$0xff]  }
0x16eb   :  { %6072 = vmatprep.subr.bf16.mxu1 %v6744_v15 }
0x16f4   :  { %3639 = vrot.lane.b32.xlu0 %v7552_v35, %s6732_s18 }
0x16f9   :  { %3687 = vrot.lane.b32.xlu1 %v7561_v40, %s6732_s18 }
0x170c   :  { %v3308_v0 = vpop.xlane.xlu1 %3307 }
0x170d   :  { %6471 = vrcp.f32 %v3308_v0 }
0x1710   :  { %v3592_v53 = vpop.permute.xlu1 %3591 }
0x1711   :  { %v3597_v62 = vsel %vm796_vm7, %v3592_v53, 0 }
0x1717   :  { %v6472_v44 = vpop.eup %6471 }
0x1718   :  { %v3336_v46 = vmul.f32 %v6472_v44, %v7640_v58 }
0x171a   :  { %v3344_v50 = vpack.c.bf16 %v3336_v46, %v3336_v46 }
0x171c   :  { %6057 = vmatmul.mubr.msk.bf16.vlgmr.msra.gmra.mrb[92].mxu0 %vm300_vm6, %v3344_v50 }
0x171d   :  { %6067 = vmatpush3.bf16.msra.mxu0 %v3501_v1  ;;  %6068 = vmatprep.mubr.msk.bf16.mxu0 %vm6745_vm1, %v6744_v15  ;;  %v6344_v1 = vld [vmem:[%s8077_s5 + $0x38] sm:$0xff]  }
0x171e   :  { %6078 = vmatprep.subr.bf16.mxu0 %v6744_v15 }
0x1732   :  { %v3311_v35 = vpop.xlane.xlu0 %3310 }
0x1733   :  { %6473 = vrcp.f32 %v3311_v35 }
0x1736   :  { %v3544_v38 = vpop.permute.xlu0 %3543 }
0x1737   :  { %v3549_v57 = vsel %vm796_vm7, %v3544_v38, 0 }
0x173d   :  { %v6474_v40 = vpop.eup %6473 }
0x173e   :  { %v3337_v61 = vmul.f32 %v6474_v40, %v7647_v4 }
0x1740   :  { %v3345_v51 = vpack.c.bf16 %v3337_v61, %v3337_v61 }
0x1741   :  { %v3314_v55 = vpop.xlane.xlu1 %3313 }
0x1742   :  { %6475 = vrcp.f32 %v3314_v55  ;;  %6063 = vmatmul.mubr.msk.bf16.vlgmr.msra.gmra.mrb[104].mxu1 %vm300_vm6, %v3345_v51 }
0x1743   :  { %6073 = vmatpush3.bf16.msra.mxu1 %v3549_v57  ;;  %6074 = vmatprep.mubr.msk.bf16.mxu1 %vm6745_vm1, %v6744_v15 }
0x1744   :  { %6084 = vmatprep.subr.bf16.mxu1 %v6744_v15 }
0x1745   :  { %v3320_v59 = vpop.xlane.xlu1 %3319 }
0x1746   :  { %6477 = vrcp.f32 %v3320_v59 }
0x174c   :  { %v6476_v23 = vpop.eup %6475 }
0x174d   :  { %v3338_v24 = vmul.f32 %v6476_v23, %v7655_v14 }
0x174f   :  { %v3346_v52 = vpack.c.bf16 %v3338_v24, %v3338_v24 }
0x1750   :  { %v6478_v58 = vpop.eup %6477 }
0x1751   :  { %6069 = vmatmul.mubr.msk.bf16.vlgmr.msra.gmra.mrb[96].mxu0 %vm300_vm6, %v3346_v52  ;;  %v3340_v3 = vmul.f32 %v6478_v58, %v7659_v16 }
0x1752   :  { %6079 = vmatpush3.bf16.msra.mxu0 %v3597_v62  ;;  %6080 = vmatprep.mubr.msk.bf16.mxu0 %vm6745_vm1, %v6744_v15 }
0x1753   :  { %6090 = vmatprep.subr.bf16.mxu0 %v6744_v15  ;;  %v3348_v5 = vpack.c.bf16 %v3340_v3, %v3340_v3 }
0x1759   :  { %6081 = vmatmul.mubr.msk.bf16.vlgmr.msra.gmra.mrb[100].mxu0 %vm300_vm6, %v3348_v5 }
0x175a   :  { %6092 = vmatprep.mubr.msk.bf16.mxu0 %vm6745_vm1, %v6744_v15 }
0x1767   :  { %v3317_v6 = vpop.xlane.xlu0 %3316 }
0x1768   :  { %6479 = vrcp.f32 %v3317_v6 }
0x176b   :  { %v3323_v7 = vpop.xlane.xlu0 %3322 }
0x176c   :  { %6481 = vrcp.f32 %v3323_v7 }
0x176f   :  { %v3640_v8 = vpop.permute.xlu0 %3639 }
0x1770   :  { %v3645_v4 = vsel %vm796_vm7, %v3640_v8, 0 }
0x1772   :  { %v6480_v25 = vpop.eup %6479 }
0x1773   :  { %v3339_v9 = vmul.f32 %v6480_v25, %v7667_v48 }
0x1775   :  { %v3326_v10 = vpop.xlane.xlu1 %3325  ;;  %v3347_v11 = vpack.c.bf16 %v3339_v9, %v3339_v9 }
0x1776   :  { %v6482_v63 = vpop.eup %6481  ;;  %6483 = vrcp.f32 %v3326_v10 }
0x1777   :  { %6075 = vmatmul.mubr.msk.bf16.vlgmr.msra.gmra.mrb[108].mxu1 %vm300_vm6, %v3347_v11  ;;  %v3341_v13 = vmul.f32 %v6482_v63, %v7671_v33 }
0x1778   :  { %6085 = vmatpush3.bf16.msra.mxu1 %v3645_v4  ;;  %6086 = vmatprep.mubr.msk.bf16.mxu1 %vm6745_vm1, %v6744_v15 }
0x1779   :  { %v3688_v60 = vpop.permute.xlu1 %3687  ;;  %6096 = vmatprep.subr.bf16.mxu1 %v6744_v15  ;;  %v3349_v41 = vpack.c.bf16 %v3341_v13, %v3341_v13 }
0x177a   :  { %v3693_v2 = vsel %vm796_vm7, %v3688_v60, 0  ;;  %v5475_v60 = vld [vmem:[#allocation10 + $0x4] ss:$0 sm:$0xff] }
0x177b   :  { %6091 = vmatpush3.bf16.msra.mxu0 %v3693_v2 }
0x177c   :  { %6104 = vmatprep.subr.bf16.mxu0 %v6744_v15 }
0x177f   :  { %6087 = vmatmul.mubr.msk.bf16.vlgmr.msra.gmra.mrb[112].mxu1 %vm300_vm6, %v3349_v41 }
0x1780   :  { %v6484_v45 = vpop.eup %6483  ;;  %6100 = vmatprep.mubr.msk.bf16.mxu1 %vm6745_vm1, %v6744_v15  ;;  %6097 = vmatpush3.bf16.msra.mxu1 %v6343_v43 }
0x1781   :  { %v3342_v32 = vmul.f32 %v6484_v45, %v7676_v56  ;;  %6098 = vmatprep.subr.bf16.mxu1 %v6744_v15 }
0x1783   :  { %v3350_v14 = vpack.c.bf16 %v3342_v32, %v3342_v32 }
0x1784   :  { %6099 = vmatpush3.bf16.msra.mxu1 %v6344_v1 }
0x1785   :  { %6093 = vmatmul.mubr.msk.bf16.vlgmr.msra.gmra.mrb[104].mxu0 %vm300_vm6, %v3350_v14  ;;  %6112 = vmatprep.subr.bf16.mxu1 %v6744_v15 }
0x1786   :  { %6108 = vmatprep.mubr.msk.bf16.mxu0 %vm6745_vm1, %v6744_v15 }
0x17bc   :  { %v3393_v12 = vpop.f32.mrb[100].mxu1 }
0x17bd   :  { %v6052_v16 = vpop.f32.mrb[101].mxu1 }
0x17be   :  { %v3396_v17 = vpop.f32.mrb[102].mxu1 }
0x17bf   :  { %v6053_v18 = vpop.f32.mrb[103].mxu1 }
0x17ef   :  { %v3441_v19 = vpop.f32.mrb[92].mxu0 }
0x17f0   :  { %v6058_v20 = vpop.f32.mrb[93].mxu0 }
0x17f1   :  { %v3444_v49 = vpop.f32.mrb[94].mxu0 }
0x17f2   :  { %v6059_v22 = vpop.f32.mrb[95].mxu0 }
0x1815   :  { %v3489_v48 = vpop.f32.mrb[104].mxu1 }
0x1816   :  { %v6064_v54 = vpop.f32.mrb[105].mxu1 }
0x1817   :  { %v3492_v26 = vpop.f32.mrb[106].mxu1 }
0x1818   :  { %v6065_v27 = vpop.f32.mrb[107].mxu1 }
0x1824   :  { %v3537_v29 = vpop.f32.mrb[96].mxu0 }
0x1825   :  { %v6295_v33 = vpack.i.bf16 %v3537_v29, %v3489_v48  ;;  %v6070_v28 = vpop.f32.mrb[97].mxu0  ;;  %v6345_v29 = vld [vmem:[%s8078_s6 + $0x20] sm:$0xff]  }
0x1826   :  { %v3540_v21 = vpop.f32.mrb[98].mxu0  ;;  %v6347_v28 = vld [vmem:[%s8077_s5 + $0x40] sm:$0xff]  }
0x1827   :  { %v6071_v34 = vpop.f32.mrb[99].mxu0  ;;  %6296 = vrot.lane.b32.xlu0 %v6295_v33, %s6740_s25  ;;  %v6346_v33 = vld [vmem:[%s8078_s6 + $0x28] sm:$0xff]   ;;  %6105 = vmatpush3.bf16.msra.mxu0 %v6347_v28 }
0x1828   :  { %v6348_v21 = vld [vmem:[%s8077_s5 + $0x48] sm:$0xff]   ;;  %6106 = vmatprep.subr.bf16.mxu0 %v6744_v15 }
0x182b   :  { %6107 = vmatpush3.bf16.msra.mxu0 %v6348_v21 }
0x182c   :  { %v3633_v37 = vpop.f32.mrb[100].mxu0  ;;  %6120 = vmatprep.subr.bf16.mxu0 %v6744_v15 }
0x182d   :  { %v6082_v56 = vpop.f32.mrb[101].mxu0 }
0x182e   :  { %v3636_v39 = vpop.f32.mrb[102].mxu0 }
0x182f   :  { %v6083_v42 = vpop.f32.mrb[103].mxu0 }
0x184a   :  { %v3585_v30 = vpop.f32.mrb[108].mxu1 }
0x184b   :  { %v6300_v0 = vpack.i.bf16 %v3633_v37, %v3585_v30  ;;  %v6076_v44 = vpop.f32.mrb[109].mxu1 }
0x184c   :  { %v3588_v46 = vpop.f32.mrb[110].mxu1 }
0x184d   :  { %6301 = vrot.lane.b32.xlu1 %v6300_v0, %s6736_s26  ;;  %v6077_v50 = vpop.f32.mrb[111].mxu1 }
0x1852   :  { %v3681_v35 = vpop.f32.mrb[112].mxu1 }
0x1853   :  { %v6088_v40 = vpop.f32.mrb[113].mxu1 }
0x1854   :  { %v3684_v53 = vpop.f32.mrb[114].mxu1 }
0x1855   :  { %v6089_v61 = vpop.f32.mrb[115].mxu1 }
0x1856   :  { %v5476_v61 = vld [vmem:[#allocation11 + $0x8] ss:$0 sm:$0xff] }
0x1858   :  { %v3729_v38 = vpop.f32.mrb[104].mxu0 }
0x1859   :  { %v6305_v51 = vpack.i.bf16 %v3729_v38, %v3681_v35  ;;  %v6094_v55 = vpop.f32.mrb[105].mxu0 }
0x185a   :  { %v3732_v57 = vpop.f32.mrb[106].mxu0 }
0x185b   :  { %v6095_v59 = vpop.f32.mrb[107].mxu0  ;;  %6306 = vrot.lane.b32.xlu0 %v6305_v51, %s6750_s16 }
0x1899   :  { %v6297_v23 = vpop.permute.xlu0 %6296 }
0x189a   :  { %v6299_v52 = vunpack.i.h.bf16 %v6297_v23  ;;  %v6298_v58 = vunpack.i.l.bf16 %v6297_v23  ;;  %v5477_v23 = vld [vmem:[#allocation11 + $0x9] ss:$0 sm:$0xff] }
0x189c   :  { %v3760_v6 = vsel %vm300_vm6, %v3441_v19, %v6299_v52  ;;  %v3759_v7 = vsel %vm300_vm6, %v3393_v12, %v6298_v58 }
0x18bf   :  { %v6302_v24 = vpop.permute.xlu1 %6301 }
0x18c0   :  { %v6304_v62 = vunpack.i.h.bf16 %v6302_v24  ;;  %v6303_v3 = vunpack.i.l.bf16 %v6302_v24 }
0x18c2   :  { %v3762_v8 = vsel %vm1202_vm8, %v3760_v6, %v6304_v62  ;;  %v3761_v10 = vsel %vm1202_vm8, %v3759_v7, %v6303_v3  ;;  %v5490_v3 = vld [vmem:[#allocation8 + $0x2] ss:$0 sm:$0xff] }
0x18cd   :  { %v6307_v5 = vpop.permute.xlu0 %6306 }
0x18ce   :  { %v6309_v25 = vunpack.i.h.bf16 %v6307_v5  ;;  %v6308_v9 = vunpack.i.l.bf16 %v6307_v5 }
0x18d0   :  { %v3764_v11 = vsel %vm1205_vm9, %v3762_v8, %v6309_v25  ;;  %v3763_v63 = vsel %vm1205_vm9, %v3761_v10, %v6308_v9 }
0x18d1   :  { %v3770_v4 = vpack.c.bf16 %v3764_v11, %v3763_v63 }
0x18d3   :  { %6101 = vmatmul.mubr.msk.bf16.vlgmr.msra.gmra.mrb[116].mxu1 %vm153_vm0, %v3770_v4 }
0x18d4   :  { %6116 = vmatprep.mubr.msk.bf16.mxu1 %vm6745_vm1, %v6744_v15  ;;  %6113 = vmatpush3.bf16.msra.mxu1 %v6345_v29 }
0x18d5   :  { %6114 = vmatprep.subr.bf16.mxu1 %v6744_v15 }
0x18d8   :  { %6115 = vmatpush3.bf16.msra.mxu1 %v6346_v33 }
0x18d9   :  { %6126 = vmatprep.subr.bf16.mxu1 %v6744_v15 }
0x18db   :  { %6117 = vmatmul.mubr.msk.bf16.vlgmr.msra.gmra.mrb[120].mxu1 %vm153_vm0, %v7214_v47 }
0x18dc   :  { %6128 = vmatprep.mubr.msk.bf16.mxu1 %vm6745_vm1, %v6744_v15 }
0x19a6   :  { %v3820_v13 = vpop.f32.mrb[116].mxu1 }
0x19a7   :  { %v3827_v2 = vadd.f32 %v3820_v13, %v7501_v31  ;;  %v6102_v41 = vpop.f32.mrb[117].mxu1  ;;  %v5482_v13 = vld [vmem:[#allocation10 + $0x5] ss:$0 sm:$0xff] }
0x19a8   :  { %v3823_v45 = vpop.f32.mrb[118].mxu1 }
0x19a9   :  { %v7748_v32 = vadd.f32 %v5475_v60, %v3827_v2  ;;  %v3828_v14 = vadd.f32 %v3823_v45, %v7504_v36  ;;  %v6103_v12 = vpop.f32.mrb[119].mxu1 }
0x19ab   :  { %v7751_v16 = vadd.f32 %v5475_v60, %v3828_v14  ;;  %v3843_v17 = vsel %vm153_vm0, %v7748_v32, 0.0 }
0x19ac   :  { %3844 = vadd.xlane.f32.xlu1 %v3843_v17 }
0x19ad   :  { %v3846_v18 = vsel %vm153_vm0, %v7751_v16, 0.0 }
0x19ae   :  { %3847 = vadd.xlane.f32.xlu0 %v3846_v18  ;;  %v4028_v5 = vpop.f32.mrb[120].mxu1 }
0x19af   :  { %v4029_v6 = vadd.f32 %v5490_v3, %v4028_v5  ;;  %v6118_v7 = vpop.f32.mrb[121].mxu1 }
0x19b0   :  { %v4031_v25 = vpop.f32.mrb[122].mxu1 }
0x19b1   :  { %v5564_v9 = vpack.c.bf16 %v4029_v6, %v4029_v6  ;;  %v4032_v8 = vadd.f32 %v5490_v3, %v4031_v25  ;;  %v6119_v10 = vpop.f32.mrb[123].mxu1 }
0x19b3   :  { %v7784_v11 = vpack.c.bf16 %v4032_v8, %v4032_v8  ;;  %v4075_v63 = vsel %vm300_vm6, %v5564_v9, 0 }
0x19b5   :  { %v4121_v4 = vsel %vm300_vm6, %v7784_v11, 0 }
0x19b6   :  { %6127 = vmatpush3.bf16.xpose.msra.mxu1 %v4121_v4 }
0x19b7   :  { %6138 = vmatprep.subr.bf16.mxu1 %v6744_v15 }
0x19bd   :  { %4059 = vrot.lane.b32.xlu1 %v5564_v9, %s6746_s12 }
0x19c1   :  { %4063 = vrot.lane.b32.xlu1 %v5564_v9, %s6748_s4 }
0x1a39   :  { %v3845_v19 = vpop.xlane.xlu1 %3844 }
0x1a3a   :  { %v3849_v20 = vmul.f32 0.03125, %v3845_v19 }
0x1a3b   :  { %v3848_v31 = vpop.xlane.xlu0 %3847 }
0x1a3c   :  { %v3851_v49 = vsub.f32 %v7748_v32, %v3849_v20  ;;  %v3850_v22 = vmul.f32 0.03125, %v3848_v31 }
0x1a3d   :  { %v7797_v14 = vpop.permute.xlu1 %4059 }
0x1a3e   :  { %v3852_v48 = vsub.f32 %v7751_v16, %v3850_v22  ;;  %v3853_v36 = vmul.f32 %v3851_v49, %v3851_v49  ;;  %v3887_v51 = vmul.f32 %v5476_v61, %v3851_v49  ;;  %v4167_v19 = vsel %vm300_vm6, %v7797_v14, 0 }
0x1a40   :  { %v3855_v54 = vsel %vm153_vm0, %v3853_v36, 0.0  ;;  %v3854_v26 = vmul.f32 %v3852_v48, %v3852_v48  ;;  %v3888_v55 = vmul.f32 %v5476_v61, %v3852_v48 }
0x1a41   :  { %3856 = vadd.xlane.f32.xlu0 %v3855_v54  ;;  %v7823_v22 = vpop.permute.xlu1 %4063 }
0x1a42   :  { %v3858_v27 = vsel %vm153_vm0, %v3854_v26, 0.0  ;;  %v4259_v54 = vsel %vm300_vm6, %v7823_v22, 0 }
0x1a45   :  { %3859 = vadd.xlane.f32.xlu0 %v3858_v27 }
0x1a5b   :  { %4061 = vrot.lane.b32.xlu0 %v7784_v11, %s6746_s12 }
0x1a5f   :  { %4065 = vrot.lane.b32.xlu0 %v7784_v11, %s6748_s4 }
0x1ace   :  { %v3857_v34 = vpop.xlane.xlu0 %3856 }
0x1acf   :  { %v3861_v37 = vmul.f32 0.032258064, %v3857_v34 }
0x1ad1   :  { %6485 = vrsqrt.f32 %v3861_v37  ;;  %vm3865_vm13 = vcmp.eq.f32.partialorder %v3861_v37, inf  ;;  %v3868_v30 = vand.u32 2147483648, %v3861_v37  ;;  %vm3867_vm14 = vcmp.eq.f32.partialorder %v3861_v37, 0.0 }
0x1ad2   :  { %v3860_v56 = vpop.xlane.xlu0 %3859 }
0x1ad3   :  { %v3862_v39 = vmul.f32 0.032258064, %v3860_v56 }
0x1ad5   :  { %6487 = vrsqrt.f32 %v3862_v39  ;;  %vm3872_vm15 = vcmp.eq.f32.partialorder %v3862_v39, inf  ;;  %v3875_v1 = vand.u32 2147483648, %v3862_v39  ;;  %vm3874_vm2 = vcmp.eq.f32.partialorder %v3862_v39, 0.0 }
0x1ad6   :  { %v7801_v20 = vpop.permute.xlu0 %4061 }
0x1ad7   :  { %v4213_v49 = vsel %vm300_vm6, %v7801_v20, 0 }
0x1ada   :  { %v7825_v48 = vpop.permute.xlu0 %4065 }
0x1adb   :  { %v6486_v42 = vpop.eup %6485  ;;  %v4305_v29 = vsel %vm300_vm6, %v7825_v48, 0 }
0x1adc   :  { %v3864_v43 = vmul.f32 %v6486_v42, %v3861_v37 }
0x1ade   :  { %v3866_v0 = vsel %vm3865_vm13, %v3861_v37, %v3864_v43 }
0x1adf   :  { %v6488_v44 = vpop.eup %6487  ;;  %v3869_v47 = vsel %vm3867_vm14, %v3868_v30, %v3866_v0  ;;  %v6543_v0 = vld [vmem:[%s8075_s3] ss:$0 sm:$0xff] }
0x1ae0   :  { %v3877_v46 = vadd.f32 1e-06, %v3869_v47  ;;  %v3871_v50 = vmul.f32 %v6488_v44, %v3862_v39 }
0x1ae2   :  { %6489 = vrcp.f32 %v3877_v46  ;;  %v3873_v35 = vsel %vm3872_vm15, %v3862_v39, %v3871_v50 }
0x1ae3   :  { %v3876_v40 = vsel %vm3874_vm2, %v3875_v1, %v3873_v35  ;;  %v6544_v1 = vld [vmem:[%s8075_s3 + $0x1] ss:$0 sm:$0xff] }
0x1ae4   :  { %v3878_v53 = vadd.f32 1e-06, %v3876_v40 }
0x1ae6   :  { %6491 = vrcp.f32 %v3878_v53 }
0x1aec   :  { %v6490_v38 = vpop.eup %6489 }
0x1aed   :  { %v3889_v57 = vmul.f32 %v6490_v38, %v3887_v51 }
0x1aef   :  { %v3897_v52 = vadd.f32 %v5477_v23, %v3889_v57 }
0x1af0   :  { %v6492_v59 = vpop.eup %6491 }
0x1af1   :  { %v3890_v24 = vmul.f32 %v6492_v59, %v3888_v55 }
0x1af3   :  { %v3898_v58 = vadd.f32 %v5477_v23, %v3890_v24 }
0x1af5   :  { %v3904_v62 = vpack.c.bf16 %v3898_v58, %v3897_v52 }
0x1af7   :  { %6109 = vmatmul.mubr.msk.bf16.vlgmr.msra.gmra.mrb[108].mxu0 %vm153_vm0, %v3904_v62 }
0x1af8   :  { %6122 = vmatprep.mubr.msk.bf16.mxu0 %vm6745_vm1, %v6744_v15  ;;  %6121 = vmatpush3.bf16.xpose.msra.mxu0 %v4075_v63 }
0x1af9   :  { %6132 = vmatprep.subr.bf16.mxu0 %v6744_v15 }
0x1bca   :  { %v3962_v60 = vpop.f32.mrb[108].mxu0 }
0x1bcb   :  { %v3963_v2 = vadd.f32 %v5482_v13, %v3962_v60  ;;  %v6110_v41 = vpop.f32.mrb[109].mxu0 }
0x1bcc   :  { %v3965_v45 = vpop.f32.mrb[110].mxu0 }
0x1bcd   :  { %v5562_v12 = vpack.c.bf16 %v3963_v2, %v3963_v2  ;;  %v3966_v17 = vadd.f32 %v5482_v13, %v3965_v45  ;;  %v6111_v18 = vpop.f32.mrb[111].mxu0 }
0x1bcf   :  { %v5563_v31 = vpack.c.bf16 %v3966_v17, %v3966_v17  ;;  %4047 = vrot.lane.b32.xlu1 %v5562_v12, %s6746_s12  ;;  %6123 = vmatmul.mubr.msk.bf16.vlgmr.msra.gmra.mrb[112].mxu0 %vm300_vm6, %v5562_v12 }
0x1bd0   :  { %6133 = vmatpush3.bf16.xpose.msra.mxu0 %v4167_v19  ;;  %6134 = vmatprep.mubr.msk.bf16.mxu0 %vm6745_vm1, %v6744_v15 }
0x1bd1   :  { %4053 = vrot.lane.b32.xlu0 %v5563_v31, %s6748_s4  ;;  %6129 = vmatmul.mubr.msk.bf16.vlgmr.msra.gmra.mrb[124].mxu1 %vm300_vm6, %v5563_v31 }
0x1bd2   :  { %6139 = vmatpush3.bf16.xpose.msra.mxu1 %v4213_v49  ;;  %6144 = vmatprep.subr.bf16.mxu0 %v6744_v15 }
0x1bd3   :  { %4049 = vrot.lane.b32.xlu1 %v5563_v31, %s6746_s12  ;;  %6140 = vmatprep.mubr.msk.bf16.mxu1 %vm6745_vm1, %v6744_v15 }
0x1bd4   :  { %6150 = vmatprep.subr.bf16.mxu1 %v6744_v15 }
0x1bd5   :  { %4069 = vrot.lane.b32.xlu0 %v7784_v11, %s6747_s17 }
0x1bd7   :  { %4051 = vrot.lane.b32.xlu1 %v5562_v12, %s6748_s4 }
0x1bd9   :  { %4057 = vrot.lane.b32.xlu0 %v5563_v31, %s6747_s17 }
0x1bdb   :  { %4067 = vrot.lane.b32.xlu1 %v5564_v9, %s6747_s17 }
0x1bdf   :  { %4055 = vrot.lane.b32.xlu1 %v5562_v12, %s6747_s17 }
0x1be3   :  { %4535 = vrot.lane.b32.xlu1 %v5564_v9, %s6749_s19 }
0x1c41   :  { %v4048_v36 = vpop.permute.xlu1 %4047 }
0x1c42   :  { %6135 = vmatmul.mubr.msk.bf16.vlgmr.msra.gmra.mrb[116].mxu0 %vm300_vm6, %v4048_v36 }
0x1c43   :  { %6145 = vmatpush3.bf16.xpose.msra.mxu0 %v4259_v54  ;;  %6146 = vmatprep.mubr.msk.bf16.mxu0 %vm6745_vm1, %v6744_v15  ;;  %v4054_v26 = vpop.permute.xlu0 %4053 }
0x1c44   :  { %6156 = vmatprep.subr.bf16.mxu0 %v6744_v15 }
0x1c45   :  { %v4050_v27 = vpop.permute.xlu1 %4049 }
0x1c46   :  { %6141 = vmatmul.mubr.msk.bf16.vlgmr.msra.gmra.mrb[128].mxu1 %vm300_vm6, %v4050_v27 }
0x1c47   :  { %6151 = vmatpush3.bf16.xpose.msra.mxu1 %v4305_v29  ;;  %6152 = vmatprep.mubr.msk.bf16.mxu1 %vm6745_vm1, %v6744_v15  ;;  %v7840_v28 = vpop.permute.xlu0 %4069 }
0x1c48   :  { %6162 = vmatprep.subr.bf16.mxu1 %v6744_v15  ;;  %v4397_v34 = vsel %vm300_vm6, %v7840_v28, 0 }
0x1c49   :  { %v4052_v33 = vpop.permute.xlu1 %4051 }
0x1c4a   :  { %6147 = vmatmul.mubr.msk.bf16.vlgmr.msra.gmra.mrb[120].mxu0 %vm300_vm6, %v4052_v33 }
0x1c4b   :  { %6158 = vmatprep.mubr.msk.bf16.mxu0 %vm6745_vm1, %v6744_v15  ;;  %v4058_v39 = vpop.permute.xlu0 %4057 }
0x1c4d   :  { %v7844_v21 = vpop.permute.xlu1 %4067 }
0x1c4e   :  { %v4351_v37 = vsel %vm300_vm6, %v7844_v21, 0  ;;  %6153 = vmatmul.mubr.msk.bf16.vlgmr.msra.gmra.mrb[132].mxu1 %vm300_vm6, %v4054_v26 }
0x1c4f   :  { %6163 = vmatpush3.bf16.xpose.msra.mxu1 %v4397_v34  ;;  %6157 = vmatpush3.bf16.xpose.msra.mxu0 %v4351_v37 }
0x1c50   :  { %6164 = vmatprep.mubr.msk.bf16.mxu1 %vm6745_vm1, %v6744_v15  ;;  %6168 = vmatprep.subr.bf16.mxu0 %v6744_v15 }
0x1c51   :  { %v4056_v56 = vpop.permute.xlu1 %4055  ;;  %6174 = vmatprep.subr.bf16.mxu1 %v6744_v15 }
0x1c55   :  { %v4536_v42 = vpop.permute.xlu1 %4535 }
0x1c56   :  { %v4541_v43 = vsel %vm796_vm7, %v4536_v42, 0  ;;  %6159 = vmatmul.mubr.msk.bf16.vlgmr.msra.gmra.mrb[124].mxu0 %vm300_vm6, %v4056_v56  ;;  %6165 = vmatmul.mubr.msk.bf16.vlgmr.msra.gmra.mrb[136].mxu1 %vm300_vm6, %v4058_v39  ;;  %v5508_v56 = vcombine.low %v7797_v14, %v7797_v14  ;;  %v5510_v39 = vcombine.low %v7801_v20, %v7801_v20 }
0x1c57   :  { %6169 = vmatpush3.bf16.msra.mxu0 %v4541_v43  ;;  %6176 = vmatprep.mubr.msk.bf16.mxu1 %vm6745_vm1, %v6744_v15 }
0x1c58   :  { %6170 = vmatprep.mubr.msk.bf16.mxu0 %vm6745_vm1, %v6744_v15  ;;  %6180 = vmatprep.subr.bf16.mxu0 %v6744_v15 }
0x1ca2   :  { %v4111_v30 = vpop.f32.mrb[112].mxu0 }
0x1ca3   :  { %v7866_v44 = vadd.f32 %v6543_v0, %v4111_v30  ;;  %v6124_v47 = vpop.f32.mrb[113].mxu0 }
0x1ca4   :  { %v4114_v46 = vpop.f32.mrb[114].mxu0  ;;  %v4157_v50 = vpop.f32.mrb[124].mxu1 }
0x1ca5   :  { %v4158_v35 = vadd.f32 %v6544_v1, %v4157_v50  ;;  %v6125_v40 = vpop.f32.mrb[115].mxu0  ;;  %v6130_v53 = vpop.f32.mrb[125].mxu1  ;;  %v4439_v61 = vsel %vm300_vm6, %v7866_v44, -inf }
0x1ca6   :  { %4440 = vmax.xlane.f32.xlu1 %v4439_v61  ;;  %v4160_v38 = vpop.f32.mrb[126].mxu1 }
0x1ca7   :  { %v6131_v51 = vpop.f32.mrb[127].mxu1  ;;  %v4442_v55 = vsel %vm300_vm6, %v4158_v35, -inf }
0x1ca8   :  { %4443 = vmax.xlane.f32.xlu0 %v4442_v55 }
0x1d15   :  { %v4203_v57 = vpop.f32.mrb[116].mxu0 }
0x1d16   :  { %v7874_v59 = vadd.f32 %v6543_v0, %v4203_v57  ;;  %v6136_v23 = vpop.f32.mrb[117].mxu0 }
0x1d17   :  { %v4206_v24 = vpop.f32.mrb[118].mxu0 }
0x1d18   :  { %v6137_v52 = vpop.f32.mrb[119].mxu0  ;;  %v4445_v58 = vsel %vm300_vm6, %v7874_v59, -inf }
0x1d19   :  { %4446 = vmax.xlane.f32.xlu0 %v4445_v58  ;;  %v4249_v62 = vpop.f32.mrb[128].mxu1 }
0x1d1a   :  { %v4250_v3 = vadd.f32 %v6544_v1, %v4249_v62  ;;  %v6142_v5 = vpop.f32.mrb[129].mxu1 }
0x1d1b   :  { %v4252_v6 = vpop.f32.mrb[130].mxu1 }
0x1d1c   :  { %v6143_v7 = vpop.f32.mrb[131].mxu1  ;;  %v4448_v25 = vsel %vm300_vm6, %v4250_v3, -inf }
0x1d1d   :  { %v4295_v9 = vpop.f32.mrb[120].mxu0  ;;  %4449 = vmax.xlane.f32.xlu0 %v4448_v25 }
0x1d1e   :  { %v4296_v8 = vadd.f32 %v6543_v0, %v4295_v9  ;;  %v6148_v10 = vpop.f32.mrb[121].mxu0 }
0x1d1f   :  { %v4298_v63 = vpop.f32.mrb[122].mxu0 }
0x1d20   :  { %v6149_v4 = vpop.f32.mrb[123].mxu0  ;;  %v4451_v13 = vsel %vm300_vm6, %v4296_v8, -inf  ;;  %v5514_v63 = vcombine.low %v7825_v48, %v7825_v48 }
0x1d21   :  { %4452 = vmax.xlane.f32.xlu1 %v4451_v13  ;;  %v4341_v60 = vpop.f32.mrb[132].mxu1  ;;  %v5516_v4 = vcombine.low %v7844_v21, %v7844_v21 }
0x1d22   :  { %v7880_v2 = vadd.f32 %v6544_v1, %v4341_v60  ;;  %v6154_v41 = vpop.f32.mrb[133].mxu1 }
0x1d23   :  { %v4344_v45 = vpop.f32.mrb[134].mxu1 }
0x1d24   :  { %v6155_v12 = vpop.f32.mrb[135].mxu1  ;;  %v4454_v17 = vsel %vm300_vm6, %v7880_v2, -inf }
0x1d25   :  { %4455 = vmax.xlane.f32.xlu0 %v4454_v17 }
0x1d29   :  { %v4387_v18 = vpop.f32.mrb[124].mxu0  ;;  %v4433_v19 = vpop.f32.mrb[136].mxu1 }
0x1d2a   :  { %v4388_v31 = vadd.f32 %v6543_v0, %v4387_v18  ;;  %v7884_v49 = vadd.f32 %v6544_v1, %v4433_v19  ;;  %v6160_v36 = vpop.f32.mrb[125].mxu0  ;;  %v6166_v54 = vpop.f32.mrb[137].mxu1  ;;  %v5512_v1 = vcombine.low %v7823_v22, %v7823_v22 }
0x1d2b   :  { %v4390_v26 = vpop.f32.mrb[126].mxu0  ;;  %v4436_v27 = vpop.f32.mrb[138].mxu1 }
0x1d2c   :  { %v6161_v29 = vpop.f32.mrb[127].mxu0  ;;  %v6167_v33 = vpop.f32.mrb[139].mxu1  ;;  %v4457_v34 = vsel %vm300_vm6, %v4388_v31, -inf  ;;  %v4460_v37 = vsel %vm300_vm6, %v7884_v49, -inf }
0x1d2d   :  { %4458 = vmax.xlane.f32.xlu1 %v4457_v34  ;;  %4461 = vmax.xlane.f32.xlu0 %v4460_v37  ;;  %v5518_v37 = vcombine.low %v7840_v28, %v7840_v28 }
0x1d33   :  { %v4441_v30 = vpop.xlane.xlu1 %4440 }
0x1d34   :  { %v4463_v0 = vsub.f32 %v7866_v44, %v4441_v30 }
0x1d35   :  { %v4444_v42 = vpop.xlane.xlu0 %4443 }
0x1d36   :  { %v4464_v43 = vsub.f32 %v4158_v35, %v4444_v42  ;;  %v4471_v46 = vmul.f32 1.442695, %v4463_v0 }
0x1d38   :  { %v4473_v47 = vmul.f32 1.442695, %v4464_v43 }
0x1d3a   :  { %6493 = vpow2.f32 %v4473_v47 }
0x1d3b   :  { %6495 = vpow2.f32 %v4471_v46 }
0x1d3e   :  { %4633 = vrot.lane.b32.xlu1 %v5508_v56, %s6749_s19 }
0x1d42   :  { %4683 = vrot.lane.b32.xlu1 %v5510_v39, %s6749_s19 }
0x1d43   :  { %4583 = vrot.lane.b32.xlu0 %v7784_v11, %s6749_s19 }
0x1d44   :  { %v7898_v14 = vpop.eup %6493 }
0x1d45   :  { %v4490_v50 = vsel %vm300_vm6, %v7898_v14, 0.0  ;;  %v7902_v20 = vpop.eup %6495 }
0x1d46   :  { %v4487_v11 = vsel %vm300_vm6, %v7902_v20, 0.0 }
0x1d62   :  { %4491 = vadd.xlane.f32.xlu0 %v4490_v50 }
0x1d66   :  { %4488 = vadd.xlane.f32.xlu1 %v4487_v11 }
0x1d77   :  { %4733 = vrot.lane.b32.xlu1 %v5512_v1, %s6749_s19 }
0x1da6   :  { %v4447_v44 = vpop.xlane.xlu0 %4446 }
0x1da7   :  { %v4465_v35 = vsub.f32 %v7874_v59, %v4447_v44 }
0x1da9   :  { %v4475_v40 = vmul.f32 1.442695, %v4465_v35 }
0x1daa   :  { %v4450_v53 = vpop.xlane.xlu0 %4449 }
0x1dab   :  { %6497 = vpow2.f32 %v4475_v40  ;;  %v4466_v61 = vsub.f32 %v4250_v3, %v4450_v53 }
0x1dad   :  { %v4477_v38 = vmul.f32 1.442695, %v4466_v61 }
0x1dae   :  { %v4453_v51 = vpop.xlane.xlu1 %4452 }
0x1daf   :  { %6499 = vpow2.f32 %v4477_v38  ;;  %v4467_v55 = vsub.f32 %v4296_v8, %v4453_v51 }
0x1db1   :  { %v4479_v57 = vmul.f32 1.442695, %v4467_v55 }
0x1db2   :  { %v4456_v24 = vpop.xlane.xlu0 %4455 }
0x1db3   :  { %6501 = vpow2.f32 %v4479_v57  ;;  %v4468_v13 = vsub.f32 %v7880_v2, %v4456_v24 }
0x1db5   :  { %v7910_v23 = vpop.eup %6497  ;;  %v4481_v60 = vmul.f32 1.442695, %v4468_v13 }
0x1db6   :  { %v4493_v22 = vsel %vm300_vm6, %v7910_v23, 0.0 }
0x1db7   :  { %4494 = vadd.xlane.f32.xlu1 %v4493_v22 }
0x1db9   :  { %v7914_v52 = vpop.eup %6499 }
0x1dba   :  { %v4459_v59 = vpop.xlane.xlu1 %4458  ;;  %v4462_v58 = vpop.xlane.xlu0 %4461  ;;  %v4496_v62 = vsel %vm300_vm6, %v7914_v52, 0.0 }
0x1dbb   :  { %v4469_v3 = vsub.f32 %v4388_v31, %v4459_v59  ;;  %4497 = vadd.xlane.f32.xlu0 %v4496_v62  ;;  %v4470_v41 = vsub.f32 %v7884_v49, %v4462_v58 }
0x1dbd   :  { %v7918_v5 = vpop.eup %6501  ;;  %v4483_v6 = vmul.f32 1.442695, %v4469_v3  ;;  %v4485_v45 = vmul.f32 1.442695, %v4470_v41 }
0x1dbe   :  { %v4584_v7 = vpop.permute.xlu0 %4583  ;;  %v4499_v25 = vsel %vm300_vm6, %v7918_v5, 0.0  ;;  %v4634_v12 = vpop.permute.xlu1 %4633 }
0x1dbf   :  { %6503 = vpow2.f32 %v4483_v6  ;;  %v4589_v9 = vsel %vm796_vm7, %v4584_v7, 0  ;;  %4500 = vadd.xlane.f32.xlu1 %v4499_v25  ;;  %v4639_v34 = vsel %vm796_vm7, %v4634_v12, 0 }
0x1dc0   :  { %6175 = vmatpush3.bf16.msra.mxu1 %v4589_v9  ;;  %6505 = vpow2.f32 %v4481_v60 }
0x1dc1   :  { %6186 = vmatprep.subr.bf16.mxu1 %v6744_v15  ;;  %6507 = vpow2.f32 %v4485_v45 }
0x1dc2   :  { %v4684_v18 = vpop.permute.xlu1 %4683 }
0x1dc3   :  { %v4689_v27 = vsel %vm796_vm7, %v4684_v18, 0 }
0x1dc9   :  { %v7924_v8 = vpop.eup %6503 }
0x1dca   :  { %v4505_v10 = vsel %vm300_vm6, %v7924_v8, 0.0  ;;  %v7936_v17 = vpop.eup %6505 }
0x1dcb   :  { %4506 = vadd.xlane.f32.xlu1 %v4505_v10  ;;  %v4502_v19 = vsel %vm300_vm6, %v7936_v17, 0.0  ;;  %v7940_v31 = vpop.eup %6507 }
0x1dcc   :  { %v4508_v2 = vsel %vm300_vm6, %v7940_v31, 0.0 }
0x1dd1   :  { %4783 = vrot.lane.b32.xlu0 %v5514_v63, %s6749_s19 }
0x1ddc   :  { %4833 = vrot.lane.b32.xlu1 %v5516_v4, %s6749_s19 }
0x1def   :  { %v4492_v48 = vpop.xlane.xlu0 %4491 }
0x1df0   :  { %6509 = vrcp.f32 %v4492_v48  ;;  %4503 = vadd.xlane.f32.xlu0 %v4502_v19 }
0x1df3   :  { %v4489_v21 = vpop.xlane.xlu1 %4488 }
0x1df4   :  { %6511 = vrcp.f32 %v4489_v21  ;;  %4509 = vadd.xlane.f32.xlu0 %v4508_v2 }
0x1df7   :  { %v4734_v56 = vpop.permute.xlu1 %4733 }
0x1dfa   :  { %v6510_v49 = vpop.eup %6509 }
0x1dfb   :  { %v4520_v36 = vmul.f32 %v6510_v49, %v7898_v14  ;;  %v4739_v14 = vsel %vm796_vm7, %v4734_v56, 0 }
0x1dfd   :  { %v4528_v54 = vpack.c.bf16 %v4520_v36, %v4520_v36 }
0x1dfe   :  { %v6512_v26 = vpop.eup %6511 }
0x1dff   :  { %v4519_v29 = vmul.f32 %v6512_v26, %v7902_v20  ;;  %6177 = vmatmul.mubr.msk.bf16.vlgmr.msra.gmra.mrb[140].mxu1 %vm300_vm6, %v4528_v54 }
0x1e00   :  { %6187 = vmatpush3.bf16.msra.mxu1 %v4689_v27  ;;  %6188 = vmatprep.mubr.msk.bf16.mxu1 %vm6745_vm1, %v6744_v15 }
0x1e01   :  { %v4527_v33 = vpack.c.bf16 %v4519_v29, %v4519_v29  ;;  %6198 = vmatprep.subr.bf16.mxu1 %v6744_v15  ;;  %v6349_v29 = vld [vmem:[%s8077_s5 + $0x50] sm:$0xff]  }
0x1e03   :  { %6171 = vmatmul.mubr.msk.bf16.vlgmr.msra.gmra.mrb[128].mxu0 %vm300_vm6, %v4527_v33  ;;  %v6350_v33 = vld [vmem:[%s8077_s5 + $0x58] sm:$0xff]  }
0x1e04   :  { %6181 = vmatpush3.bf16.msra.mxu0 %v4639_v34  ;;  %6182 = vmatprep.mubr.msk.bf16.mxu0 %vm6745_vm1, %v6744_v15 }
0x1e05   :  { %6192 = vmatprep.subr.bf16.mxu0 %v6744_v15 }
0x1e0a   :  { %4883 = vrot.lane.b32.xlu0 %v5518_v37, %s6749_s19 }
0x1e44   :  { %v4495_v39 = vpop.xlane.xlu1 %4494 }
0x1e45   :  { %6513 = vrcp.f32 %v4495_v39 }
0x1e48   :  { %v4498_v42 = vpop.xlane.xlu0 %4497 }
0x1e49   :  { %6515 = vrcp.f32 %v4498_v42 }
0x1e4c   :  { %v4501_v43 = vpop.xlane.xlu1 %4500  ;;  %v4784_v28 = vpop.permute.xlu0 %4783 }
0x1e4d   :  { %6517 = vrcp.f32 %v4501_v43  ;;  %v4789_v44 = vsel %vm796_vm7, %v4784_v28, 0 }
0x1e4f   :  { %v6514_v30 = vpop.eup %6513 }
0x1e50   :  { %v4521_v0 = vmul.f32 %v6514_v30, %v7910_v23 }
0x1e52   :  { %v4529_v47 = vpack.c.bf16 %v4521_v0, %v4521_v0 }
0x1e53   :  { %v6516_v46 = vpop.eup %6515 }
0x1e54   :  { %v4522_v50 = vmul.f32 %v6516_v46, %v7914_v52  ;;  %6183 = vmatmul.mubr.msk.bf16.vlgmr.msra.gmra.mrb[132].mxu0 %vm300_vm6, %v4529_v47 }
0x1e55   :  { %6193 = vmatpush3.bf16.msra.mxu0 %v4739_v14  ;;  %6194 = vmatprep.mubr.msk.bf16.mxu0 %vm6745_vm1, %v6744_v15 }
0x1e56   :  { %v4530_v20 = vpack.c.bf16 %v4522_v50, %v4522_v50  ;;  %6204 = vmatprep.subr.bf16.mxu0 %v6744_v15 }
0x1e57   :  { %v6518_v11 = vpop.eup %6517 }
0x1e58   :  { %v4523_v1 = vmul.f32 %v6518_v11, %v7918_v5  ;;  %v4507_v35 = vpop.xlane.xlu1 %4506  ;;  %6189 = vmatmul.mubr.msk.bf16.vlgmr.msra.gmra.mrb[144].mxu1 %vm300_vm6, %v4530_v20 }
0x1e59   :  { %6519 = vrcp.f32 %v4507_v35  ;;  %6199 = vmatpush3.bf16.msra.mxu1 %v4789_v44  ;;  %6200 = vmatprep.mubr.msk.bf16.mxu1 %vm6745_vm1, %v6744_v15 }
0x1e5a   :  { %v4531_v40 = vpack.c.bf16 %v4523_v1, %v4523_v1  ;;  %6210 = vmatprep.subr.bf16.mxu1 %v6744_v15 }
0x1e5c   :  { %6195 = vmatmul.mubr.msk.bf16.vlgmr.msra.gmra.mrb[136].mxu0 %vm300_vm6, %v4531_v40  ;;  %v4834_v53 = vpop.permute.xlu1 %4833 }
0x1e5d   :  { %v4839_v61 = vsel %vm796_vm7, %v4834_v53, 0  ;;  %6206 = vmatprep.mubr.msk.bf16.mxu0 %vm6745_vm1, %v6744_v15 }
0x1e5e   :  { %6205 = vmatpush3.bf16.msra.mxu0 %v4839_v61 }
0x1e5f   :  { %6216 = vmatprep.subr.bf16.mxu0 %v6744_v15 }
0x1e63   :  { %v6520_v38 = vpop.eup %6519 }
0x1e64   :  { %v4525_v51 = vmul.f32 %v6520_v38, %v7924_v8 }
0x1e66   :  { %v4533_v55 = vpack.c.bf16 %v4525_v51, %v4525_v51 }
0x1e68   :  { %6207 = vmatmul.mubr.msk.bf16.vlgmr.msra.gmra.mrb[140].mxu0 %vm300_vm6, %v4533_v55 }
0x1e69   :  { %6220 = vmatprep.mubr.msk.bf16.mxu0 %vm6745_vm1, %v6744_v15  ;;  %6217 = vmatpush3.bf16.msra.mxu0 %v6349_v29 }
0x1e6a   :  { %6218 = vmatprep.subr.bf16.mxu0 %v6744_v15 }
0x1e6d   :  { %6219 = vmatpush3.bf16.msra.mxu0 %v6350_v33 }
0x1e6e   :  { %6232 = vmatprep.subr.bf16.mxu0 %v6744_v15 }
0x1e7d   :  { %v4504_v57 = vpop.xlane.xlu0 %4503 }
0x1e7e   :  { %6521 = vrcp.f32 %v4504_v57 }
0x1e81   :  { %v4510_v23 = vpop.xlane.xlu0 %4509 }
0x1e82   :  { %6523 = vrcp.f32 %v4510_v23 }
0x1e85   :  { %v4884_v52 = vpop.permute.xlu0 %4883 }
0x1e86   :  { %v4889_v62 = vsel %vm796_vm7, %v4884_v52, 0 }
0x1e88   :  { %v6522_v24 = vpop.eup %6521 }
0x1e89   :  { %v4524_v22 = vmul.f32 %v6522_v24, %v7936_v17 }
0x1e8b   :  { %v4532_v59 = vpack.c.bf16 %v4524_v22, %v4524_v22  ;;  %v5527_v22 = vld [vmem:[#allocation10 + $0x6] ss:$0 sm:$0xff] }
0x1e8c   :  { %v6524_v58 = vpop.eup %6523 }
0x1e8d   :  { %6201 = vmatmul.mubr.msk.bf16.vlgmr.msra.gmra.mrb[148].mxu1 %vm300_vm6, %v4532_v59  ;;  %v4526_v3 = vmul.f32 %v6524_v58, %v7940_v31 }
0x1e8e   :  { %6211 = vmatpush3.bf16.msra.mxu1 %v4889_v62  ;;  %6212 = vmatprep.mubr.msk.bf16.mxu1 %vm6745_vm1, %v6744_v15 }
0x1e8f   :  { %6224 = vmatprep.subr.bf16.mxu1 %v6744_v15  ;;  %v4534_v5 = vpack.c.bf16 %v4526_v3, %v4526_v3 }
0x1e95   :  { %6213 = vmatmul.mubr.msk.bf16.vlgmr.msra.gmra.mrb[152].mxu1 %vm300_vm6, %v4534_v5 }
0x1e96   :  { %6228 = vmatprep.mubr.msk.bf16.mxu1 %vm6745_vm1, %v6744_v15 }
0x1ed2   :  { %v4625_v6 = vpop.f32.mrb[140].mxu1 }
0x1ed3   :  { %v6178_v7 = vpop.f32.mrb[141].mxu1 }
0x1ed4   :  { %v4628_v25 = vpop.f32.mrb[142].mxu1 }
0x1ed5   :  { %v6179_v9 = vpop.f32.mrb[143].mxu1 }
0x1ed6   :  { %v4577_v8 = vpop.f32.mrb[128].mxu0 }
0x1ed7   :  { %v6172_v10 = vpop.f32.mrb[129].mxu0 }
0x1ed8   :  { %v4580_v63 = vpop.f32.mrb[130].mxu0 }
0x1ed9   :  { %v6173_v4 = vpop.f32.mrb[131].mxu0 }
0x1f27   :  { %v4675_v13 = vpop.f32.mrb[132].mxu0 }
0x1f28   :  { %v6184_v60 = vpop.f32.mrb[133].mxu0 }
0x1f29   :  { %v4678_v41 = vpop.f32.mrb[134].mxu0 }
0x1f2a   :  { %v6185_v45 = vpop.f32.mrb[135].mxu0 }
0x1f2b   :  { %v4725_v12 = vpop.f32.mrb[144].mxu1  ;;  %v6351_v45 = vld [vmem:[%s8078_s6 + $0x30] sm:$0xff]  }
0x1f2c   :  { %v6310_v17 = vpack.i.bf16 %v4725_v12, %v4675_v13  ;;  %v6190_v18 = vpop.f32.mrb[145].mxu1  ;;  %6225 = vmatpush3.bf16.msra.mxu1 %v6351_v45  ;;  %v6352_v12 = vld [vmem:[%s8078_s6 + $0x38] sm:$0xff]  }
0x1f2d   :  { %v4728_v48 = vpop.f32.mrb[146].mxu1  ;;  %6226 = vmatprep.subr.bf16.mxu1 %v6744_v15  ;;  %v6354_v18 = vld [vmem:[%s8079_s7 + $0x28] sm:$0xff]  }
0x1f2e   :  { %6311 = vrot.lane.b32.xlu1 %v6310_v17, %s6740_s25  ;;  %v6191_v19 = vpop.f32.mrb[147].mxu1  ;;  %v6353_v17 = vld [vmem:[%s8079_s7 + $0x20] sm:$0xff]  }
0x1f2f   :  { %v4775_v31 = vpop.f32.mrb[136].mxu0 }
0x1f30   :  { %v6196_v21 = vpop.f32.mrb[137].mxu0  ;;  %6227 = vmatpush3.bf16.msra.mxu1 %v6352_v12 }
0x1f31   :  { %v4778_v2 = vpop.f32.mrb[138].mxu0 }
0x1f32   :  { %v6197_v49 = vpop.f32.mrb[139].mxu0 }
0x1f3b   :  { %v4875_v36 = vpop.f32.mrb[140].mxu0 }
0x1f3c   :  { %v6208_v54 = vpop.f32.mrb[141].mxu0 }
0x1f3d   :  { %v4878_v26 = vpop.f32.mrb[142].mxu0 }
0x1f3e   :  { %v6209_v27 = vpop.f32.mrb[143].mxu0 }
0x1f60   :  { %v4825_v34 = vpop.f32.mrb[148].mxu1 }
0x1f61   :  { %v6315_v37 = vpack.i.bf16 %v4825_v34, %v4775_v31  ;;  %v6202_v56 = vpop.f32.mrb[149].mxu1 }
0x1f62   :  { %v4828_v39 = vpop.f32.mrb[150].mxu1 }
0x1f63   :  { %6316 = vrot.lane.b32.xlu0 %v6315_v37, %s6736_s26  ;;  %v6203_v42 = vpop.f32.mrb[151].mxu1 }
0x1f64   :  { %v5528_v42 = vld [vmem:[#allocation11 + $0xa] ss:$0 sm:$0xff] }
0x1f68   :  { %v4925_v43 = vpop.f32.mrb[152].mxu1 }
0x1f69   :  { %v6320_v30 = vpack.i.bf16 %v4925_v43, %v4875_v36  ;;  %v6214_v0 = vpop.f32.mrb[153].mxu1 }
0x1f6a   :  { %v4928_v47 = vpop.f32.mrb[154].mxu1 }
0x1f6b   :  { %6321 = vrot.lane.b32.xlu1 %v6320_v30, %s6750_s16  ;;  %v6215_v46 = vpop.f32.mrb[155].mxu1 }
0x1fa0   :  { %v6312_v14 = vpop.permute.xlu1 %6311 }
0x1fa1   :  { %v6314_v28 = vunpack.i.h.bf16 %v6312_v14  ;;  %v6313_v20 = vunpack.i.l.bf16 %v6312_v14  ;;  %v5529_v14 = vld [vmem:[#allocation11 + $0xb] ss:$0 sm:$0xff] }
0x1fa3   :  { %v4956_v35 = vsel %vm300_vm6, %v4625_v6, %v6314_v28  ;;  %v4955_v40 = vsel %vm300_vm6, %v4577_v8, %v6313_v20 }
0x1fd5   :  { %v6317_v50 = vpop.permute.xlu0 %6316 }
0x1fd6   :  { %v6319_v11 = vunpack.i.h.bf16 %v6317_v50  ;;  %v6318_v1 = vunpack.i.l.bf16 %v6317_v50 }
0x1fd8   :  { %v4958_v38 = vsel %vm1202_vm8, %v4956_v35, %v6319_v11  ;;  %v4957_v51 = vsel %vm1202_vm8, %v4955_v40, %v6318_v1  ;;  %v6355_v1 = vld [vmem:[%s8079_s7 + $0x30] sm:$0xff]  }
0x1fd9   :  { %v5534_v35 = vld [vmem:[#allocation8 + $0x3] ss:$0 sm:$0xff] }
0x1fdd   :  { %v6322_v44 = vpop.permute.xlu1 %6321 }
0x1fde   :  { %v6324_v53 = vunpack.i.h.bf16 %v6322_v44  ;;  %v6323_v61 = vunpack.i.l.bf16 %v6322_v44  ;;  %v6356_v44 = vld [vmem:[%s8079_s7 + $0x38] sm:$0xff]   ;;  %s6751_s7 = smov [#allocation14]  }
0x1fdf   :  { %s5323_s20 = sshll.u32 %s6751_s7, 4  ;;  %s5324_s20 = int_to_ptr.vmem [resolvable:$true] %s5323_s20 }
0x1fe0   :  { %v4960_v55 = vsel %vm1205_vm9, %v4958_v38, %v6324_v53  ;;  %v4959_v57 = vsel %vm1205_vm9, %v4957_v51, %v6323_v61  ;;  %s6699_s21 = scalar_lea.vmem %s5324_s20, 256  ;;  %p6704_p1 = scmp.lt.s32.totalorder %s5324_s20, %s5324_s20 }
0x1fe1   :  { %v4966_v23 = vpack.c.bf16 %v4960_v55, %v4959_v57  ;;  %p6700_p0 = scmp.ne.s32.totalorder %s5324_s20, %s6699_s21  ;;  %p6705_p2 = scmp.lt.s32.totalorder %s6699_s21, %s6699_s21 }
0x1fe3   :  { %6221 = vmatmul.mubr.msk.bf16.vlgmr.msra.gmra.mrb[144].mxu0 %vm153_vm0, %v4966_v23  ;;  %p6706_p3 = por %p6705_p2, %p6704_p1 }
0x1fe4   :  { %6240 = vmatprep.mubr.msk.bf16.mxu0 %vm6745_vm1, %v6744_v15  ;;  %6233 = vmatpush3.bf16.msra.mxu0 %v6353_v17 }
0x1fe5   :  { %6234 = vmatprep.subr.bf16.mxu0 %v6744_v15  ;;  %p6707_p4 = pnand %p6706_p3, %p6700_p0 }
0x1fe8   :  { %6235 = vmatpush3.bf16.msra.mxu0 %v6354_v18 }
0x1fe9   :  { %6236 = vmatprep.subr.bf16.mxu0 %v6744_v15 }
0x1fec   :  { %6237 = vmatpush3.bf16.msra.mxu0 %v6355_v1 }
0x1fed   :  { %6238 = vmatprep.subr.bf16.mxu0 %v6744_v15 }
0x1ff0   :  { %6239 = vmatpush3.bf16.msra.mxu0 %v6356_v44 }
0x20b6   :  { %v5016_v24 = vpop.f32.mrb[144].mxu0 }
0x20b7   :  { %v5023_v52 = vadd.f32 %v5016_v24, %v7748_v32  ;;  %v6222_v59 = vpop.f32.mrb[145].mxu0 }
0x20b8   :  { %v5019_v58 = vpop.f32.mrb[146].mxu0 }
0x20b9   :  { %v8012_v62 = vadd.f32 %v5527_v22, %v5023_v52  ;;  %v5024_v3 = vadd.f32 %v5019_v58, %v7751_v16  ;;  %v6223_v5 = vpop.f32.mrb[147].mxu0  ;;  %v5551_v52 = vld [vmem:[#allocation10 + $0x7] ss:$0 sm:$0xff] }
0x20bb   :  { %v8015_v6 = vadd.f32 %v5527_v22, %v5024_v3  ;;  %v5039_v7 = vsel %vm153_vm0, %v8012_v62, 0.0 }
0x20bc   :  { %5040 = vadd.xlane.f32.xlu0 %v5039_v7 }
0x20bd   :  { %v5042_v25 = vsel %vm153_vm0, %v8015_v6, 0.0 }
0x20be   :  { %5043 = vadd.xlane.f32.xlu1 %v5042_v25 }
0x2149   :  { %v5041_v9 = vpop.xlane.xlu0 %5040 }
0x214a   :  { %v5045_v8 = vmul.f32 0.03125, %v5041_v9 }
0x214b   :  { %v5044_v32 = vpop.xlane.xlu1 %5043 }
0x214c   :  { %v5047_v10 = vsub.f32 %v8012_v62, %v5045_v8  ;;  %v5046_v63 = vmul.f32 0.03125, %v5044_v32 }
0x214e   :  { %v5048_v4 = vsub.f32 %v8015_v6, %v5046_v63  ;;  %v5049_v16 = vmul.f32 %v5047_v10, %v5047_v10  ;;  %v5083_v30 = vmul.f32 %v5528_v42, %v5047_v10 }
0x2150   :  { %v5051_v13 = vsel %vm153_vm0, %v5049_v16, 0.0  ;;  %v5050_v60 = vmul.f32 %v5048_v4, %v5048_v4  ;;  %v5084_v0 = vmul.f32 %v5528_v42, %v5048_v4 }
0x2151   :  { %5052 = vadd.xlane.f32.xlu0 %v5051_v13 }
0x2152   :  { %v5054_v41 = vsel %vm153_vm0, %v5050_v60, 0.0 }
0x2155   :  { %5055 = vadd.xlane.f32.xlu0 %v5054_v41 }
0x21de   :  { %v5053_v48 = vpop.xlane.xlu0 %5052 }
0x21df   :  { %v5057_v19 = vmul.f32 0.032258064, %v5053_v48 }
0x21e1   :  { %6525 = vrsqrt.f32 %v5057_v19  ;;  %vm5061_vm1 = vcmp.eq.f32.partialorder %v5057_v19, inf  ;;  %v5064_v36 = vand.u32 2147483648, %v5057_v19  ;;  %vm5063_vm6 = vcmp.eq.f32.partialorder %v5057_v19, 0.0 }
0x21e2   :  { %v5056_v31 = vpop.xlane.xlu0 %5055 }
0x21e3   :  { %v5058_v21 = vmul.f32 0.032258064, %v5056_v31 }
0x21e5   :  { %6527 = vrsqrt.f32 %v5058_v21  ;;  %vm5068_vm7 = vcmp.eq.f32.partialorder %v5058_v21, inf  ;;  %v5071_v34 = vand.u32 2147483648, %v5058_v21  ;;  %vm5070_vm8 = vcmp.eq.f32.partialorder %v5058_v21, 0.0 }
0x21eb   :  { %v6526_v2 = vpop.eup %6525 }
0x21ec   :  { %v5060_v49 = vmul.f32 %v6526_v2, %v5057_v19 }
0x21ee   :  { %v5062_v54 = vsel %vm5061_vm1, %v5057_v19, %v5060_v49 }
0x21ef   :  { %v6528_v26 = vpop.eup %6527  ;;  %v5065_v27 = vsel %vm5063_vm6, %v5064_v36, %v5062_v54 }
0x21f0   :  { %v5073_v29 = vadd.f32 1e-06, %v5065_v27  ;;  %v5067_v33 = vmul.f32 %v6528_v26, %v5058_v21 }
0x21f2   :  { %6529 = vrcp.f32 %v5073_v29  ;;  %v5069_v37 = vsel %vm5068_vm7, %v5058_v21, %v5067_v33 }
0x21f3   :  { %v5072_v56 = vsel %vm5070_vm8, %v5071_v34, %v5069_v37  ;;  %v5552_v34 = vld [vmem:[#allocation13] ss:$0 sm:$0xff] }
0x21f4   :  { %v5074_v39 = vadd.f32 1e-06, %v5072_v56 }
0x21f6   :  { %6531 = vrcp.f32 %v5074_v39  ;;  %v5553_v39 = vld [vmem:[#allocation13 + $0x1] ss:$0 sm:$0xff] }
0x21fc   :  { %v6530_v43 = vpop.eup %6529 }
0x21fd   :  { %v5085_v47 = vmul.f32 %v6530_v43, %v5083_v30 }
0x21ff   :  { %v5093_v28 = vadd.f32 %v5529_v14, %v5085_v47 }
0x2200   :  { %v6532_v46 = vpop.eup %6531 }
0x2201   :  { %v5086_v50 = vmul.f32 %v6532_v46, %v5084_v0 }
0x2203   :  { %v5094_v20 = vadd.f32 %v5529_v14, %v5086_v50 }
0x2205   :  { %v5100_v11 = vpack.c.bf16 %v5094_v20, %v5093_v28 }
0x2207   :  { %6229 = vmatmul.mubr.msk.bf16.vlgmr.msra.gmra.mrb[156].mxu1 %vm153_vm0, %v5100_v11 }
0x22da   :  { %v5158_v40 = vpop.f32.mrb[156].mxu1 }
0x22db   :  { %v5159_v53 = vadd.f32 %v5534_v35, %v5158_v40  ;;  %v6230_v61 = vpop.f32.mrb[157].mxu1 }
0x22dc   :  { %v5161_v38 = vpop.f32.mrb[158].mxu1 }
0x22dd   :  { %v5162_v51 = vadd.f32 %v5534_v35, %v5161_v38  ;;  %v6231_v55 = vpop.f32.mrb[159].mxu1  ;;  %v5165_v57 = vmax.f32 %v5159_v53, 0.0 }
0x22df   :  { %v5166_v23 = vmax.f32 %v5162_v51, 0.0 }
0x22e1   :  { %v5176_v24 = vpack.c.bf16 %v5166_v23, %v5165_v57 }
0x22e3   :  { %6241 = vmatmul.mubr.msk.bf16.vlgmr.msra.gmra.mrb[148].mxu0 %vm2654_vm4, %v5176_v24 }
0x23b6   :  { %v5238_v22 = vpop.f32.mrb[148].mxu0 }
0x23b7   :  { %v5245_v15 = vadd.f32 %v5238_v22, %v8012_v62  ;;  %v6242_v59 = vpop.f32.mrb[149].mxu0 }
0x23b8   :  { %v5241_v58 = vpop.f32.mrb[150].mxu0 }
0x23b9   :  { %v5255_v3 = vadd.f32 %v5551_v52, %v5245_v15  ;;  %v5246_v5 = vadd.f32 %v5241_v58, %v8015_v6  ;;  %v6243_v7 = vpop.f32.mrb[151].mxu0 }
0x23bb   :  { %v5256_v25 = vadd.f32 %v5551_v52, %v5246_v5  ;;  %v5260_v9 = vsel %vm153_vm0, %v5255_v3, 0.0 }
0x23bc   :  { %5261 = vadd.xlane.f32.xlu0 %v5260_v9 }
0x23bd   :  { %v5263_v8 = vsel %vm153_vm0, %v5256_v25, 0.0 }
0x23be   :  { %5264 = vadd.xlane.f32.xlu1 %v5263_v8 }
0x2449   :  { %v5262_v32 = vpop.xlane.xlu0 %5261 }
0x244a   :  { %v5266_v10 = vmul.f32 0.03125, %v5262_v32 }
0x244b   :  { %v5265_v63 = vpop.xlane.xlu1 %5264 }
0x244c   :  { %v5268_v4 = vsub.f32 %v5255_v3, %v5266_v10  ;;  %v5267_v16 = vmul.f32 0.03125, %v5265_v63 }
0x244e   :  { %v5269_v13 = vsub.f32 %v5256_v25, %v5267_v16  ;;  %v5270_v62 = vmul.f32 %v5268_v4, %v5268_v4  ;;  %v5304_v37 = vmul.f32 %v5552_v34, %v5268_v4 }
0x2450   :  { %v5272_v60 = vsel %vm153_vm0, %v5270_v62, 0.0  ;;  %v5271_v41 = vmul.f32 %v5269_v13, %v5269_v13  ;;  %v5305_v43 = vmul.f32 %v5552_v34, %v5269_v13 }
0x2451   :  { %5273 = vadd.xlane.f32.xlu0 %v5272_v60 }
0x2452   :  { %v5275_v6 = vsel %vm153_vm0, %v5271_v41, 0.0 }
0x2453   :  { %5276 = vadd.xlane.f32.xlu1 %v5275_v6 }
0x24de   :  { %v5274_v45 = vpop.xlane.xlu0 %5273 }
0x24df   :  { %v5278_v12 = vmul.f32 0.032258064, %v5274_v45 }
0x24e0   :  { %v5277_v17 = vpop.xlane.xlu1 %5276 }
0x24e1   :  { %6533 = vrsqrt.f32 %v5278_v12  ;;  %v5279_v18 = vmul.f32 0.032258064, %v5277_v17  ;;  %vm5282_vm9 = vcmp.eq.f32.partialorder %v5278_v12, inf  ;;  %v5285_v31 = vand.u32 2147483648, %v5278_v12 }
0x24e2   :  { %vm5284_vm3 = vcmp.eq.f32.partialorder %v5278_v12, 0.0 }
0x24e3   :  { %6535 = vrsqrt.f32 %v5279_v18  ;;  %vm5289_vm4 = vcmp.eq.f32.partialorder %v5279_v18, inf  ;;  %v5292_v26 = vand.u32 2147483648, %v5279_v18  ;;  %vm5291_vm5 = vcmp.eq.f32.partialorder %v5279_v18, 0.0 }
0x24eb   :  { %v6534_v48 = vpop.eup %6533 }
0x24ec   :  { %v5281_v19 = vmul.f32 %v6534_v48, %v5278_v12 }
0x24ed   :  { %v6536_v21 = vpop.eup %6535 }
0x24ee   :  { %v5283_v2 = vsel %vm5282_vm9, %v5278_v12, %v5281_v19  ;;  %v5288_v36 = vmul.f32 %v6536_v21, %v5279_v18 }
0x24ef   :  { %v5286_v49 = vsel %vm5284_vm3, %v5285_v31, %v5283_v2 }
0x24f0   :  { %v5294_v54 = vadd.f32 1e-06, %v5286_v49  ;;  %v5290_v27 = vsel %vm5289_vm4, %v5279_v18, %v5288_v36 }
0x24f1   :  { %v5293_v29 = vsel %vm5291_vm5, %v5292_v26, %v5290_v27 }
0x24f2   :  { %6537 = vrcp.f32 %v5294_v54  ;;  %v5295_v33 = vadd.f32 1e-06, %v5293_v29 }
0x24f4   :  { %6539 = vrcp.f32 %v5295_v33 }
0x24fc   :  { %v6538_v56 = vpop.eup %6537 }
0x24fd   :  { %v5306_v42 = vmul.f32 %v6538_v56, %v5304_v37 }
0x24fe   :  { %v6540_v30 = vpop.eup %6539 }
0x24ff   :  { %v5314_v0 = vadd.f32 %v5553_v39, %v5306_v42  ;;  %v5307_v47 = vmul.f32 %v6540_v30, %v5305_v43 }
0x2501   :  { %5316 = vst.msk [vmem:[#allocation14] sm:$0xff] %vm153_vm0, %v5314_v0  ;;  %v5315_v46 = vadd.f32 %v5553_v39, %v5307_v47 }
0x2503   :  { %5317 = vst.msk [vmem:[#allocation14 + $0x8] sm:$0xff] %vm153_vm0, %v5315_v46 }
0x2504   :  { %6710 = shalt.err (!%p6707_p4)
}
0x2505   :  { %s6711_s22 = scalar_lea.hbm %s8085_s13, 256 }
0x2506   :  { %p6712_p5 = scmp.ne.s32.totalorder %s8085_s13, %s6711_s22  ;;  %p6715_p6 = scmp.lt.u32.totalorder %s6711_s22, %s8085_s13 }
0x2508   :  { %p6717_p7 = pnand %p6715_p6, %p6712_p5 }
0x250a   :  { %6720 = shalt.err (!%p6717_p7)
}
0x250b   :  { %5329 = dma.vmem_to_hbm [thread:$0]  %s5324_s20, 256, %s8085_s13, [#allocation4], %s6739_s11, %s6739_s11, %s6740_s25  }
0x250c   :  { %6729 = dma.done.wait [#allocation4], 256  }
0x250d   :  { %6730 = vsyncadd [#allocation4], 4294967040 }
0x250e   :  { %5333 = vsyncpa [#allocation3], 1 }
0x250f   :  { %5334 = vsyncpa [#allocation6], 1 }
0x2510   :  { %5335 = vsyncpa [#allocation9], 1 }
0x2511   :  { %5336 = vsyncpa [#allocation12], 1 }
0x2512   :  { %5337 = vsyncpa [#allocation4], 1 }

</bundles_post_ra>
